<compile_context>
chip_gen: v7x
topology: tpu7x:2x2x1
jax: 0.10.0
libtpu: 0.0.40
codegen_flags: <defaults>
</compile_context>

<pallas_src>
import functools
import math

import jax
import jax.numpy as jnp
from jax.experimental import pallas as pl
from jax.experimental.pallas import tpu as pltpu

_EPS_IN = 1e-5        # nn.InstanceNorm2d default eps
_EPS_LN = 1e-5        # nn.LayerNorm default eps
_LEAKY_SLOPE = 0.01   # nn.LeakyReLU default negative_slope
_HI = jax.lax.Precision.HIGHEST


# ----------------------------------------------------------------------------
# In-kernel building blocks (f32 arrays resident in VMEM).
# ----------------------------------------------------------------------------
def _conv1x1(w, x):
    """(C_out, C_in) x (C_in, N) channel-mixing 1x1 conv.

    C_in here is 4 or 8, i.e. <1% of a 128x128 MXU tile, so a short chain of
    VPU broadcast-FMAs is both cheaper (no MXU pass/drain latency) and exact
    float32.  For production-scale channel counts switch this to jnp.dot.
    """
    c_in = w.shape[1]
    y = w[:, 0:1] * x[0:1, :]
    for c in range(1, c_in):
        y = y + w[:, c:c + 1] * x[c:c + 1, :]
    return y


def _instance_norm(z):
    """InstanceNorm2d (affine=False): normalize each channel over spatial N."""
    mu = jnp.mean(z, axis=1, keepdims=True)
    var = jnp.mean((z - mu) ** 2, axis=1, keepdims=True)
    return (z - mu) * jax.lax.rsqrt(var + _EPS_IN)


def _softmax_channels(z):
    """Softmax2d: softmax over the channel dim at every spatial position."""
    m = jnp.max(z, axis=0, keepdims=True)
    e = jnp.exp(z - m)
    return e / jnp.sum(e, axis=0, keepdims=True)


# ----------------------------------------------------------------------------
# Kernel 1: multi-head Q / K / V projection chains, layout (C, N = H*W).
# ----------------------------------------------------------------------------
def _make_qkv_kernel(heads, hidden):
    def kernel(*refs):
        x_ref = refs[0]
        w_refs = refs[1:1 + 9 * heads]
        q_ref, k_ref, v_ref = refs[1 + 9 * heads:]

        x = x_ref[0]                                   # (C_in, N) lane-dense

        for h in range(heads):
            (wq1, wq2, wq3, wk1, wk2, wk3, wv1, wv2, wv3) = (
                r[...] for r in w_refs[9 * h:9 * (h + 1)])
            sl = slice(h * hidden, (h + 1) * hidden)

            # query: conv -> conv -> InstanceNorm2d -> Softmax2d -> conv
            q = _conv1x1(wq3, _softmax_channels(_instance_norm(
                _conv1x1(wq2, _conv1x1(wq1, x)))))
            # key:   conv -> InstanceNorm2d -> Softmax2d -> conv -> conv
            k = _conv1x1(wk3, _conv1x1(wk2, _softmax_channels(_instance_norm(
                _conv1x1(wk1, x)))))
            # value: conv -> conv -> LeakyReLU -> conv
            v = _conv1x1(wv2, _conv1x1(wv1, x))
            v = jnp.where(v > 0, v, _LEAKY_SLOPE * v)
            v = _conv1x1(wv3, v)

            q_ref[0, sl, :] = q.astype(q_ref.dtype)
            k_ref[0, sl, :] = k.astype(k_ref.dtype)
            v_ref[0, sl, :] = v.astype(v_ref.dtype)

    return kernel


# ----------------------------------------------------------------------------
# Kernel 2: per-channel attention (q @ k^T -> LayerNorm -> softmax -> @ v),
#           layout (hidden, H, W); contractions are channel-batched MXU matmuls.
# ----------------------------------------------------------------------------
def _make_attention_kernel(heads, hidden, divide):
    inv_div = 1.0 / (divide + 1e-8)

    def kernel(q_ref, k_ref, v_ref, lnw_ref, lnb_ref, o_ref):
        lnw = lnw_ref[...]                             # (hidden, H, H) LN affine
        lnb = lnb_ref[...]
        for h in range(heads):
            sl = slice(h * hidden, (h + 1) * hidden)
            q = q_ref[0, sl, :, :]                     # (hidden, H, W)
            k = k_ref[0, sl, :, :]
            v = v_ref[0, sl, :, :]

            # s[c, i, j] = sum_w q[c, i, w] * k[c, j, w]   (q @ k^T per channel)
            s = jnp.einsum('chw,cvw->chv', q, k,
                           preferred_element_type=jnp.float32) * inv_div

            # LayerNorm([hidden, H, H]): one mean/var over the whole score slab.
            mu = jnp.mean(s, keepdims=True)
            var = jnp.mean((s - mu) ** 2, keepdims=True)
            s = (s - mu) * jax.lax.rsqrt(var + _EPS_LN) * lnw + lnb

            # softmax over the last axis.
            m = jnp.max(s, axis=-1, keepdims=True)
            e = jnp.exp(s - m)
            p = e / jnp.sum(e, axis=-1, keepdims=True)

            # soft_addressing @ v, again channel-batched on the MXU.
            attn = jnp.einsum('chv,cvw->chw', p, v,
                              preferred_element_type=jnp.float32)
            o_ref[0, sl, :, :] = attn.astype(o_ref.dtype)

    return kernel


# ----------------------------------------------------------------------------
# Kernel 3: fusion head (conv -> LayerNorm -> conv -> conv), layout (C, N).
# ----------------------------------------------------------------------------
def _fusion_kernel(x_ref, w1_ref, b1_ref, lnw_ref, lnb_ref,
                   w2_ref, b2_ref, w3_ref, b3_ref, o_ref):
    x = x_ref[0]                                       # (C_in + heads*hidden, N)

    y = _conv1x1(w1_ref[...], x) + b1_ref[...]

    # LayerNorm([C, H, W]): one mean/var over the whole (C, N) slab.
    mu = jnp.mean(y, keepdims=True)
    var = jnp.mean((y - mu) ** 2, keepdims=True)
    y = (y - mu) * jax.lax.rsqrt(var + _EPS_LN) * lnw_ref[...] + lnb_ref[...]

    y = _conv1x1(w2_ref[...], y) + b2_ref[...]
    y = _conv1x1(w3_ref[...], y) + b3_ref[...]
    o_ref[0] = y.astype(o_ref.dtype)


# ----------------------------------------------------------------------------
# Wrapper: three pallas_calls connected by free XLA layout glue.
# ----------------------------------------------------------------------------
def _replicated_spec(shape):
    zeros = (0,) * len(shape)
    return pl.BlockSpec(shape, lambda b: zeros)


def attention_block_forward(x, params, *, hidden, heads):
    """Pallas equivalent of AttentionBlock.forward for an NCHW input."""
    B, C, H, W = x.shape
    N = H * W
    hd = heads * hidden
    h2 = 2 * hidden
    c_cat = C + hd
    c_f = C + hidden
    out_c = params['wf3'].shape[0]
    divide = math.sqrt(H * W)
    f32 = jnp.float32
    parallel = pltpu.CompilerParams(dimension_semantics=("parallel",))

    x2 = x.reshape(B, C, N)                            # free metadata reshape

    # ------------------ 1) Q / K / V projection chains ------------------
    w_list = []
    for h in range(heads):
        w_list += [params[f'wq1_{h}'], params[f'wq2_{h}'], params[f'wq3_{h}'],
                   params[f'wk1_{h}'], params[f'wk2_{h}'], params[f'wk3_{h}'],
                   params[f'wv1_{h}'], params[f'wv2_{h}'], params[f'wv3_{h}']]

    qkv_cost = pl.CostEstimate(
        flops=int(6 * B * heads * N * h2 * (C + h2 + hidden)),
        transcendentals=int(2 * B * heads * h2 * N),
        bytes_accessed=int(4 * (B * C * N + 3 * B * hd * N
                                + sum(w.size for w in w_list))),
    )
    q2, k2, v2 = pl.pallas_call(
        _make_qkv_kernel(heads, hidden),
        out_shape=[jax.ShapeDtypeStruct((B, hd, N), f32)] * 3,
        grid=(B,),
        in_specs=([pl.BlockSpec((1, C, N), lambda b: (b, 0, 0))]
                  + [_replicated_spec(w.shape) for w in w_list]),
        out_specs=[pl.BlockSpec((1, hd, N), lambda b: (b, 0, 0))] * 3,
        compiler_params=parallel,
        cost_estimate=qkv_cost,
    )(x2, *w_list)

    # ------------------ 2) per-channel attention ------------------
    q4 = q2.reshape(B, hd, H, W)
    k4 = k2.reshape(B, hd, H, W)
    v4 = v2.reshape(B, hd, H, W)

    attn_cost = pl.CostEstimate(
        flops=int(4 * B * hd * H * H * W),
        transcendentals=int(B * hd * H * H),
        bytes_accessed=int(4 * (4 * B * hd * H * W + 2 * hidden * H * H)),
    )
    attn4 = pl.pallas_call(
        _make_attention_kernel(heads, hidden, divide),
        out_shape=jax.ShapeDtypeStruct((B, hd, H, W), f32),
        grid=(B,),
        in_specs=([pl.BlockSpec((1, hd, H, W), lambda b: (b, 0, 0, 0))] * 3
                  + [_replicated_spec(params['ln1_w'].shape),
                     _replicated_spec(params['ln1_b'].shape)]),
        out_specs=pl.BlockSpec((1, hd, H, W), lambda b: (b, 0, 0, 0)),
        compiler_params=parallel,
        cost_estimate=attn_cost,
    )(q4, k4, v4, params['ln1_w'], params['ln1_b'])

    # ------------------ 3) concat + fusion convs ------------------
    cat = jnp.concatenate([x2, attn4.reshape(B, hd, N)], axis=1)   # (B, C+hd, N)

    fusion_args = [params['wf1'], params['bf1'].reshape(c_f, 1),
                   params['ln2_w'].reshape(c_f, N), params['ln2_b'].reshape(c_f, N),
                   params['wf2'], params['bf2'].reshape(c_f, 1),
                   params['wf3'], params['bf3'].reshape(out_c, 1)]

    fusion_cost = pl.CostEstimate(
        flops=int(2 * B * N * (c_f * c_cat + c_f * c_f + out_c * c_f)),
        transcendentals=0,
        bytes_accessed=int(4 * (B * c_cat * N + B * out_c * N
                                + sum(a.size for a in fusion_args))),
    )
    out2 = pl.pallas_call(
        _fusion_kernel,
        out_shape=jax.ShapeDtypeStruct((B, out_c, N), f32),
        grid=(B,),
        in_specs=([pl.BlockSpec((1, c_cat, N), lambda b: (b, 0, 0))]
                  + [_replicated_spec(a.shape) for a in fusion_args]),
        out_specs=pl.BlockSpec((1, out_c, N), lambda b: (b, 0, 0)),
        compiler_params=parallel,
        cost_estimate=fusion_cost,
    )(cat, *fusion_args)

    return out2.reshape(B, out_c, H, W)


# ----------------------------------------------------------------------------
# Pure-JAX reference (mirrors the torch forward, full-precision matmuls).
# ----------------------------------------------------------------------------
def reference_forward(x, params, *, hidden, heads):
    B, C, H, W = x.shape
    N = H * W
    divide = math.sqrt(H * W)
    inv_div = 1.0 / (divide + 1e-8)
    x2 = x.reshape(B, C, N)

    def conv(w, z, b=None):
        y = jnp.einsum('oc,bcn->bon', w, z, precision=_HI)
        return y if b is None else y + b[None, :, None]

    def instance_norm(z):
        mu = z.mean(axis=-1, keepdims=True)
        var = ((z - mu) ** 2).mean(axis=-1, keepdims=True)
        return (z - mu) * jax.lax.rsqrt(var + _EPS_IN)

    def softmax2d(z):
        m = z.max(axis=1, keepdims=True)
        e = jnp.exp(z - m)
        return e / e.sum(axis=1, keepdims=True)

    cat = x2
    for h in range(heads):
        q = conv(params[f'wq3_{h}'],
                 softmax2d(instance_norm(conv(params[f'wq2_{h}'],
                                              conv(params[f'wq1_{h}'], x2)))))
        k = conv(params[f'wk3_{h}'],
                 conv(params[f'wk2_{h}'],
                      softmax2d(instance_norm(conv(params[f'wk1_{h}'], x2)))))
        v = conv(params[f'wv2_{h}'], conv(params[f'wv1_{h}'], x2))
        v = jnp.where(v > 0, v, _LEAKY_SLOPE * v)
        v = conv(params[f'wv3_{h}'], v)

        q4, k4, v4 = (t.reshape(B, hidden, H, W) for t in (q, k, v))
        s = jnp.einsum('bchw,bcvw->bchv', q4, k4, precision=_HI) * inv_div
        mu = s.mean(axis=(1, 2, 3), keepdims=True)
        var = ((s - mu) ** 2).mean(axis=(1, 2, 3), keepdims=True)
        s = ((s - mu) * jax.lax.rsqrt(var + _EPS_LN)
             * params['ln1_w'][None] + params['ln1_b'][None])
        s = s - s.max(axis=-1, keepdims=True)
        e = jnp.exp(s)
        p = e / e.sum(axis=-1, keepdims=True)
        attn = jnp.einsum('bchv,bcvw->bchw', p, v4, precision=_HI)
        cat = jnp.concatenate([cat, attn.reshape(B, hidden, N)], axis=1)

    c_f = C + hidden
    y = conv(params['wf1'], cat, params['bf1'])
    mu = y.mean(axis=(1, 2), keepdims=True)
    var = ((y - mu) ** 2).mean(axis=(1, 2), keepdims=True)
    y = ((y - mu) * jax.lax.rsqrt(var + _EPS_LN)
         * params['ln2_w'].reshape(1, c_f, N) + params['ln2_b'].reshape(1, c_f, N))
    y = conv(params['wf2'], y, params['bf2'])
    y = conv(params['wf3'], y, params['bf3'])
    return y.reshape(B, -1, H, W)


# ----------------------------------------------------------------------------
# Parameter construction (deterministic, mirrors the torch module's shapes).
# ----------------------------------------------------------------------------
def init_params(key, *, in_c, out_c, hidden, heads, H, W):
    h2 = 2 * hidden
    c_f = in_c + hidden
    c_cat = in_c + heads * hidden
    keys = iter(jax.random.split(key, 9 * heads + 10))

    def w(shape, scale=0.25):
        return scale * jax.random.normal(next(keys), shape, dtype=jnp.float32)

    p = {}
    for h in range(heads):
        p[f'wq1_{h}'], p[f'wq2_{h}'], p[f'wq3_{h}'] = (
            w((h2, in_c)), w((h2, h2)), w((hidden, h2)))
        p[f'wk1_{h}'], p[f'wk2_{h}'], p[f'wk3_{h}'] = (
            w((h2, in_c)), w((h2, h2)), w((hidden, h2)))
        p[f'wv1_{h}'], p[f'wv2_{h}'], p[f'wv3_{h}'] = (
            w((h2, in_c)), w((h2, h2)), w((hidden, h2)))
    p['ln1_w'] = 1.0 + w((hidden, H, H), 0.1)
    p['ln1_b'] = w((hidden, H, H), 0.1)
    p['wf1'], p['bf1'] = w((c_f, c_cat)), w((c_f,), 0.1)
    p['ln2_w'] = 1.0 + w((c_f, H, W), 0.1)
    p['ln2_b'] = w((c_f, H, W), 0.1)
    p['wf2'], p['bf2'] = w((c_f, c_f)), w((c_f,), 0.1)
    p['wf3'], p['bf3'] = w((out_c, c_f)), w((out_c,), 0.1)
    return p


if __name__ == "__main__":
    B, in_c, out_c = 2, 4, 4
    ratio, heads = 1, 1
    H = W = 16
    hidden = in_c // ratio

    key = jax.random.PRNGKey(0)
    kx, kp = jax.random.split(key)
    x = jax.random.normal(kx, (B, in_c, H, W), dtype=jnp.float32)
    params = init_params(kp, in_c=in_c, out_c=out_c, hidden=hidden,
                         heads=heads, H=H, W=W)

    fwd = jax.jit(functools.partial(attention_block_forward,
                                    hidden=hidden, heads=heads))
    y = jax.block_until_ready(fwd(x, params))

    y_ref = jax.block_until_ready(
        reference_forward(x, params, hidden=hidden, heads=heads))

    assert y.shape == (B, out_c, H, W), y.shape
    assert y.dtype == jnp.float32
    assert bool(jnp.all(jnp.isfinite(y)))
    # Tolerance leaves headroom for possible reduced-precision (bf16-pass) MXU
    # lowering of the small in-kernel attention contractions; typical error is
    # ~1e-6, structural bugs would show up as O(0.1+) differences.
    err = float(jnp.max(jnp.abs(y - y_ref)))
    assert err < 2e-2, f"max |pallas - ref| = {err}"
    print("KERNEL_OK")
</pallas_src>

<mosaic_0001>
module attributes {stable_mosaic.version = 11 : i64} {
  func.func @kernel(%arg0: i32, %arg1: memref<1x4x256xf32, #tpu.memory_space<vmem>>, %arg2: memref<8x4xf32, #tpu.memory_space<vmem>>, %arg3: memref<8x8xf32, #tpu.memory_space<vmem>>, %arg4: memref<4x8xf32, #tpu.memory_space<vmem>>, %arg5: memref<8x4xf32, #tpu.memory_space<vmem>>, %arg6: memref<8x8xf32, #tpu.memory_space<vmem>>, %arg7: memref<4x8xf32, #tpu.memory_space<vmem>>, %arg8: memref<8x4xf32, #tpu.memory_space<vmem>>, %arg9: memref<8x8xf32, #tpu.memory_space<vmem>>, %arg10: memref<4x8xf32, #tpu.memory_space<vmem>>, %arg11: memref<1x4x256xf32, #tpu.memory_space<vmem>>, %arg12: memref<1x4x256xf32, #tpu.memory_space<vmem>>, %arg13: memref<1x4x256xf32, #tpu.memory_space<vmem>>) attributes {dimension_semantics = [#tpu.dimension_semantics<parallel>], iteration_bounds = array<i64: 2>, scalar_prefetch = 0 : i64, scratch_operands = 0 : i64, tpu.core_type = #tpu.core_type<tc>, window_params = [{transform_indices = @transform_0, window_bounds = array<i64: 1, 4, 256>}, {pipeline_mode = #tpu.pipeline_mode<synchronous>, transform_indices = @transform_1, window_bounds = array<i64: 8, 4>}, {pipeline_mode = #tpu.pipeline_mode<synchronous>, transform_indices = @transform_2, window_bounds = array<i64: 8, 8>}, {pipeline_mode = #tpu.pipeline_mode<synchronous>, transform_indices = @transform_3, window_bounds = array<i64: 4, 8>}, {pipeline_mode = #tpu.pipeline_mode<synchronous>, transform_indices = @transform_4, window_bounds = array<i64: 8, 4>}, {pipeline_mode = #tpu.pipeline_mode<synchronous>, transform_indices = @transform_5, window_bounds = array<i64: 8, 8>}, {pipeline_mode = #tpu.pipeline_mode<synchronous>, transform_indices = @transform_6, window_bounds = array<i64: 4, 8>}, {pipeline_mode = #tpu.pipeline_mode<synchronous>, transform_indices = @transform_7, window_bounds = array<i64: 8, 4>}, {pipeline_mode = #tpu.pipeline_mode<synchronous>, transform_indices = @transform_8, window_bounds = array<i64: 8, 8>}, {pipeline_mode = #tpu.pipeline_mode<synchronous>, transform_indices = @transform_9, window_bounds = array<i64: 4, 8>}, {transform_indices = @transform_10, window_bounds = array<i64: 1, 4, 256>}, {transform_indices = @transform_11, window_bounds = array<i64: 1, 4, 256>}, {transform_indices = @transform_12, window_bounds = array<i64: 1, 4, 256>}]} {
    %c0 = arith.constant 0 : index
    %c0_0 = arith.constant 0 : index
    %c0_1 = arith.constant 0 : index
    %0 = vector.load %arg1[%c0, %c0_0, %c0_1] : memref<1x4x256xf32, #tpu.memory_space<vmem>>, vector<1x4x256xf32>
    %1 = vector.shape_cast %0 : vector<1x4x256xf32> to vector<4x256xf32>
    %c0_2 = arith.constant 0 : index
    %c0_3 = arith.constant 0 : index
    %2 = vector.load %arg2[%c0_2, %c0_3] : memref<8x4xf32, #tpu.memory_space<vmem>>, vector<8x4xf32>
    %c0_4 = arith.constant 0 : index
    %c0_5 = arith.constant 0 : index
    %3 = vector.load %arg3[%c0_4, %c0_5] : memref<8x8xf32, #tpu.memory_space<vmem>>, vector<8x8xf32>
    %c0_6 = arith.constant 0 : index
    %c0_7 = arith.constant 0 : index
    %4 = vector.load %arg4[%c0_6, %c0_7] : memref<4x8xf32, #tpu.memory_space<vmem>>, vector<4x8xf32>
    %c0_8 = arith.constant 0 : index
    %c0_9 = arith.constant 0 : index
    %5 = vector.load %arg5[%c0_8, %c0_9] : memref<8x4xf32, #tpu.memory_space<vmem>>, vector<8x4xf32>
    %c0_10 = arith.constant 0 : index
    %c0_11 = arith.constant 0 : index
    %6 = vector.load %arg6[%c0_10, %c0_11] : memref<8x8xf32, #tpu.memory_space<vmem>>, vector<8x8xf32>
    %c0_12 = arith.constant 0 : index
    %c0_13 = arith.constant 0 : index
    %7 = vector.load %arg7[%c0_12, %c0_13] : memref<4x8xf32, #tpu.memory_space<vmem>>, vector<4x8xf32>
    %c0_14 = arith.constant 0 : index
    %c0_15 = arith.constant 0 : index
    %8 = vector.load %arg8[%c0_14, %c0_15] : memref<8x4xf32, #tpu.memory_space<vmem>>, vector<8x4xf32>
    %c0_16 = arith.constant 0 : index
    %c0_17 = arith.constant 0 : index
    %9 = vector.load %arg9[%c0_16, %c0_17] : memref<8x8xf32, #tpu.memory_space<vmem>>, vector<8x8xf32>
    %c0_18 = arith.constant 0 : index
    %c0_19 = arith.constant 0 : index
    %10 = vector.load %arg10[%c0_18, %c0_19] : memref<4x8xf32, #tpu.memory_space<vmem>>, vector<4x8xf32>
    %11 = vector.extract_strided_slice %2 {offsets = [0, 0], sizes = [8, 1], strides = [1, 1]} : vector<8x4xf32> to vector<8x1xf32>
    %12 = vector.extract_strided_slice %1 {offsets = [0, 0], sizes = [1, 256], strides = [1, 1]} : vector<4x256xf32> to vector<1x256xf32>
    %13 = vector.broadcast %11 : vector<8x1xf32> to vector<8x256xf32>
    %14 = vector.broadcast %12 : vector<1x256xf32> to vector<8x256xf32>
    %15 = arith.mulf %13, %14 : vector<8x256xf32>
    %16 = vector.extract_strided_slice %2 {offsets = [0, 1], sizes = [8, 1], strides = [1, 1]} : vector<8x4xf32> to vector<8x1xf32>
    %17 = vector.extract_strided_slice %1 {offsets = [1, 0], sizes = [1, 256], strides = [1, 1]} : vector<4x256xf32> to vector<1x256xf32>
    %18 = vector.broadcast %16 : vector<8x1xf32> to vector<8x256xf32>
    %19 = vector.broadcast %17 : vector<1x256xf32> to vector<8x256xf32>
    %20 = arith.mulf %18, %19 : vector<8x256xf32>
    %21 = arith.addf %15, %20 : vector<8x256xf32>
    %22 = vector.extract_strided_slice %2 {offsets = [0, 2], sizes = [8, 1], strides = [1, 1]} : vector<8x4xf32> to vector<8x1xf32>
    %23 = vector.extract_strided_slice %1 {offsets = [2, 0], sizes = [1, 256], strides = [1, 1]} : vector<4x256xf32> to vector<1x256xf32>
    %24 = vector.broadcast %22 : vector<8x1xf32> to vector<8x256xf32>
    %25 = vector.broadcast %23 : vector<1x256xf32> to vector<8x256xf32>
    %26 = arith.mulf %24, %25 : vector<8x256xf32>
    %27 = arith.addf %21, %26 : vector<8x256xf32>
    %28 = vector.extract_strided_slice %2 {offsets = [0, 3], sizes = [8, 1], strides = [1, 1]} : vector<8x4xf32> to vector<8x1xf32>
    %29 = vector.extract_strided_slice %1 {offsets = [3, 0], sizes = [1, 256], strides = [1, 1]} : vector<4x256xf32> to vector<1x256xf32>
    %30 = vector.broadcast %28 : vector<8x1xf32> to vector<8x256xf32>
    %31 = vector.broadcast %29 : vector<1x256xf32> to vector<8x256xf32>
    %32 = arith.mulf %30, %31 : vector<8x256xf32>
    %33 = arith.addf %27, %32 : vector<8x256xf32>
    %34 = vector.extract_strided_slice %3 {offsets = [0, 0], sizes = [8, 1], strides = [1, 1]} : vector<8x8xf32> to vector<8x1xf32>
    %35 = vector.extract_strided_slice %33 {offsets = [0, 0], sizes = [1, 256], strides = [1, 1]} : vector<8x256xf32> to vector<1x256xf32>
    %36 = vector.broadcast %34 : vector<8x1xf32> to vector<8x256xf32>
    %37 = vector.broadcast %35 : vector<1x256xf32> to vector<8x256xf32>
    %38 = arith.mulf %36, %37 : vector<8x256xf32>
    %39 = vector.extract_strided_slice %3 {offsets = [0, 1], sizes = [8, 1], strides = [1, 1]} : vector<8x8xf32> to vector<8x1xf32>
    %40 = vector.extract_strided_slice %33 {offsets = [1, 0], sizes = [1, 256], strides = [1, 1]} : vector<8x256xf32> to vector<1x256xf32>
    %41 = vector.broadcast %39 : vector<8x1xf32> to vector<8x256xf32>
    %42 = vector.broadcast %40 : vector<1x256xf32> to vector<8x256xf32>
    %43 = arith.mulf %41, %42 : vector<8x256xf32>
    %44 = arith.addf %38, %43 : vector<8x256xf32>
    %45 = vector.extract_strided_slice %3 {offsets = [0, 2], sizes = [8, 1], strides = [1, 1]} : vector<8x8xf32> to vector<8x1xf32>
    %46 = vector.extract_strided_slice %33 {offsets = [2, 0], sizes = [1, 256], strides = [1, 1]} : vector<8x256xf32> to vector<1x256xf32>
    %47 = vector.broadcast %45 : vector<8x1xf32> to vector<8x256xf32>
    %48 = vector.broadcast %46 : vector<1x256xf32> to vector<8x256xf32>
    %49 = arith.mulf %47, %48 : vector<8x256xf32>
    %50 = arith.addf %44, %49 : vector<8x256xf32>
    %51 = vector.extract_strided_slice %3 {offsets = [0, 3], sizes = [8, 1], strides = [1, 1]} : vector<8x8xf32> to vector<8x1xf32>
    %52 = vector.extract_strided_slice %33 {offsets = [3, 0], sizes = [1, 256], strides = [1, 1]} : vector<8x256xf32> to vector<1x256xf32>
    %53 = vector.broadcast %51 : vector<8x1xf32> to vector<8x256xf32>
    %54 = vector.broadcast %52 : vector<1x256xf32> to vector<8x256xf32>
    %55 = arith.mulf %53, %54 : vector<8x256xf32>
    %56 = arith.addf %50, %55 : vector<8x256xf32>
    %57 = vector.extract_strided_slice %3 {offsets = [0, 4], sizes = [8, 1], strides = [1, 1]} : vector<8x8xf32> to vector<8x1xf32>
    %58 = vector.extract_strided_slice %33 {offsets = [4, 0], sizes = [1, 256], strides = [1, 1]} : vector<8x256xf32> to vector<1x256xf32>
    %59 = vector.broadcast %57 : vector<8x1xf32> to vector<8x256xf32>
    %60 = vector.broadcast %58 : vector<1x256xf32> to vector<8x256xf32>
    %61 = arith.mulf %59, %60 : vector<8x256xf32>
    %62 = arith.addf %56, %61 : vector<8x256xf32>
    %63 = vector.extract_strided_slice %3 {offsets = [0, 5], sizes = [8, 1], strides = [1, 1]} : vector<8x8xf32> to vector<8x1xf32>
    %64 = vector.extract_strided_slice %33 {offsets = [5, 0], sizes = [1, 256], strides = [1, 1]} : vector<8x256xf32> to vector<1x256xf32>
    %65 = vector.broadcast %63 : vector<8x1xf32> to vector<8x256xf32>
    %66 = vector.broadcast %64 : vector<1x256xf32> to vector<8x256xf32>
    %67 = arith.mulf %65, %66 : vector<8x256xf32>
    %68 = arith.addf %62, %67 : vector<8x256xf32>
    %69 = vector.extract_strided_slice %3 {offsets = [0, 6], sizes = [8, 1], strides = [1, 1]} : vector<8x8xf32> to vector<8x1xf32>
    %70 = vector.extract_strided_slice %33 {offsets = [6, 0], sizes = [1, 256], strides = [1, 1]} : vector<8x256xf32> to vector<1x256xf32>
    %71 = vector.broadcast %69 : vector<8x1xf32> to vector<8x256xf32>
    %72 = vector.broadcast %70 : vector<1x256xf32> to vector<8x256xf32>
    %73 = arith.mulf %71, %72 : vector<8x256xf32>
    %74 = arith.addf %68, %73 : vector<8x256xf32>
    %75 = vector.extract_strided_slice %3 {offsets = [0, 7], sizes = [8, 1], strides = [1, 1]} : vector<8x8xf32> to vector<8x1xf32>
    %76 = vector.extract_strided_slice %33 {offsets = [7, 0], sizes = [1, 256], strides = [1, 1]} : vector<8x256xf32> to vector<1x256xf32>
    %77 = vector.broadcast %75 : vector<8x1xf32> to vector<8x256xf32>
    %78 = vector.broadcast %76 : vector<1x256xf32> to vector<8x256xf32>
    %79 = arith.mulf %77, %78 : vector<8x256xf32>
    %80 = arith.addf %74, %79 : vector<8x256xf32>
    %cst = arith.constant dense<0.000000e+00> : vector<8xf32>
    %81 = vector.multi_reduction <add>, %80, %cst [1] : vector<8x256xf32> to vector<8xf32>
    %82 = vector.shape_cast %81 : vector<8xf32> to vector<8x1xf32>
    %cst_20 = arith.constant 2.560000e+02 : f32
    %83 = vector.broadcast %cst_20 : f32 to vector<8x1xf32>
    %84 = arith.divf %82, %83 : vector<8x1xf32>
    %85 = vector.broadcast %84 : vector<8x1xf32> to vector<8x256xf32>
    %86 = arith.subf %80, %85 : vector<8x256xf32>
    %87 = arith.mulf %86, %86 : vector<8x256xf32>
    %cst_21 = arith.constant dense<0.000000e+00> : vector<8xf32>
    %88 = vector.multi_reduction <add>, %87, %cst_21 [1] : vector<8x256xf32> to vector<8xf32>
    %89 = vector.shape_cast %88 : vector<8xf32> to vector<8x1xf32>
    %cst_22 = arith.constant 2.560000e+02 : f32
    %90 = vector.broadcast %cst_22 : f32 to vector<8x1xf32>
    %91 = arith.divf %89, %90 : vector<8x1xf32>
    %92 = vector.broadcast %84 : vector<8x1xf32> to vector<8x256xf32>
    %93 = arith.subf %80, %92 : vector<8x256xf32>
    %cst_23 = arith.constant 9.99999974E-6 : f32
    %94 = vector.broadcast %cst_23 : f32 to vector<8x1xf32>
    %95 = arith.addf %91, %94 : vector<8x1xf32>
    %96 = math.rsqrt %95 : vector<8x1xf32>
    %97 = vector.broadcast %96 : vector<8x1xf32> to vector<8x256xf32>
    %98 = arith.mulf %93, %97 : vector<8x256xf32>
    %cst_24 = arith.constant dense<0xFF800000> : vector<256xf32>
    %99 = vector.multi_reduction <maximumf>, %98, %cst_24 [0] : vector<8x256xf32> to vector<256xf32>
    %100 = vector.shape_cast %99 : vector<256xf32> to vector<1x256xf32>
    %101 = vector.broadcast %100 : vector<1x256xf32> to vector<8x256xf32>
    %102 = arith.subf %98, %101 : vector<8x256xf32>
    %103 = math.exp %102 : vector<8x256xf32>
    %cst_25 = arith.constant dense<0.000000e+00> : vector<256xf32>
    %104 = vector.multi_reduction <add>, %103, %cst_25 [0] : vector<8x256xf32> to vector<256xf32>
    %105 = vector.shape_cast %104 : vector<256xf32> to vector<1x256xf32>
    %106 = vector.broadcast %105 : vector<1x256xf32> to vector<8x256xf32>
    %107 = arith.divf %103, %106 : vector<8x256xf32>
    %108 = vector.extract_strided_slice %4 {offsets = [0, 0], sizes = [4, 1], strides = [1, 1]} : vector<4x8xf32> to vector<4x1xf32>
    %109 = vector.extract_strided_slice %107 {offsets = [0, 0], sizes = [1, 256], strides = [1, 1]} : vector<8x256xf32> to vector<1x256xf32>
    %110 = vector.broadcast %108 : vector<4x1xf32> to vector<4x256xf32>
    %111 = vector.broadcast %109 : vector<1x256xf32> to vector<4x256xf32>
    %112 = arith.mulf %110, %111 : vector<4x256xf32>
    %113 = vector.extract_strided_slice %4 {offsets = [0, 1], sizes = [4, 1], strides = [1, 1]} : vector<4x8xf32> to vector<4x1xf32>
    %114 = vector.extract_strided_slice %107 {offsets = [1, 0], sizes = [1, 256], strides = [1, 1]} : vector<8x256xf32> to vector<1x256xf32>
    %115 = vector.broadcast %113 : vector<4x1xf32> to vector<4x256xf32>
    %116 = vector.broadcast %114 : vector<1x256xf32> to vector<4x256xf32>
    %117 = arith.mulf %115, %116 : vector<4x256xf32>
    %118 = arith.addf %112, %117 : vector<4x256xf32>
    %119 = vector.extract_strided_slice %4 {offsets = [0, 2], sizes = [4, 1], strides = [1, 1]} : vector<4x8xf32> to vector<4x1xf32>
    %120 = vector.extract_strided_slice %107 {offsets = [2, 0], sizes = [1, 256], strides = [1, 1]} : vector<8x256xf32> to vector<1x256xf32>
    %121 = vector.broadcast %119 : vector<4x1xf32> to vector<4x256xf32>
    %122 = vector.broadcast %120 : vector<1x256xf32> to vector<4x256xf32>
    %123 = arith.mulf %121, %122 : vector<4x256xf32>
    %124 = arith.addf %118, %123 : vector<4x256xf32>
    %125 = vector.extract_strided_slice %4 {offsets = [0, 3], sizes = [4, 1], strides = [1, 1]} : vector<4x8xf32> to vector<4x1xf32>
    %126 = vector.extract_strided_slice %107 {offsets = [3, 0], sizes = [1, 256], strides = [1, 1]} : vector<8x256xf32> to vector<1x256xf32>
    %127 = vector.broadcast %125 : vector<4x1xf32> to vector<4x256xf32>
    %128 = vector.broadcast %126 : vector<1x256xf32> to vector<4x256xf32>
    %129 = arith.mulf %127, %128 : vector<4x256xf32>
    %130 = arith.addf %124, %129 : vector<4x256xf32>
    %131 = vector.extract_strided_slice %4 {offsets = [0, 4], sizes = [4, 1], strides = [1, 1]} : vector<4x8xf32> to vector<4x1xf32>
    %132 = vector.extract_strided_slice %107 {offsets = [4, 0], sizes = [1, 256], strides = [1, 1]} : vector<8x256xf32> to vector<1x256xf32>
    %133 = vector.broadcast %131 : vector<4x1xf32> to vector<4x256xf32>
    %134 = vector.broadcast %132 : vector<1x256xf32> to vector<4x256xf32>
    %135 = arith.mulf %133, %134 : vector<4x256xf32>
    %136 = arith.addf %130, %135 : vector<4x256xf32>
    %137 = vector.extract_strided_slice %4 {offsets = [0, 5], sizes = [4, 1], strides = [1, 1]} : vector<4x8xf32> to vector<4x1xf32>
    %138 = vector.extract_strided_slice %107 {offsets = [5, 0], sizes = [1, 256], strides = [1, 1]} : vector<8x256xf32> to vector<1x256xf32>
    %139 = vector.broadcast %137 : vector<4x1xf32> to vector<4x256xf32>
    %140 = vector.broadcast %138 : vector<1x256xf32> to vector<4x256xf32>
    %141 = arith.mulf %139, %140 : vector<4x256xf32>
    %142 = arith.addf %136, %141 : vector<4x256xf32>
    %143 = vector.extract_strided_slice %4 {offsets = [0, 6], sizes = [4, 1], strides = [1, 1]} : vector<4x8xf32> to vector<4x1xf32>
    %144 = vector.extract_strided_slice %107 {offsets = [6, 0], sizes = [1, 256], strides = [1, 1]} : vector<8x256xf32> to vector<1x256xf32>
    %145 = vector.broadcast %143 : vector<4x1xf32> to vector<4x256xf32>
    %146 = vector.broadcast %144 : vector<1x256xf32> to vector<4x256xf32>
    %147 = arith.mulf %145, %146 : vector<4x256xf32>
    %148 = arith.addf %142, %147 : vector<4x256xf32>
    %149 = vector.extract_strided_slice %4 {offsets = [0, 7], sizes = [4, 1], strides = [1, 1]} : vector<4x8xf32> to vector<4x1xf32>
    %150 = vector.extract_strided_slice %107 {offsets = [7, 0], sizes = [1, 256], strides = [1, 1]} : vector<8x256xf32> to vector<1x256xf32>
    %151 = vector.broadcast %149 : vector<4x1xf32> to vector<4x256xf32>
    %152 = vector.broadcast %150 : vector<1x256xf32> to vector<4x256xf32>
    %153 = arith.mulf %151, %152 : vector<4x256xf32>
    %154 = arith.addf %148, %153 : vector<4x256xf32>
    %155 = vector.extract_strided_slice %5 {offsets = [0, 0], sizes = [8, 1], strides = [1, 1]} : vector<8x4xf32> to vector<8x1xf32>
    %156 = vector.extract_strided_slice %1 {offsets = [0, 0], sizes = [1, 256], strides = [1, 1]} : vector<4x256xf32> to vector<1x256xf32>
    %157 = vector.broadcast %155 : vector<8x1xf32> to vector<8x256xf32>
    %158 = vector.broadcast %156 : vector<1x256xf32> to vector<8x256xf32>
    %159 = arith.mulf %157, %158 : vector<8x256xf32>
    %160 = vector.extract_strided_slice %5 {offsets = [0, 1], sizes = [8, 1], strides = [1, 1]} : vector<8x4xf32> to vector<8x1xf32>
    %161 = vector.extract_strided_slice %1 {offsets = [1, 0], sizes = [1, 256], strides = [1, 1]} : vector<4x256xf32> to vector<1x256xf32>
    %162 = vector.broadcast %160 : vector<8x1xf32> to vector<8x256xf32>
    %163 = vector.broadcast %161 : vector<1x256xf32> to vector<8x256xf32>
    %164 = arith.mulf %162, %163 : vector<8x256xf32>
    %165 = arith.addf %159, %164 : vector<8x256xf32>
    %166 = vector.extract_strided_slice %5 {offsets = [0, 2], sizes = [8, 1], strides = [1, 1]} : vector<8x4xf32> to vector<8x1xf32>
    %167 = vector.extract_strided_slice %1 {offsets = [2, 0], sizes = [1, 256], strides = [1, 1]} : vector<4x256xf32> to vector<1x256xf32>
    %168 = vector.broadcast %166 : vector<8x1xf32> to vector<8x256xf32>
    %169 = vector.broadcast %167 : vector<1x256xf32> to vector<8x256xf32>
    %170 = arith.mulf %168, %169 : vector<8x256xf32>
    %171 = arith.addf %165, %170 : vector<8x256xf32>
    %172 = vector.extract_strided_slice %5 {offsets = [0, 3], sizes = [8, 1], strides = [1, 1]} : vector<8x4xf32> to vector<8x1xf32>
    %173 = vector.extract_strided_slice %1 {offsets = [3, 0], sizes = [1, 256], strides = [1, 1]} : vector<4x256xf32> to vector<1x256xf32>
    %174 = vector.broadcast %172 : vector<8x1xf32> to vector<8x256xf32>
    %175 = vector.broadcast %173 : vector<1x256xf32> to vector<8x256xf32>
    %176 = arith.mulf %174, %175 : vector<8x256xf32>
    %177 = arith.addf %171, %176 : vector<8x256xf32>
    %cst_26 = arith.constant dense<0.000000e+00> : vector<8xf32>
    %178 = vector.multi_reduction <add>, %177, %cst_26 [1] : vector<8x256xf32> to vector<8xf32>
    %179 = vector.shape_cast %178 : vector<8xf32> to vector<8x1xf32>
    %cst_27 = arith.constant 2.560000e+02 : f32
    %180 = vector.broadcast %cst_27 : f32 to vector<8x1xf32>
    %181 = arith.divf %179, %180 : vector<8x1xf32>
    %182 = vector.broadcast %181 : vector<8x1xf32> to vector<8x256xf32>
    %183 = arith.subf %177, %182 : vector<8x256xf32>
    %184 = arith.mulf %183, %183 : vector<8x256xf32>
    %cst_28 = arith.constant dense<0.000000e+00> : vector<8xf32>
    %185 = vector.multi_reduction <add>, %184, %cst_28 [1] : vector<8x256xf32> to vector<8xf32>
    %186 = vector.shape_cast %185 : vector<8xf32> to vector<8x1xf32>
    %cst_29 = arith.constant 2.560000e+02 : f32
    %187 = vector.broadcast %cst_29 : f32 to vector<8x1xf32>
    %188 = arith.divf %186, %187 : vector<8x1xf32>
    %189 = vector.broadcast %181 : vector<8x1xf32> to vector<8x256xf32>
    %190 = arith.subf %177, %189 : vector<8x256xf32>
    %cst_30 = arith.constant 9.99999974E-6 : f32
    %191 = vector.broadcast %cst_30 : f32 to vector<8x1xf32>
    %192 = arith.addf %188, %191 : vector<8x1xf32>
    %193 = math.rsqrt %192 : vector<8x1xf32>
    %194 = vector.broadcast %193 : vector<8x1xf32> to vector<8x256xf32>
    %195 = arith.mulf %190, %194 : vector<8x256xf32>
    %cst_31 = arith.constant dense<0xFF800000> : vector<256xf32>
    %196 = vector.multi_reduction <maximumf>, %195, %cst_31 [0] : vector<8x256xf32> to vector<256xf32>
    %197 = vector.shape_cast %196 : vector<256xf32> to vector<1x256xf32>
    %198 = vector.broadcast %197 : vector<1x256xf32> to vector<8x256xf32>
    %199 = arith.subf %195, %198 : vector<8x256xf32>
    %200 = math.exp %199 : vector<8x256xf32>
    %cst_32 = arith.constant dense<0.000000e+00> : vector<256xf32>
    %201 = vector.multi_reduction <add>, %200, %cst_32 [0] : vector<8x256xf32> to vector<256xf32>
    %202 = vector.shape_cast %201 : vector<256xf32> to vector<1x256xf32>
    %203 = vector.broadcast %202 : vector<1x256xf32> to vector<8x256xf32>
    %204 = arith.divf %200, %203 : vector<8x256xf32>
    %205 = vector.extract_strided_slice %6 {offsets = [0, 0], sizes = [8, 1], strides = [1, 1]} : vector<8x8xf32> to vector<8x1xf32>
    %206 = vector.extract_strided_slice %204 {offsets = [0, 0], sizes = [1, 256], strides = [1, 1]} : vector<8x256xf32> to vector<1x256xf32>
    %207 = vector.broadcast %205 : vector<8x1xf32> to vector<8x256xf32>
    %208 = vector.broadcast %206 : vector<1x256xf32> to vector<8x256xf32>
    %209 = arith.mulf %207, %208 : vector<8x256xf32>
    %210 = vector.extract_strided_slice %6 {offsets = [0, 1], sizes = [8, 1], strides = [1, 1]} : vector<8x8xf32> to vector<8x1xf32>
    %211 = vector.extract_strided_slice %204 {offsets = [1, 0], sizes = [1, 256], strides = [1, 1]} : vector<8x256xf32> to vector<1x256xf32>
    %212 = vector.broadcast %210 : vector<8x1xf32> to vector<8x256xf32>
    %213 = vector.broadcast %211 : vector<1x256xf32> to vector<8x256xf32>
    %214 = arith.mulf %212, %213 : vector<8x256xf32>
    %215 = arith.addf %209, %214 : vector<8x256xf32>
    %216 = vector.extract_strided_slice %6 {offsets = [0, 2], sizes = [8, 1], strides = [1, 1]} : vector<8x8xf32> to vector<8x1xf32>
    %217 = vector.extract_strided_slice %204 {offsets = [2, 0], sizes = [1, 256], strides = [1, 1]} : vector<8x256xf32> to vector<1x256xf32>
    %218 = vector.broadcast %216 : vector<8x1xf32> to vector<8x256xf32>
    %219 = vector.broadcast %217 : vector<1x256xf32> to vector<8x256xf32>
    %220 = arith.mulf %218, %219 : vector<8x256xf32>
    %221 = arith.addf %215, %220 : vector<8x256xf32>
    %222 = vector.extract_strided_slice %6 {offsets = [0, 3], sizes = [8, 1], strides = [1, 1]} : vector<8x8xf32> to vector<8x1xf32>
    %223 = vector.extract_strided_slice %204 {offsets = [3, 0], sizes = [1, 256], strides = [1, 1]} : vector<8x256xf32> to vector<1x256xf32>
    %224 = vector.broadcast %222 : vector<8x1xf32> to vector<8x256xf32>
    %225 = vector.broadcast %223 : vector<1x256xf32> to vector<8x256xf32>
    %226 = arith.mulf %224, %225 : vector<8x256xf32>
    %227 = arith.addf %221, %226 : vector<8x256xf32>
    %228 = vector.extract_strided_slice %6 {offsets = [0, 4], sizes = [8, 1], strides = [1, 1]} : vector<8x8xf32> to vector<8x1xf32>
    %229 = vector.extract_strided_slice %204 {offsets = [4, 0], sizes = [1, 256], strides = [1, 1]} : vector<8x256xf32> to vector<1x256xf32>
    %230 = vector.broadcast %228 : vector<8x1xf32> to vector<8x256xf32>
    %231 = vector.broadcast %229 : vector<1x256xf32> to vector<8x256xf32>
    %232 = arith.mulf %230, %231 : vector<8x256xf32>
    %233 = arith.addf %227, %232 : vector<8x256xf32>
    %234 = vector.extract_strided_slice %6 {offsets = [0, 5], sizes = [8, 1], strides = [1, 1]} : vector<8x8xf32> to vector<8x1xf32>
    %235 = vector.extract_strided_slice %204 {offsets = [5, 0], sizes = [1, 256], strides = [1, 1]} : vector<8x256xf32> to vector<1x256xf32>
    %236 = vector.broadcast %234 : vector<8x1xf32> to vector<8x256xf32>
    %237 = vector.broadcast %235 : vector<1x256xf32> to vector<8x256xf32>
    %238 = arith.mulf %236, %237 : vector<8x256xf32>
    %239 = arith.addf %233, %238 : vector<8x256xf32>
    %240 = vector.extract_strided_slice %6 {offsets = [0, 6], sizes = [8, 1], strides = [1, 1]} : vector<8x8xf32> to vector<8x1xf32>
    %241 = vector.extract_strided_slice %204 {offsets = [6, 0], sizes = [1, 256], strides = [1, 1]} : vector<8x256xf32> to vector<1x256xf32>
    %242 = vector.broadcast %240 : vector<8x1xf32> to vector<8x256xf32>
    %243 = vector.broadcast %241 : vector<1x256xf32> to vector<8x256xf32>
    %244 = arith.mulf %242, %243 : vector<8x256xf32>
    %245 = arith.addf %239, %244 : vector<8x256xf32>
    %246 = vector.extract_strided_slice %6 {offsets = [0, 7], sizes = [8, 1], strides = [1, 1]} : vector<8x8xf32> to vector<8x1xf32>
    %247 = vector.extract_strided_slice %204 {offsets = [7, 0], sizes = [1, 256], strides = [1, 1]} : vector<8x256xf32> to vector<1x256xf32>
    %248 = vector.broadcast %246 : vector<8x1xf32> to vector<8x256xf32>
    %249 = vector.broadcast %247 : vector<1x256xf32> to vector<8x256xf32>
    %250 = arith.mulf %248, %249 : vector<8x256xf32>
    %251 = arith.addf %245, %250 : vector<8x256xf32>
    %252 = vector.extract_strided_slice %7 {offsets = [0, 0], sizes = [4, 1], strides = [1, 1]} : vector<4x8xf32> to vector<4x1xf32>
    %253 = vector.extract_strided_slice %251 {offsets = [0, 0], sizes = [1, 256], strides = [1, 1]} : vector<8x256xf32> to vector<1x256xf32>
    %254 = vector.broadcast %252 : vector<4x1xf32> to vector<4x256xf32>
    %255 = vector.broadcast %253 : vector<1x256xf32> to vector<4x256xf32>
    %256 = arith.mulf %254, %255 : vector<4x256xf32>
    %257 = vector.extract_strided_slice %7 {offsets = [0, 1], sizes = [4, 1], strides = [1, 1]} : vector<4x8xf32> to vector<4x1xf32>
    %258 = vector.extract_strided_slice %251 {offsets = [1, 0], sizes = [1, 256], strides = [1, 1]} : vector<8x256xf32> to vector<1x256xf32>
    %259 = vector.broadcast %257 : vector<4x1xf32> to vector<4x256xf32>
    %260 = vector.broadcast %258 : vector<1x256xf32> to vector<4x256xf32>
    %261 = arith.mulf %259, %260 : vector<4x256xf32>
    %262 = arith.addf %256, %261 : vector<4x256xf32>
    %263 = vector.extract_strided_slice %7 {offsets = [0, 2], sizes = [4, 1], strides = [1, 1]} : vector<4x8xf32> to vector<4x1xf32>
    %264 = vector.extract_strided_slice %251 {offsets = [2, 0], sizes = [1, 256], strides = [1, 1]} : vector<8x256xf32> to vector<1x256xf32>
    %265 = vector.broadcast %263 : vector<4x1xf32> to vector<4x256xf32>
    %266 = vector.broadcast %264 : vector<1x256xf32> to vector<4x256xf32>
    %267 = arith.mulf %265, %266 : vector<4x256xf32>
    %268 = arith.addf %262, %267 : vector<4x256xf32>
    %269 = vector.extract_strided_slice %7 {offsets = [0, 3], sizes = [4, 1], strides = [1, 1]} : vector<4x8xf32> to vector<4x1xf32>
    %270 = vector.extract_strided_slice %251 {offsets = [3, 0], sizes = [1, 256], strides = [1, 1]} : vector<8x256xf32> to vector<1x256xf32>
    %271 = vector.broadcast %269 : vector<4x1xf32> to vector<4x256xf32>
    %272 = vector.broadcast %270 : vector<1x256xf32> to vector<4x256xf32>
    %273 = arith.mulf %271, %272 : vector<4x256xf32>
    %274 = arith.addf %268, %273 : vector<4x256xf32>
    %275 = vector.extract_strided_slice %7 {offsets = [0, 4], sizes = [4, 1], strides = [1, 1]} : vector<4x8xf32> to vector<4x1xf32>
    %276 = vector.extract_strided_slice %251 {offsets = [4, 0], sizes = [1, 256], strides = [1, 1]} : vector<8x256xf32> to vector<1x256xf32>
    %277 = vector.broadcast %275 : vector<4x1xf32> to vector<4x256xf32>
    %278 = vector.broadcast %276 : vector<1x256xf32> to vector<4x256xf32>
    %279 = arith.mulf %277, %278 : vector<4x256xf32>
    %280 = arith.addf %274, %279 : vector<4x256xf32>
    %281 = vector.extract_strided_slice %7 {offsets = [0, 5], sizes = [4, 1], strides = [1, 1]} : vector<4x8xf32> to vector<4x1xf32>
    %282 = vector.extract_strided_slice %251 {offsets = [5, 0], sizes = [1, 256], strides = [1, 1]} : vector<8x256xf32> to vector<1x256xf32>
    %283 = vector.broadcast %281 : vector<4x1xf32> to vector<4x256xf32>
    %284 = vector.broadcast %282 : vector<1x256xf32> to vector<4x256xf32>
    %285 = arith.mulf %283, %284 : vector<4x256xf32>
    %286 = arith.addf %280, %285 : vector<4x256xf32>
    %287 = vector.extract_strided_slice %7 {offsets = [0, 6], sizes = [4, 1], strides = [1, 1]} : vector<4x8xf32> to vector<4x1xf32>
    %288 = vector.extract_strided_slice %251 {offsets = [6, 0], sizes = [1, 256], strides = [1, 1]} : vector<8x256xf32> to vector<1x256xf32>
    %289 = vector.broadcast %287 : vector<4x1xf32> to vector<4x256xf32>
    %290 = vector.broadcast %288 : vector<1x256xf32> to vector<4x256xf32>
    %291 = arith.mulf %289, %290 : vector<4x256xf32>
    %292 = arith.addf %286, %291 : vector<4x256xf32>
    %293 = vector.extract_strided_slice %7 {offsets = [0, 7], sizes = [4, 1], strides = [1, 1]} : vector<4x8xf32> to vector<4x1xf32>
    %294 = vector.extract_strided_slice %251 {offsets = [7, 0], sizes = [1, 256], strides = [1, 1]} : vector<8x256xf32> to vector<1x256xf32>
    %295 = vector.broadcast %293 : vector<4x1xf32> to vector<4x256xf32>
    %296 = vector.broadcast %294 : vector<1x256xf32> to vector<4x256xf32>
    %297 = arith.mulf %295, %296 : vector<4x256xf32>
    %298 = arith.addf %292, %297 : vector<4x256xf32>
    %299 = vector.extract_strided_slice %8 {offsets = [0, 0], sizes = [8, 1], strides = [1, 1]} : vector<8x4xf32> to vector<8x1xf32>
    %300 = vector.extract_strided_slice %1 {offsets = [0, 0], sizes = [1, 256], strides = [1, 1]} : vector<4x256xf32> to vector<1x256xf32>
    %301 = vector.broadcast %299 : vector<8x1xf32> to vector<8x256xf32>
    %302 = vector.broadcast %300 : vector<1x256xf32> to vector<8x256xf32>
    %303 = arith.mulf %301, %302 : vector<8x256xf32>
    %304 = vector.extract_strided_slice %8 {offsets = [0, 1], sizes = [8, 1], strides = [1, 1]} : vector<8x4xf32> to vector<8x1xf32>
    %305 = vector.extract_strided_slice %1 {offsets = [1, 0], sizes = [1, 256], strides = [1, 1]} : vector<4x256xf32> to vector<1x256xf32>
    %306 = vector.broadcast %304 : vector<8x1xf32> to vector<8x256xf32>
    %307 = vector.broadcast %305 : vector<1x256xf32> to vector<8x256xf32>
    %308 = arith.mulf %306, %307 : vector<8x256xf32>
    %309 = arith.addf %303, %308 : vector<8x256xf32>
    %310 = vector.extract_strided_slice %8 {offsets = [0, 2], sizes = [8, 1], strides = [1, 1]} : vector<8x4xf32> to vector<8x1xf32>
    %311 = vector.extract_strided_slice %1 {offsets = [2, 0], sizes = [1, 256], strides = [1, 1]} : vector<4x256xf32> to vector<1x256xf32>
    %312 = vector.broadcast %310 : vector<8x1xf32> to vector<8x256xf32>
    %313 = vector.broadcast %311 : vector<1x256xf32> to vector<8x256xf32>
    %314 = arith.mulf %312, %313 : vector<8x256xf32>
    %315 = arith.addf %309, %314 : vector<8x256xf32>
    %316 = vector.extract_strided_slice %8 {offsets = [0, 3], sizes = [8, 1], strides = [1, 1]} : vector<8x4xf32> to vector<8x1xf32>
    %317 = vector.extract_strided_slice %1 {offsets = [3, 0], sizes = [1, 256], strides = [1, 1]} : vector<4x256xf32> to vector<1x256xf32>
    %318 = vector.broadcast %316 : vector<8x1xf32> to vector<8x256xf32>
    %319 = vector.broadcast %317 : vector<1x256xf32> to vector<8x256xf32>
    %320 = arith.mulf %318, %319 : vector<8x256xf32>
    %321 = arith.addf %315, %320 : vector<8x256xf32>
    %322 = vector.extract_strided_slice %9 {offsets = [0, 0], sizes = [8, 1], strides = [1, 1]} : vector<8x8xf32> to vector<8x1xf32>
    %323 = vector.extract_strided_slice %321 {offsets = [0, 0], sizes = [1, 256], strides = [1, 1]} : vector<8x256xf32> to vector<1x256xf32>
    %324 = vector.broadcast %322 : vector<8x1xf32> to vector<8x256xf32>
    %325 = vector.broadcast %323 : vector<1x256xf32> to vector<8x256xf32>
    %326 = arith.mulf %324, %325 : vector<8x256xf32>
    %327 = vector.extract_strided_slice %9 {offsets = [0, 1], sizes = [8, 1], strides = [1, 1]} : vector<8x8xf32> to vector<8x1xf32>
    %328 = vector.extract_strided_slice %321 {offsets = [1, 0], sizes = [1, 256], strides = [1, 1]} : vector<8x256xf32> to vector<1x256xf32>
    %329 = vector.broadcast %327 : vector<8x1xf32> to vector<8x256xf32>
    %330 = vector.broadcast %328 : vector<1x256xf32> to vector<8x256xf32>
    %331 = arith.mulf %329, %330 : vector<8x256xf32>
    %332 = arith.addf %326, %331 : vector<8x256xf32>
    %333 = vector.extract_strided_slice %9 {offsets = [0, 2], sizes = [8, 1], strides = [1, 1]} : vector<8x8xf32> to vector<8x1xf32>
    %334 = vector.extract_strided_slice %321 {offsets = [2, 0], sizes = [1, 256], strides = [1, 1]} : vector<8x256xf32> to vector<1x256xf32>
    %335 = vector.broadcast %333 : vector<8x1xf32> to vector<8x256xf32>
    %336 = vector.broadcast %334 : vector<1x256xf32> to vector<8x256xf32>
    %337 = arith.mulf %335, %336 : vector<8x256xf32>
    %338 = arith.addf %332, %337 : vector<8x256xf32>
    %339 = vector.extract_strided_slice %9 {offsets = [0, 3], sizes = [8, 1], strides = [1, 1]} : vector<8x8xf32> to vector<8x1xf32>
    %340 = vector.extract_strided_slice %321 {offsets = [3, 0], sizes = [1, 256], strides = [1, 1]} : vector<8x256xf32> to vector<1x256xf32>
    %341 = vector.broadcast %339 : vector<8x1xf32> to vector<8x256xf32>
    %342 = vector.broadcast %340 : vector<1x256xf32> to vector<8x256xf32>
    %343 = arith.mulf %341, %342 : vector<8x256xf32>
    %344 = arith.addf %338, %343 : vector<8x256xf32>
    %345 = vector.extract_strided_slice %9 {offsets = [0, 4], sizes = [8, 1], strides = [1, 1]} : vector<8x8xf32> to vector<8x1xf32>
    %346 = vector.extract_strided_slice %321 {offsets = [4, 0], sizes = [1, 256], strides = [1, 1]} : vector<8x256xf32> to vector<1x256xf32>
    %347 = vector.broadcast %345 : vector<8x1xf32> to vector<8x256xf32>
    %348 = vector.broadcast %346 : vector<1x256xf32> to vector<8x256xf32>
    %349 = arith.mulf %347, %348 : vector<8x256xf32>
    %350 = arith.addf %344, %349 : vector<8x256xf32>
    %351 = vector.extract_strided_slice %9 {offsets = [0, 5], sizes = [8, 1], strides = [1, 1]} : vector<8x8xf32> to vector<8x1xf32>
    %352 = vector.extract_strided_slice %321 {offsets = [5, 0], sizes = [1, 256], strides = [1, 1]} : vector<8x256xf32> to vector<1x256xf32>
    %353 = vector.broadcast %351 : vector<8x1xf32> to vector<8x256xf32>
    %354 = vector.broadcast %352 : vector<1x256xf32> to vector<8x256xf32>
    %355 = arith.mulf %353, %354 : vector<8x256xf32>
    %356 = arith.addf %350, %355 : vector<8x256xf32>
    %357 = vector.extract_strided_slice %9 {offsets = [0, 6], sizes = [8, 1], strides = [1, 1]} : vector<8x8xf32> to vector<8x1xf32>
    %358 = vector.extract_strided_slice %321 {offsets = [6, 0], sizes = [1, 256], strides = [1, 1]} : vector<8x256xf32> to vector<1x256xf32>
    %359 = vector.broadcast %357 : vector<8x1xf32> to vector<8x256xf32>
    %360 = vector.broadcast %358 : vector<1x256xf32> to vector<8x256xf32>
    %361 = arith.mulf %359, %360 : vector<8x256xf32>
    %362 = arith.addf %356, %361 : vector<8x256xf32>
    %363 = vector.extract_strided_slice %9 {offsets = [0, 7], sizes = [8, 1], strides = [1, 1]} : vector<8x8xf32> to vector<8x1xf32>
    %364 = vector.extract_strided_slice %321 {offsets = [7, 0], sizes = [1, 256], strides = [1, 1]} : vector<8x256xf32> to vector<1x256xf32>
    %365 = vector.broadcast %363 : vector<8x1xf32> to vector<8x256xf32>
    %366 = vector.broadcast %364 : vector<1x256xf32> to vector<8x256xf32>
    %367 = arith.mulf %365, %366 : vector<8x256xf32>
    %368 = arith.addf %362, %367 : vector<8x256xf32>
    %cst_33 = arith.constant 0.000000e+00 : f32
    %369 = vector.broadcast %cst_33 : f32 to vector<8x256xf32>
    %370 = arith.cmpf ogt, %368, %369 : vector<8x256xf32>
    %cst_34 = arith.constant 0.00999999977 : f32
    %371 = vector.broadcast %cst_34 : f32 to vector<8x256xf32>
    %372 = arith.mulf %371, %368 : vector<8x256xf32>
    %373 = arith.select %370, %368, %372 : vector<8x256xi1>, vector<8x256xf32>
    %374 = vector.extract_strided_slice %10 {offsets = [0, 0], sizes = [4, 1], strides = [1, 1]} : vector<4x8xf32> to vector<4x1xf32>
    %375 = vector.extract_strided_slice %373 {offsets = [0, 0], sizes = [1, 256], strides = [1, 1]} : vector<8x256xf32> to vector<1x256xf32>
    %376 = vector.broadcast %374 : vector<4x1xf32> to vector<4x256xf32>
    %377 = vector.broadcast %375 : vector<1x256xf32> to vector<4x256xf32>
    %378 = arith.mulf %376, %377 : vector<4x256xf32>
    %379 = vector.extract_strided_slice %10 {offsets = [0, 1], sizes = [4, 1], strides = [1, 1]} : vector<4x8xf32> to vector<4x1xf32>
    %380 = vector.extract_strided_slice %373 {offsets = [1, 0], sizes = [1, 256], strides = [1, 1]} : vector<8x256xf32> to vector<1x256xf32>
    %381 = vector.broadcast %379 : vector<4x1xf32> to vector<4x256xf32>
    %382 = vector.broadcast %380 : vector<1x256xf32> to vector<4x256xf32>
    %383 = arith.mulf %381, %382 : vector<4x256xf32>
    %384 = arith.addf %378, %383 : vector<4x256xf32>
    %385 = vector.extract_strided_slice %10 {offsets = [0, 2], sizes = [4, 1], strides = [1, 1]} : vector<4x8xf32> to vector<4x1xf32>
    %386 = vector.extract_strided_slice %373 {offsets = [2, 0], sizes = [1, 256], strides = [1, 1]} : vector<8x256xf32> to vector<1x256xf32>
    %387 = vector.broadcast %385 : vector<4x1xf32> to vector<4x256xf32>
    %388 = vector.broadcast %386 : vector<1x256xf32> to vector<4x256xf32>
    %389 = arith.mulf %387, %388 : vector<4x256xf32>
    %390 = arith.addf %384, %389 : vector<4x256xf32>
    %391 = vector.extract_strided_slice %10 {offsets = [0, 3], sizes = [4, 1], strides = [1, 1]} : vector<4x8xf32> to vector<4x1xf32>
    %392 = vector.extract_strided_slice %373 {offsets = [3, 0], sizes = [1, 256], strides = [1, 1]} : vector<8x256xf32> to vector<1x256xf32>
    %393 = vector.broadcast %391 : vector<4x1xf32> to vector<4x256xf32>
    %394 = vector.broadcast %392 : vector<1x256xf32> to vector<4x256xf32>
    %395 = arith.mulf %393, %394 : vector<4x256xf32>
    %396 = arith.addf %390, %395 : vector<4x256xf32>
    %397 = vector.extract_strided_slice %10 {offsets = [0, 4], sizes = [4, 1], strides = [1, 1]} : vector<4x8xf32> to vector<4x1xf32>
    %398 = vector.extract_strided_slice %373 {offsets = [4, 0], sizes = [1, 256], strides = [1, 1]} : vector<8x256xf32> to vector<1x256xf32>
    %399 = vector.broadcast %397 : vector<4x1xf32> to vector<4x256xf32>
    %400 = vector.broadcast %398 : vector<1x256xf32> to vector<4x256xf32>
    %401 = arith.mulf %399, %400 : vector<4x256xf32>
    %402 = arith.addf %396, %401 : vector<4x256xf32>
    %403 = vector.extract_strided_slice %10 {offsets = [0, 5], sizes = [4, 1], strides = [1, 1]} : vector<4x8xf32> to vector<4x1xf32>
    %404 = vector.extract_strided_slice %373 {offsets = [5, 0], sizes = [1, 256], strides = [1, 1]} : vector<8x256xf32> to vector<1x256xf32>
    %405 = vector.broadcast %403 : vector<4x1xf32> to vector<4x256xf32>
    %406 = vector.broadcast %404 : vector<1x256xf32> to vector<4x256xf32>
    %407 = arith.mulf %405, %406 : vector<4x256xf32>
    %408 = arith.addf %402, %407 : vector<4x256xf32>
    %409 = vector.extract_strided_slice %10 {offsets = [0, 6], sizes = [4, 1], strides = [1, 1]} : vector<4x8xf32> to vector<4x1xf32>
    %410 = vector.extract_strided_slice %373 {offsets = [6, 0], sizes = [1, 256], strides = [1, 1]} : vector<8x256xf32> to vector<1x256xf32>
    %411 = vector.broadcast %409 : vector<4x1xf32> to vector<4x256xf32>
    %412 = vector.broadcast %410 : vector<1x256xf32> to vector<4x256xf32>
    %413 = arith.mulf %411, %412 : vector<4x256xf32>
    %414 = arith.addf %408, %413 : vector<4x256xf32>
    %415 = vector.extract_strided_slice %10 {offsets = [0, 7], sizes = [4, 1], strides = [1, 1]} : vector<4x8xf32> to vector<4x1xf32>
    %416 = vector.extract_strided_slice %373 {offsets = [7, 0], sizes = [1, 256], strides = [1, 1]} : vector<8x256xf32> to vector<1x256xf32>
    %417 = vector.broadcast %415 : vector<4x1xf32> to vector<4x256xf32>
    %418 = vector.broadcast %416 : vector<1x256xf32> to vector<4x256xf32>
    %419 = arith.mulf %417, %418 : vector<4x256xf32>
    %420 = arith.addf %414, %419 : vector<4x256xf32>
    %c0_35 = arith.constant 0 : index
    %c0_36 = arith.constant 0 : index
    %c0_37 = arith.constant 0 : index
    %421 = vector.load %arg11[%c0_35, %c0_36, %c0_37] : memref<1x4x256xf32, #tpu.memory_space<vmem>>, vector<1x4x256xf32>
    %422 = vector.shape_cast %421 : vector<1x4x256xf32> to vector<4x256xf32>
    %423 = vector.shape_cast %154 : vector<4x256xf32> to vector<1x4x256xf32>
    tpu.vector_store %arg11[%c0_35, %c0_36, %c0_37], %423 {strides = array<i32>} : memref<1x4x256xf32, #tpu.memory_space<vmem>>, vector<1x4x256xf32>,
    %c0_38 = arith.constant 0 : index
    %c0_39 = arith.constant 0 : index
    %c0_40 = arith.constant 0 : index
    %424 = vector.load %arg12[%c0_38, %c0_39, %c0_40] : memref<1x4x256xf32, #tpu.memory_space<vmem>>, vector<1x4x256xf32>
    %425 = vector.shape_cast %424 : vector<1x4x256xf32> to vector<4x256xf32>
    %426 = vector.shape_cast %298 : vector<4x256xf32> to vector<1x4x256xf32>
    tpu.vector_store %arg12[%c0_38, %c0_39, %c0_40], %426 {strides = array<i32>} : memref<1x4x256xf32, #tpu.memory_space<vmem>>, vector<1x4x256xf32>,
    %c0_41 = arith.constant 0 : index
    %c0_42 = arith.constant 0 : index
    %c0_43 = arith.constant 0 : index
    %427 = vector.load %arg13[%c0_41, %c0_42, %c0_43] : memref<1x4x256xf32, #tpu.memory_space<vmem>>, vector<1x4x256xf32>
    %428 = vector.shape_cast %427 : vector<1x4x256xf32> to vector<4x256xf32>
    %429 = vector.shape_cast %420 : vector<4x256xf32> to vector<1x4x256xf32>
    tpu.vector_store %arg13[%c0_41, %c0_42, %c0_43], %429 {strides = array<i32>} : memref<1x4x256xf32, #tpu.memory_space<vmem>>, vector<1x4x256xf32>,
    return
  }
  func.func @transform_0(%arg0: i32) -> (i32, i32, i32) {
    %c0_i32 = arith.constant 0 : i32
    %c0_i32_0 = arith.constant 0 : i32
    %c0_i32_1 = arith.constant 0 : i32
    return %arg0, %c0_i32, %c0_i32_0 : i32, i32, i32
  }
  func.func @transform_1(%arg0: i32) -> (i32, i32) {
    %c0_i32 = arith.constant 0 : i32
    %c0_i32_0 = arith.constant 0 : i32
    %c0_i32_1 = arith.constant 0 : i32
    return %c0_i32, %c0_i32_0 : i32, i32
  }
  func.func @transform_2(%arg0: i32) -> (i32, i32) {
    %c0_i32 = arith.constant 0 : i32
    %c0_i32_0 = arith.constant 0 : i32
    %c0_i32_1 = arith.constant 0 : i32
    return %c0_i32, %c0_i32_0 : i32, i32
  }
  func.func @transform_3(%arg0: i32) -> (i32, i32) {
    %c0_i32 = arith.constant 0 : i32
    %c0_i32_0 = arith.constant 0 : i32
    %c0_i32_1 = arith.constant 0 : i32
    return %c0_i32, %c0_i32_0 : i32, i32
  }
  func.func @transform_4(%arg0: i32) -> (i32, i32) {
    %c0_i32 = arith.constant 0 : i32
    %c0_i32_0 = arith.constant 0 : i32
    %c0_i32_1 = arith.constant 0 : i32
    return %c0_i32, %c0_i32_0 : i32, i32
  }
  func.func @transform_5(%arg0: i32) -> (i32, i32) {
    %c0_i32 = arith.constant 0 : i32
    %c0_i32_0 = arith.constant 0 : i32
    %c0_i32_1 = arith.constant 0 : i32
    return %c0_i32, %c0_i32_0 : i32, i32
  }
  func.func @transform_6(%arg0: i32) -> (i32, i32) {
    %c0_i32 = arith.constant 0 : i32
    %c0_i32_0 = arith.constant 0 : i32
    %c0_i32_1 = arith.constant 0 : i32
    return %c0_i32, %c0_i32_0 : i32, i32
  }
  func.func @transform_7(%arg0: i32) -> (i32, i32) {
    %c0_i32 = arith.constant 0 : i32
    %c0_i32_0 = arith.constant 0 : i32
    %c0_i32_1 = arith.constant 0 : i32
    return %c0_i32, %c0_i32_0 : i32, i32
  }
  func.func @transform_8(%arg0: i32) -> (i32, i32) {
    %c0_i32 = arith.constant 0 : i32
    %c0_i32_0 = arith.constant 0 : i32
    %c0_i32_1 = arith.constant 0 : i32
    return %c0_i32, %c0_i32_0 : i32, i32
  }
  func.func @transform_9(%arg0: i32) -> (i32, i32) {
    %c0_i32 = arith.constant 0 : i32
    %c0_i32_0 = arith.constant 0 : i32
    %c0_i32_1 = arith.constant 0 : i32
    return %c0_i32, %c0_i32_0 : i32, i32
  }
  func.func @transform_10(%arg0: i32) -> (i32, i32, i32) {
    %c0_i32 = arith.constant 0 : i32
    %c0_i32_0 = arith.constant 0 : i32
    %c0_i32_1 = arith.constant 0 : i32
    return %arg0, %c0_i32, %c0_i32_0 : i32, i32, i32
  }
  func.func @transform_11(%arg0: i32) -> (i32, i32, i32) {
    %c0_i32 = arith.constant 0 : i32
    %c0_i32_0 = arith.constant 0 : i32
    %c0_i32_1 = arith.constant 0 : i32
    return %arg0, %c0_i32, %c0_i32_0 : i32, i32, i32
  }
  func.func @transform_12(%arg0: i32) -> (i32, i32, i32) {
    %c0_i32 = arith.constant 0 : i32
    %c0_i32_0 = arith.constant 0 : i32
    %c0_i32_1 = arith.constant 0 : i32
    return %arg0, %c0_i32, %c0_i32_0 : i32, i32, i32
  }
}

module attributes {stable_mosaic.version = 11 : i64} {
  func.func @kernel(%arg0: i32, %arg1: memref<1x4x16x16xf32, #tpu.memory_space<vmem>>, %arg2: memref<1x4x16x16xf32, #tpu.memory_space<vmem>>, %arg3: memref<1x4x16x16xf32, #tpu.memory_space<vmem>>, %arg4: memref<4x16x16xf32, #tpu.memory_space<vmem>>, %arg5: memref<4x16x16xf32, #tpu.memory_space<vmem>>, %arg6: memref<1x4x16x16xf32, #tpu.memory_space<vmem>>) attributes {dimension_semantics = [#tpu.dimension_semantics<parallel>], iteration_bounds = array<i64: 2>, scalar_prefetch = 0 : i64, scratch_operands = 0 : i64, tpu.core_type = #tpu.core_type<tc>, window_params = [{transform_indices = @transform_0, window_bounds = array<i64: 1, 4, 16, 16>}, {transform_indices = @transform_1, window_bounds = array<i64: 1, 4, 16, 16>}, {transform_indices = @transform_2, window_bounds = array<i64: 1, 4, 16, 16>}, {pipeline_mode = #tpu.pipeline_mode<synchronous>, transform_indices = @transform_3, window_bounds = array<i64: 4, 16, 16>}, {pipeline_mode = #tpu.pipeline_mode<synchronous>, transform_indices = @transform_4, window_bounds = array<i64: 4, 16, 16>}, {transform_indices = @transform_5, window_bounds = array<i64: 1, 4, 16, 16>}]} {
    %c0 = arith.constant 0 : index
    %c0_0 = arith.constant 0 : index
    %c0_1 = arith.constant 0 : index
    %0 = vector.load %arg4[%c0, %c0_0, %c0_1] : memref<4x16x16xf32, #tpu.memory_space<vmem>>, vector<4x16x16xf32>
    %c0_2 = arith.constant 0 : index
    %c0_3 = arith.constant 0 : index
    %c0_4 = arith.constant 0 : index
    %1 = vector.load %arg5[%c0_2, %c0_3, %c0_4] : memref<4x16x16xf32, #tpu.memory_space<vmem>>, vector<4x16x16xf32>
    %c0_5 = arith.constant 0 : index
    %c0_6 = arith.constant 0 : index
    %c0_7 = arith.constant 0 : index
    %c0_8 = arith.constant 0 : index
    %2 = vector.load %arg1[%c0_5, %c0_6, %c0_7, %c0_8] : memref<1x4x16x16xf32, #tpu.memory_space<vmem>>, vector<1x4x16x16xf32>
    %3 = vector.shape_cast %2 : vector<1x4x16x16xf32> to vector<4x16x16xf32>
    %c0_9 = arith.constant 0 : index
    %c0_10 = arith.constant 0 : index
    %c0_11 = arith.constant 0 : index
    %c0_12 = arith.constant 0 : index
    %4 = vector.load %arg2[%c0_9, %c0_10, %c0_11, %c0_12] : memref<1x4x16x16xf32, #tpu.memory_space<vmem>>, vector<1x4x16x16xf32>
    %5 = vector.shape_cast %4 : vector<1x4x16x16xf32> to vector<4x16x16xf32>
    %c0_13 = arith.constant 0 : index
    %c0_14 = arith.constant 0 : index
    %c0_15 = arith.constant 0 : index
    %c0_16 = arith.constant 0 : index
    %6 = vector.load %arg3[%c0_13, %c0_14, %c0_15, %c0_16] : memref<1x4x16x16xf32, #tpu.memory_space<vmem>>, vector<1x4x16x16xf32>
    %7 = vector.shape_cast %6 : vector<1x4x16x16xf32> to vector<4x16x16xf32>
    "tpu.trace_start"() <{level = 10 : i32, message = "chw,cvw->chv"}> : () -> ()
    %cst = arith.constant dense<0.000000e+00> : vector<4x16x16xf32>
    %8 = tpu.matmul %3, %5, %cst {dimension_numbers = #tpu.dot_dimension_numbers<[2], [2], [1], [1], [0, 0, 0, 1, 1, 1], [0], [0]>} : vector<4x16x16xf32>, vector<4x16x16xf32>, vector<4x16x16xf32> -> vector<4x16x16xf32>
    "tpu.trace_stop"() : () -> ()
    %cst_17 = arith.constant 6.250000e-02 : f32
    %9 = vector.broadcast %cst_17 : f32 to vector<4x16x16xf32>
    %10 = arith.mulf %8, %9 : vector<4x16x16xf32>
    %11 = vector.shape_cast %10 : vector<4x16x16xf32> to vector<1x4x16x16xf32>
    %cst_18 = arith.constant dense<0.000000e+00> : vector<1xf32>
    %12 = vector.multi_reduction <add>, %11, %cst_18 [1, 2, 3] : vector<1x4x16x16xf32> to vector<1xf32>
    %13 = vector.shape_cast %12 : vector<1xf32> to vector<1x1x1x1xf32>
    %14 = vector.extract %13[0, 0, 0, 0] : f32 from vector<1x1x1x1xf32>
    %15 = vector.broadcast %14 : f32 to vector<1x1x1xf32>
    %cst_19 = arith.constant 1.024000e+03 : f32
    %16 = vector.broadcast %cst_19 : f32 to vector<1x1x1xf32>
    %17 = arith.divf %15, %16 : vector<1x1x1xf32>
    %18 = vector.broadcast %17 : vector<1x1x1xf32> to vector<4x16x16xf32>
    %19 = arith.subf %10, %18 : vector<4x16x16xf32>
    %20 = arith.mulf %19, %19 : vector<4x16x16xf32>
    %21 = vector.shape_cast %20 : vector<4x16x16xf32> to vector<1x4x16x16xf32>
    %cst_20 = arith.constant dense<0.000000e+00> : vector<1xf32>
    %22 = vector.multi_reduction <add>, %21, %cst_20 [1, 2, 3] : vector<1x4x16x16xf32> to vector<1xf32>
    %23 = vector.shape_cast %22 : vector<1xf32> to vector<1x1x1x1xf32>
    %24 = vector.extract %23[0, 0, 0, 0] : f32 from vector<1x1x1x1xf32>
    %25 = vector.broadcast %24 : f32 to vector<1x1x1xf32>
    %cst_21 = arith.constant 1.024000e+03 : f32
    %26 = vector.broadcast %cst_21 : f32 to vector<1x1x1xf32>
    %27 = arith.divf %25, %26 : vector<1x1x1xf32>
    %28 = vector.broadcast %17 : vector<1x1x1xf32> to vector<4x16x16xf32>
    %29 = arith.subf %10, %28 : vector<4x16x16xf32>
    %cst_22 = arith.constant 9.99999974E-6 : f32
    %30 = vector.broadcast %cst_22 : f32 to vector<1x1x1xf32>
    %31 = arith.addf %27, %30 : vector<1x1x1xf32>
    %32 = math.rsqrt %31 : vector<1x1x1xf32>
    %33 = vector.broadcast %32 : vector<1x1x1xf32> to vector<4x16x16xf32>
    %34 = arith.mulf %29, %33 : vector<4x16x16xf32>
    %35 = arith.mulf %34, %0 : vector<4x16x16xf32>
    %36 = arith.addf %35, %1 : vector<4x16x16xf32>
    %cst_23 = arith.constant dense<0xFF800000> : vector<4x16xf32>
    %37 = vector.multi_reduction <maximumf>, %36, %cst_23 [2] : vector<4x16x16xf32> to vector<4x16xf32>
    %38 = vector.shape_cast %37 : vector<4x16xf32> to vector<4x16x1xf32>
    %39 = vector.broadcast %38 : vector<4x16x1xf32> to vector<4x16x16xf32>
    %40 = arith.subf %36, %39 : vector<4x16x16xf32>
    %41 = math.exp %40 : vector<4x16x16xf32>
    %cst_24 = arith.constant dense<0.000000e+00> : vector<4x16xf32>
    %42 = vector.multi_reduction <add>, %41, %cst_24 [2] : vector<4x16x16xf32> to vector<4x16xf32>
    %43 = vector.shape_cast %42 : vector<4x16xf32> to vector<4x16x1xf32>
    %44 = vector.broadcast %43 : vector<4x16x1xf32> to vector<4x16x16xf32>
    %45 = arith.divf %41, %44 : vector<4x16x16xf32>
    "tpu.trace_start"() <{level = 10 : i32, message = "chv,cvw->chw"}> : () -> ()
    %cst_25 = arith.constant dense<0.000000e+00> : vector<4x16x16xf32>
    %46 = tpu.matmul %45, %7, %cst_25 {dimension_numbers = #tpu.dot_dimension_numbers<[2], [1], [1], [2], [0, 0, 0, 1, 1, 2], [0], [0]>} : vector<4x16x16xf32>, vector<4x16x16xf32>, vector<4x16x16xf32> -> vector<4x16x16xf32>
    "tpu.trace_stop"() : () -> ()
    %c0_26 = arith.constant 0 : index
    %c0_27 = arith.constant 0 : index
    %c0_28 = arith.constant 0 : index
    %c0_29 = arith.constant 0 : index
    %47 = vector.load %arg6[%c0_26, %c0_27, %c0_28, %c0_29] : memref<1x4x16x16xf32, #tpu.memory_space<vmem>>, vector<1x4x16x16xf32>
    %48 = vector.shape_cast %47 : vector<1x4x16x16xf32> to vector<4x16x16xf32>
    %49 = vector.shape_cast %46 : vector<4x16x16xf32> to vector<1x4x16x16xf32>
    tpu.vector_store %arg6[%c0_26, %c0_27, %c0_28, %c0_29], %49 {strides = array<i32>} : memref<1x4x16x16xf32, #tpu.memory_space<vmem>>, vector<1x4x16x16xf32>,
    return
  }
  func.func @transform_0(%arg0: i32) -> (i32, i32, i32, i32) {
    %c0_i32 = arith.constant 0 : i32
    %c0_i32_0 = arith.constant 0 : i32
    %c0_i32_1 = arith.constant 0 : i32
    %c0_i32_2 = arith.constant 0 : i32
    return %arg0, %c0_i32, %c0_i32_0, %c0_i32_1 : i32, i32, i32, i32
  }
  func.func @transform_1(%arg0: i32) -> (i32, i32, i32, i32) {
    %c0_i32 = arith.constant 0 : i32
    %c0_i32_0 = arith.constant 0 : i32
    %c0_i32_1 = arith.constant 0 : i32
    %c0_i32_2 = arith.constant 0 : i32
    return %arg0, %c0_i32, %c0_i32_0, %c0_i32_1 : i32, i32, i32, i32
  }
  func.func @transform_2(%arg0: i32) -> (i32, i32, i32, i32) {
    %c0_i32 = arith.constant 0 : i32
    %c0_i32_0 = arith.constant 0 : i32
    %c0_i32_1 = arith.constant 0 : i32
    %c0_i32_2 = arith.constant 0 : i32
    return %arg0, %c0_i32, %c0_i32_0, %c0_i32_1 : i32, i32, i32, i32
  }
  func.func @transform_3(%arg0: i32) -> (i32, i32, i32) {
    %c0_i32 = arith.constant 0 : i32
    %c0_i32_0 = arith.constant 0 : i32
    %c0_i32_1 = arith.constant 0 : i32
    %c0_i32_2 = arith.constant 0 : i32
    return %c0_i32, %c0_i32_0, %c0_i32_1 : i32, i32, i32
  }
  func.func @transform_4(%arg0: i32) -> (i32, i32, i32) {
    %c0_i32 = arith.constant 0 : i32
    %c0_i32_0 = arith.constant 0 : i32
    %c0_i32_1 = arith.constant 0 : i32
    %c0_i32_2 = arith.constant 0 : i32
    return %c0_i32, %c0_i32_0, %c0_i32_1 : i32, i32, i32
  }
  func.func @transform_5(%arg0: i32) -> (i32, i32, i32, i32) {
    %c0_i32 = arith.constant 0 : i32
    %c0_i32_0 = arith.constant 0 : i32
    %c0_i32_1 = arith.constant 0 : i32
    %c0_i32_2 = arith.constant 0 : i32
    return %arg0, %c0_i32, %c0_i32_0, %c0_i32_1 : i32, i32, i32, i32
  }
}

module attributes {stable_mosaic.version = 11 : i64} {
  func.func @_fusion_kernel(%arg0: i32, %arg1: memref<1x8x256xf32, #tpu.memory_space<vmem>>, %arg2: memref<8x8xf32, #tpu.memory_space<vmem>>, %arg3: memref<8x1xf32, #tpu.memory_space<vmem>>, %arg4: memref<8x256xf32, #tpu.memory_space<vmem>>, %arg5: memref<8x256xf32, #tpu.memory_space<vmem>>, %arg6: memref<8x8xf32, #tpu.memory_space<vmem>>, %arg7: memref<8x1xf32, #tpu.memory_space<vmem>>, %arg8: memref<4x8xf32, #tpu.memory_space<vmem>>, %arg9: memref<4x1xf32, #tpu.memory_space<vmem>>, %arg10: memref<1x4x256xf32, #tpu.memory_space<vmem>>) attributes {dimension_semantics = [#tpu.dimension_semantics<parallel>], iteration_bounds = array<i64: 2>, scalar_prefetch = 0 : i64, scratch_operands = 0 : i64, tpu.core_type = #tpu.core_type<tc>, window_params = [{transform_indices = @transform_0, window_bounds = array<i64: 1, 8, 256>}, {pipeline_mode = #tpu.pipeline_mode<synchronous>, transform_indices = @transform_1, window_bounds = array<i64: 8, 8>}, {pipeline_mode = #tpu.pipeline_mode<synchronous>, transform_indices = @transform_2, window_bounds = array<i64: 8, 1>}, {pipeline_mode = #tpu.pipeline_mode<synchronous>, transform_indices = @transform_3, window_bounds = array<i64: 8, 256>}, {pipeline_mode = #tpu.pipeline_mode<synchronous>, transform_indices = @transform_4, window_bounds = array<i64: 8, 256>}, {pipeline_mode = #tpu.pipeline_mode<synchronous>, transform_indices = @transform_5, window_bounds = array<i64: 8, 8>}, {pipeline_mode = #tpu.pipeline_mode<synchronous>, transform_indices = @transform_6, window_bounds = array<i64: 8, 1>}, {pipeline_mode = #tpu.pipeline_mode<synchronous>, transform_indices = @transform_7, window_bounds = array<i64: 4, 8>}, {pipeline_mode = #tpu.pipeline_mode<synchronous>, transform_indices = @transform_8, window_bounds = array<i64: 4, 1>}, {transform_indices = @transform_9, window_bounds = array<i64: 1, 4, 256>}]} {
    %c0 = arith.constant 0 : index
    %c0_0 = arith.constant 0 : index
    %c0_1 = arith.constant 0 : index
    %0 = vector.load %arg1[%c0, %c0_0, %c0_1] : memref<1x8x256xf32, #tpu.memory_space<vmem>>, vector<1x8x256xf32>
    %1 = vector.shape_cast %0 : vector<1x8x256xf32> to vector<8x256xf32>
    %c0_2 = arith.constant 0 : index
    %c0_3 = arith.constant 0 : index
    %2 = vector.load %arg2[%c0_2, %c0_3] : memref<8x8xf32, #tpu.memory_space<vmem>>, vector<8x8xf32>
    %3 = vector.extract_strided_slice %2 {offsets = [0, 0], sizes = [8, 1], strides = [1, 1]} : vector<8x8xf32> to vector<8x1xf32>
    %4 = vector.extract_strided_slice %1 {offsets = [0, 0], sizes = [1, 256], strides = [1, 1]} : vector<8x256xf32> to vector<1x256xf32>
    %5 = vector.broadcast %3 : vector<8x1xf32> to vector<8x256xf32>
    %6 = vector.broadcast %4 : vector<1x256xf32> to vector<8x256xf32>
    %7 = arith.mulf %5, %6 : vector<8x256xf32>
    %8 = vector.extract_strided_slice %2 {offsets = [0, 1], sizes = [8, 1], strides = [1, 1]} : vector<8x8xf32> to vector<8x1xf32>
    %9 = vector.extract_strided_slice %1 {offsets = [1, 0], sizes = [1, 256], strides = [1, 1]} : vector<8x256xf32> to vector<1x256xf32>
    %10 = vector.broadcast %8 : vector<8x1xf32> to vector<8x256xf32>
    %11 = vector.broadcast %9 : vector<1x256xf32> to vector<8x256xf32>
    %12 = arith.mulf %10, %11 : vector<8x256xf32>
    %13 = arith.addf %7, %12 : vector<8x256xf32>
    %14 = vector.extract_strided_slice %2 {offsets = [0, 2], sizes = [8, 1], strides = [1, 1]} : vector<8x8xf32> to vector<8x1xf32>
    %15 = vector.extract_strided_slice %1 {offsets = [2, 0], sizes = [1, 256], strides = [1, 1]} : vector<8x256xf32> to vector<1x256xf32>
    %16 = vector.broadcast %14 : vector<8x1xf32> to vector<8x256xf32>
    %17 = vector.broadcast %15 : vector<1x256xf32> to vector<8x256xf32>
    %18 = arith.mulf %16, %17 : vector<8x256xf32>
    %19 = arith.addf %13, %18 : vector<8x256xf32>
    %20 = vector.extract_strided_slice %2 {offsets = [0, 3], sizes = [8, 1], strides = [1, 1]} : vector<8x8xf32> to vector<8x1xf32>
    %21 = vector.extract_strided_slice %1 {offsets = [3, 0], sizes = [1, 256], strides = [1, 1]} : vector<8x256xf32> to vector<1x256xf32>
    %22 = vector.broadcast %20 : vector<8x1xf32> to vector<8x256xf32>
    %23 = vector.broadcast %21 : vector<1x256xf32> to vector<8x256xf32>
    %24 = arith.mulf %22, %23 : vector<8x256xf32>
    %25 = arith.addf %19, %24 : vector<8x256xf32>
    %26 = vector.extract_strided_slice %2 {offsets = [0, 4], sizes = [8, 1], strides = [1, 1]} : vector<8x8xf32> to vector<8x1xf32>
    %27 = vector.extract_strided_slice %1 {offsets = [4, 0], sizes = [1, 256], strides = [1, 1]} : vector<8x256xf32> to vector<1x256xf32>
    %28 = vector.broadcast %26 : vector<8x1xf32> to vector<8x256xf32>
    %29 = vector.broadcast %27 : vector<1x256xf32> to vector<8x256xf32>
    %30 = arith.mulf %28, %29 : vector<8x256xf32>
    %31 = arith.addf %25, %30 : vector<8x256xf32>
    %32 = vector.extract_strided_slice %2 {offsets = [0, 5], sizes = [8, 1], strides = [1, 1]} : vector<8x8xf32> to vector<8x1xf32>
    %33 = vector.extract_strided_slice %1 {offsets = [5, 0], sizes = [1, 256], strides = [1, 1]} : vector<8x256xf32> to vector<1x256xf32>
    %34 = vector.broadcast %32 : vector<8x1xf32> to vector<8x256xf32>
    %35 = vector.broadcast %33 : vector<1x256xf32> to vector<8x256xf32>
    %36 = arith.mulf %34, %35 : vector<8x256xf32>
    %37 = arith.addf %31, %36 : vector<8x256xf32>
    %38 = vector.extract_strided_slice %2 {offsets = [0, 6], sizes = [8, 1], strides = [1, 1]} : vector<8x8xf32> to vector<8x1xf32>
    %39 = vector.extract_strided_slice %1 {offsets = [6, 0], sizes = [1, 256], strides = [1, 1]} : vector<8x256xf32> to vector<1x256xf32>
    %40 = vector.broadcast %38 : vector<8x1xf32> to vector<8x256xf32>
    %41 = vector.broadcast %39 : vector<1x256xf32> to vector<8x256xf32>
    %42 = arith.mulf %40, %41 : vector<8x256xf32>
    %43 = arith.addf %37, %42 : vector<8x256xf32>
    %44 = vector.extract_strided_slice %2 {offsets = [0, 7], sizes = [8, 1], strides = [1, 1]} : vector<8x8xf32> to vector<8x1xf32>
    %45 = vector.extract_strided_slice %1 {offsets = [7, 0], sizes = [1, 256], strides = [1, 1]} : vector<8x256xf32> to vector<1x256xf32>
    %46 = vector.broadcast %44 : vector<8x1xf32> to vector<8x256xf32>
    %47 = vector.broadcast %45 : vector<1x256xf32> to vector<8x256xf32>
    %48 = arith.mulf %46, %47 : vector<8x256xf32>
    %49 = arith.addf %43, %48 : vector<8x256xf32>
    %c0_4 = arith.constant 0 : index
    %c0_5 = arith.constant 0 : index
    %50 = vector.load %arg3[%c0_4, %c0_5] : memref<8x1xf32, #tpu.memory_space<vmem>>, vector<8x1xf32>
    %51 = vector.broadcast %50 : vector<8x1xf32> to vector<8x256xf32>
    %52 = arith.addf %49, %51 : vector<8x256xf32>
    %53 = vector.shape_cast %52 : vector<8x256xf32> to vector<1x8x256xf32>
    %cst = arith.constant dense<0.000000e+00> : vector<1xf32>
    %54 = vector.multi_reduction <add>, %53, %cst [1, 2] : vector<1x8x256xf32> to vector<1xf32>
    %55 = vector.shape_cast %54 : vector<1xf32> to vector<1x1x1xf32>
    %56 = vector.extract %55[0, 0, 0] : f32 from vector<1x1x1xf32>
    %57 = vector.broadcast %56 : f32 to vector<1x1xf32>
    %cst_6 = arith.constant 2.048000e+03 : f32
    %58 = vector.broadcast %cst_6 : f32 to vector<1x1xf32>
    %59 = arith.divf %57, %58 : vector<1x1xf32>
    %60 = vector.broadcast %59 : vector<1x1xf32> to vector<8x256xf32>
    %61 = arith.subf %52, %60 : vector<8x256xf32>
    %62 = arith.mulf %61, %61 : vector<8x256xf32>
    %63 = vector.shape_cast %62 : vector<8x256xf32> to vector<1x8x256xf32>
    %cst_7 = arith.constant dense<0.000000e+00> : vector<1xf32>
    %64 = vector.multi_reduction <add>, %63, %cst_7 [1, 2] : vector<1x8x256xf32> to vector<1xf32>
    %65 = vector.shape_cast %64 : vector<1xf32> to vector<1x1x1xf32>
    %66 = vector.extract %65[0, 0, 0] : f32 from vector<1x1x1xf32>
    %67 = vector.broadcast %66 : f32 to vector<1x1xf32>
    %cst_8 = arith.constant 2.048000e+03 : f32
    %68 = vector.broadcast %cst_8 : f32 to vector<1x1xf32>
    %69 = arith.divf %67, %68 : vector<1x1xf32>
    %70 = vector.broadcast %59 : vector<1x1xf32> to vector<8x256xf32>
    %71 = arith.subf %52, %70 : vector<8x256xf32>
    %cst_9 = arith.constant 9.99999974E-6 : f32
    %72 = vector.broadcast %cst_9 : f32 to vector<1x1xf32>
    %73 = arith.addf %69, %72 : vector<1x1xf32>
    %74 = math.rsqrt %73 : vector<1x1xf32>
    %75 = vector.broadcast %74 : vector<1x1xf32> to vector<8x256xf32>
    %76 = arith.mulf %71, %75 : vector<8x256xf32>
    %c0_10 = arith.constant 0 : index
    %c0_11 = arith.constant 0 : index
    %77 = vector.load %arg4[%c0_10, %c0_11] : memref<8x256xf32, #tpu.memory_space<vmem>>, vector<8x256xf32>
    %78 = arith.mulf %76, %77 : vector<8x256xf32>
    %c0_12 = arith.constant 0 : index
    %c0_13 = arith.constant 0 : index
    %79 = vector.load %arg5[%c0_12, %c0_13] : memref<8x256xf32, #tpu.memory_space<vmem>>, vector<8x256xf32>
    %80 = arith.addf %78, %79 : vector<8x256xf32>
    %c0_14 = arith.constant 0 : index
    %c0_15 = arith.constant 0 : index
    %81 = vector.load %arg6[%c0_14, %c0_15] : memref<8x8xf32, #tpu.memory_space<vmem>>, vector<8x8xf32>
    %82 = vector.extract_strided_slice %81 {offsets = [0, 0], sizes = [8, 1], strides = [1, 1]} : vector<8x8xf32> to vector<8x1xf32>
    %83 = vector.extract_strided_slice %80 {offsets = [0, 0], sizes = [1, 256], strides = [1, 1]} : vector<8x256xf32> to vector<1x256xf32>
    %84 = vector.broadcast %82 : vector<8x1xf32> to vector<8x256xf32>
    %85 = vector.broadcast %83 : vector<1x256xf32> to vector<8x256xf32>
    %86 = arith.mulf %84, %85 : vector<8x256xf32>
    %87 = vector.extract_strided_slice %81 {offsets = [0, 1], sizes = [8, 1], strides = [1, 1]} : vector<8x8xf32> to vector<8x1xf32>
    %88 = vector.extract_strided_slice %80 {offsets = [1, 0], sizes = [1, 256], strides = [1, 1]} : vector<8x256xf32> to vector<1x256xf32>
    %89 = vector.broadcast %87 : vector<8x1xf32> to vector<8x256xf32>
    %90 = vector.broadcast %88 : vector<1x256xf32> to vector<8x256xf32>
    %91 = arith.mulf %89, %90 : vector<8x256xf32>
    %92 = arith.addf %86, %91 : vector<8x256xf32>
    %93 = vector.extract_strided_slice %81 {offsets = [0, 2], sizes = [8, 1], strides = [1, 1]} : vector<8x8xf32> to vector<8x1xf32>
    %94 = vector.extract_strided_slice %80 {offsets = [2, 0], sizes = [1, 256], strides = [1, 1]} : vector<8x256xf32> to vector<1x256xf32>
    %95 = vector.broadcast %93 : vector<8x1xf32> to vector<8x256xf32>
    %96 = vector.broadcast %94 : vector<1x256xf32> to vector<8x256xf32>
    %97 = arith.mulf %95, %96 : vector<8x256xf32>
    %98 = arith.addf %92, %97 : vector<8x256xf32>
    %99 = vector.extract_strided_slice %81 {offsets = [0, 3], sizes = [8, 1], strides = [1, 1]} : vector<8x8xf32> to vector<8x1xf32>
    %100 = vector.extract_strided_slice %80 {offsets = [3, 0], sizes = [1, 256], strides = [1, 1]} : vector<8x256xf32> to vector<1x256xf32>
    %101 = vector.broadcast %99 : vector<8x1xf32> to vector<8x256xf32>
    %102 = vector.broadcast %100 : vector<1x256xf32> to vector<8x256xf32>
    %103 = arith.mulf %101, %102 : vector<8x256xf32>
    %104 = arith.addf %98, %103 : vector<8x256xf32>
    %105 = vector.extract_strided_slice %81 {offsets = [0, 4], sizes = [8, 1], strides = [1, 1]} : vector<8x8xf32> to vector<8x1xf32>
    %106 = vector.extract_strided_slice %80 {offsets = [4, 0], sizes = [1, 256], strides = [1, 1]} : vector<8x256xf32> to vector<1x256xf32>
    %107 = vector.broadcast %105 : vector<8x1xf32> to vector<8x256xf32>
    %108 = vector.broadcast %106 : vector<1x256xf32> to vector<8x256xf32>
    %109 = arith.mulf %107, %108 : vector<8x256xf32>
    %110 = arith.addf %104, %109 : vector<8x256xf32>
    %111 = vector.extract_strided_slice %81 {offsets = [0, 5], sizes = [8, 1], strides = [1, 1]} : vector<8x8xf32> to vector<8x1xf32>
    %112 = vector.extract_strided_slice %80 {offsets = [5, 0], sizes = [1, 256], strides = [1, 1]} : vector<8x256xf32> to vector<1x256xf32>
    %113 = vector.broadcast %111 : vector<8x1xf32> to vector<8x256xf32>
    %114 = vector.broadcast %112 : vector<1x256xf32> to vector<8x256xf32>
    %115 = arith.mulf %113, %114 : vector<8x256xf32>
    %116 = arith.addf %110, %115 : vector<8x256xf32>
    %117 = vector.extract_strided_slice %81 {offsets = [0, 6], sizes = [8, 1], strides = [1, 1]} : vector<8x8xf32> to vector<8x1xf32>
    %118 = vector.extract_strided_slice %80 {offsets = [6, 0], sizes = [1, 256], strides = [1, 1]} : vector<8x256xf32> to vector<1x256xf32>
    %119 = vector.broadcast %117 : vector<8x1xf32> to vector<8x256xf32>
    %120 = vector.broadcast %118 : vector<1x256xf32> to vector<8x256xf32>
    %121 = arith.mulf %119, %120 : vector<8x256xf32>
    %122 = arith.addf %116, %121 : vector<8x256xf32>
    %123 = vector.extract_strided_slice %81 {offsets = [0, 7], sizes = [8, 1], strides = [1, 1]} : vector<8x8xf32> to vector<8x1xf32>
    %124 = vector.extract_strided_slice %80 {offsets = [7, 0], sizes = [1, 256], strides = [1, 1]} : vector<8x256xf32> to vector<1x256xf32>
    %125 = vector.broadcast %123 : vector<8x1xf32> to vector<8x256xf32>
    %126 = vector.broadcast %124 : vector<1x256xf32> to vector<8x256xf32>
    %127 = arith.mulf %125, %126 : vector<8x256xf32>
    %128 = arith.addf %122, %127 : vector<8x256xf32>
    %c0_16 = arith.constant 0 : index
    %c0_17 = arith.constant 0 : index
    %129 = vector.load %arg7[%c0_16, %c0_17] : memref<8x1xf32, #tpu.memory_space<vmem>>, vector<8x1xf32>
    %130 = vector.broadcast %129 : vector<8x1xf32> to vector<8x256xf32>
    %131 = arith.addf %128, %130 : vector<8x256xf32>
    %c0_18 = arith.constant 0 : index
    %c0_19 = arith.constant 0 : index
    %132 = vector.load %arg8[%c0_18, %c0_19] : memref<4x8xf32, #tpu.memory_space<vmem>>, vector<4x8xf32>
    %133 = vector.extract_strided_slice %132 {offsets = [0, 0], sizes = [4, 1], strides = [1, 1]} : vector<4x8xf32> to vector<4x1xf32>
    %134 = vector.extract_strided_slice %131 {offsets = [0, 0], sizes = [1, 256], strides = [1, 1]} : vector<8x256xf32> to vector<1x256xf32>
    %135 = vector.broadcast %133 : vector<4x1xf32> to vector<4x256xf32>
    %136 = vector.broadcast %134 : vector<1x256xf32> to vector<4x256xf32>
    %137 = arith.mulf %135, %136 : vector<4x256xf32>
    %138 = vector.extract_strided_slice %132 {offsets = [0, 1], sizes = [4, 1], strides = [1, 1]} : vector<4x8xf32> to vector<4x1xf32>
    %139 = vector.extract_strided_slice %131 {offsets = [1, 0], sizes = [1, 256], strides = [1, 1]} : vector<8x256xf32> to vector<1x256xf32>
    %140 = vector.broadcast %138 : vector<4x1xf32> to vector<4x256xf32>
    %141 = vector.broadcast %139 : vector<1x256xf32> to vector<4x256xf32>
    %142 = arith.mulf %140, %141 : vector<4x256xf32>
    %143 = arith.addf %137, %142 : vector<4x256xf32>
    %144 = vector.extract_strided_slice %132 {offsets = [0, 2], sizes = [4, 1], strides = [1, 1]} : vector<4x8xf32> to vector<4x1xf32>
    %145 = vector.extract_strided_slice %131 {offsets = [2, 0], sizes = [1, 256], strides = [1, 1]} : vector<8x256xf32> to vector<1x256xf32>
    %146 = vector.broadcast %144 : vector<4x1xf32> to vector<4x256xf32>
    %147 = vector.broadcast %145 : vector<1x256xf32> to vector<4x256xf32>
    %148 = arith.mulf %146, %147 : vector<4x256xf32>
    %149 = arith.addf %143, %148 : vector<4x256xf32>
    %150 = vector.extract_strided_slice %132 {offsets = [0, 3], sizes = [4, 1], strides = [1, 1]} : vector<4x8xf32> to vector<4x1xf32>
    %151 = vector.extract_strided_slice %131 {offsets = [3, 0], sizes = [1, 256], strides = [1, 1]} : vector<8x256xf32> to vector<1x256xf32>
    %152 = vector.broadcast %150 : vector<4x1xf32> to vector<4x256xf32>
    %153 = vector.broadcast %151 : vector<1x256xf32> to vector<4x256xf32>
    %154 = arith.mulf %152, %153 : vector<4x256xf32>
    %155 = arith.addf %149, %154 : vector<4x256xf32>
    %156 = vector.extract_strided_slice %132 {offsets = [0, 4], sizes = [4, 1], strides = [1, 1]} : vector<4x8xf32> to vector<4x1xf32>
    %157 = vector.extract_strided_slice %131 {offsets = [4, 0], sizes = [1, 256], strides = [1, 1]} : vector<8x256xf32> to vector<1x256xf32>
    %158 = vector.broadcast %156 : vector<4x1xf32> to vector<4x256xf32>
    %159 = vector.broadcast %157 : vector<1x256xf32> to vector<4x256xf32>
    %160 = arith.mulf %158, %159 : vector<4x256xf32>
    %161 = arith.addf %155, %160 : vector<4x256xf32>
    %162 = vector.extract_strided_slice %132 {offsets = [0, 5], sizes = [4, 1], strides = [1, 1]} : vector<4x8xf32> to vector<4x1xf32>
    %163 = vector.extract_strided_slice %131 {offsets = [5, 0], sizes = [1, 256], strides = [1, 1]} : vector<8x256xf32> to vector<1x256xf32>
    %164 = vector.broadcast %162 : vector<4x1xf32> to vector<4x256xf32>
    %165 = vector.broadcast %163 : vector<1x256xf32> to vector<4x256xf32>
    %166 = arith.mulf %164, %165 : vector<4x256xf32>
    %167 = arith.addf %161, %166 : vector<4x256xf32>
    %168 = vector.extract_strided_slice %132 {offsets = [0, 6], sizes = [4, 1], strides = [1, 1]} : vector<4x8xf32> to vector<4x1xf32>
    %169 = vector.extract_strided_slice %131 {offsets = [6, 0], sizes = [1, 256], strides = [1, 1]} : vector<8x256xf32> to vector<1x256xf32>
    %170 = vector.broadcast %168 : vector<4x1xf32> to vector<4x256xf32>
    %171 = vector.broadcast %169 : vector<1x256xf32> to vector<4x256xf32>
    %172 = arith.mulf %170, %171 : vector<4x256xf32>
    %173 = arith.addf %167, %172 : vector<4x256xf32>
    %174 = vector.extract_strided_slice %132 {offsets = [0, 7], sizes = [4, 1], strides = [1, 1]} : vector<4x8xf32> to vector<4x1xf32>
    %175 = vector.extract_strided_slice %131 {offsets = [7, 0], sizes = [1, 256], strides = [1, 1]} : vector<8x256xf32> to vector<1x256xf32>
    %176 = vector.broadcast %174 : vector<4x1xf32> to vector<4x256xf32>
    %177 = vector.broadcast %175 : vector<1x256xf32> to vector<4x256xf32>
    %178 = arith.mulf %176, %177 : vector<4x256xf32>
    %179 = arith.addf %173, %178 : vector<4x256xf32>
    %c0_20 = arith.constant 0 : index
    %c0_21 = arith.constant 0 : index
    %180 = vector.load %arg9[%c0_20, %c0_21] : memref<4x1xf32, #tpu.memory_space<vmem>>, vector<4x1xf32>
    %181 = vector.broadcast %180 : vector<4x1xf32> to vector<4x256xf32>
    %182 = arith.addf %179, %181 : vector<4x256xf32>
    %c0_22 = arith.constant 0 : index
    %c0_23 = arith.constant 0 : index
    %c0_24 = arith.constant 0 : index
    %183 = vector.load %arg10[%c0_22, %c0_23, %c0_24] : memref<1x4x256xf32, #tpu.memory_space<vmem>>, vector<1x4x256xf32>
    %184 = vector.shape_cast %183 : vector<1x4x256xf32> to vector<4x256xf32>
    %185 = vector.shape_cast %182 : vector<4x256xf32> to vector<1x4x256xf32>
    tpu.vector_store %arg10[%c0_22, %c0_23, %c0_24], %185 {strides = array<i32>} : memref<1x4x256xf32, #tpu.memory_space<vmem>>, vector<1x4x256xf32>,
    return
  }
  func.func @transform_0(%arg0: i32) -> (i32, i32, i32) {
    %c0_i32 = arith.constant 0 : i32
    %c0_i32_0 = arith.constant 0 : i32
    %c0_i32_1 = arith.constant 0 : i32
    return %arg0, %c0_i32, %c0_i32_0 : i32, i32, i32
  }
  func.func @transform_1(%arg0: i32) -> (i32, i32) {
    %c0_i32 = arith.constant 0 : i32
    %c0_i32_0 = arith.constant 0 : i32
    %c0_i32_1 = arith.constant 0 : i32
    return %c0_i32, %c0_i32_0 : i32, i32
  }
  func.func @transform_2(%arg0: i32) -> (i32, i32) {
    %c0_i32 = arith.constant 0 : i32
    %c0_i32_0 = arith.constant 0 : i32
    %c0_i32_1 = arith.constant 0 : i32
    return %c0_i32, %c0_i32_0 : i32, i32
  }
  func.func @transform_3(%arg0: i32) -> (i32, i32) {
    %c0_i32 = arith.constant 0 : i32
    %c0_i32_0 = arith.constant 0 : i32
    %c0_i32_1 = arith.constant 0 : i32
    return %c0_i32, %c0_i32_0 : i32, i32
  }
  func.func @transform_4(%arg0: i32) -> (i32, i32) {
    %c0_i32 = arith.constant 0 : i32
    %c0_i32_0 = arith.constant 0 : i32
    %c0_i32_1 = arith.constant 0 : i32
    return %c0_i32, %c0_i32_0 : i32, i32
  }
  func.func @transform_5(%arg0: i32) -> (i32, i32) {
    %c0_i32 = arith.constant 0 : i32
    %c0_i32_0 = arith.constant 0 : i32
    %c0_i32_1 = arith.constant 0 : i32
    return %c0_i32, %c0_i32_0 : i32, i32
  }
  func.func @transform_6(%arg0: i32) -> (i32, i32) {
    %c0_i32 = arith.constant 0 : i32
    %c0_i32_0 = arith.constant 0 : i32
    %c0_i32_1 = arith.constant 0 : i32
    return %c0_i32, %c0_i32_0 : i32, i32
  }
  func.func @transform_7(%arg0: i32) -> (i32, i32) {
    %c0_i32 = arith.constant 0 : i32
    %c0_i32_0 = arith.constant 0 : i32
    %c0_i32_1 = arith.constant 0 : i32
    return %c0_i32, %c0_i32_0 : i32, i32
  }
  func.func @transform_8(%arg0: i32) -> (i32, i32) {
    %c0_i32 = arith.constant 0 : i32
    %c0_i32_0 = arith.constant 0 : i32
    %c0_i32_1 = arith.constant 0 : i32
    return %c0_i32, %c0_i32_0 : i32, i32
  }
  func.func @transform_9(%arg0: i32) -> (i32, i32, i32) {
    %c0_i32 = arith.constant 0 : i32
    %c0_i32_0 = arith.constant 0 : i32
    %c0_i32_1 = arith.constant 0 : i32
    return %arg0, %c0_i32, %c0_i32_0 : i32, i32, i32
  }
}

</mosaic_0001>

<bundles_post_ra>
// kernel: attention_block_forward.3
= control target key start
LH: loop header
LB: loop body
LE: loop exit
PB: predicated region body
PF: predicated region fallthrough
CT: control target
= control target key end

     0   :  { %s1804_s21 = smov 0   ;;  %s2378_s0 = inlined_call_operand.vmem [shape: f32[2,4,256], index: 0, kind: input, shape index: {}]   ;;  %s2379_s1 = inlined_call_operand.vmem [shape: f32[8,4], index: 1, kind: input, shape index: {}]   ;;  %s2380_s2 = inlined_call_operand.vmem [shape: f32[8,8], index: 2, kind: input, shape index: {}]   ;;  %s2381_s3 = inlined_call_operand.vmem [shape: f32[4,8], index: 3, kind: input, shape index: {}]   ;;  %s2382_s4 = inlined_call_operand.vmem [shape: f32[8,4], index: 4, kind: input, shape index: {}]   ;;  %s2383_s5 = inlined_call_operand.vmem [shape: f32[8,8], index: 5, kind: input, shape index: {}]   ;;  %s2384_s6 = inlined_call_operand.vmem [shape: f32[4,8], index: 6, kind: input, shape index: {}]   ;;  %s2385_s7 = inlined_call_operand.vmem [shape: f32[8,4], index: 7, kind: input, shape index: {}]   ;;  %s2386_s8 = inlined_call_operand.vmem [shape: f32[8,8], index: 8, kind: input, shape index: {}]   ;;  %s2387_s9 = inlined_call_operand.vmem [shape: f32[4,8], index: 9, kind: input, shape index: {}]   ;;  %s2388_s10 = inlined_call_operand.vmem [shape: f32[2,4,256], index: 10, kind: output, shape index: {0}]   ;;  %s2389_s11 = inlined_call_operand.vmem [shape: f32[2,4,256], index: 11, kind: output, shape index: {1}]   ;;  %s2390_s12 = inlined_call_operand.vmem [shape: f32[2,4,256], index: 12, kind: output, shape index: {2}]  }
   0x1 LB: > { %s1620_s22 = sadd.s32 4294967295, %s1729_s21   ;;  %p1624_p0 = scmp.ge.s32.totalorder %s1729_s21, 1  ;;  %s1729_s21 = sphi %s1804_s21, %s23_s21  }
   0x2   : > { %p367_p1 = scmp.lt.s32.totalorder %s1729_s21, 3 }
   0x4   : > { %p368_p2 = pnand %p1624_p0, %p367_p1 }
   0x5   : > { %v443_v0 = vld [vmem:[%s2382_s4] sm:$0xff] (!%p368_p2)  ;;  %v1731_v2 = vmov (!%p368_p2), 1   ;;  %v1732_v3 = vmov (!%p368_p2), 0   ;;  %v1733_v4 = vmov (!%p368_p2), 2   ;;  %v1734_v6 = vmov (!%p368_p2), 3   ;;  %p419_p3 = scmp.lt.s32.totalorder (!%p368_p2), %s1620_s22, 1 }
   0x6   : > { %371 = sbr.rel (%p368_p2) target bundleno = 581 (0x245), region = 60  ;;  %v440_v1 = vld [vmem:[%s2379_s1] sm:$0xff] (!%p368_p2)  ;;  %1655 = vset.pattern.permute.xlu0 (!%p368_p2), %v1731_v2  ;;  %1656 = vset.pattern.permute.xlu1 (!%p368_p2), %v1732_v3  ;;  %v1735_v7 = vmov (!%p368_p2), 6   ;;  %v1736_v9 = vmov (!%p368_p2), 4   ;;  %v1737_v10 = vmov (!%p368_p2), 5   ;;  %v1738_v11 = vmov (!%p368_p2), 7  }
   0x7   : > { %860 = vperm.xlu1 (!%p368_p2), %1656, %v443_v0   ;;  %476 = vperm.xlu0 (!%p368_p2), %1655, %v440_v1   ;;  %v441_v5 = vld [vmem:[%s2380_s2] sm:$0xff] (!%p368_p2)  ;;  %v455_v12 = vlaneseq (!%p368_p2) }
   0x8   : > { %v1834_v8 = vld [vmem:[%s2383_s5] sm:$0xff] (!%p368_p2) }
   0x9   : > { %v456_v13 = vshrl.u32 (!%p368_p2), %v455_v12, 7 }
   0xb   : > { %1657 = vset.pattern.permute.xlu1 (!%p368_p2), %v1731_v2  ;;  %1659 = vset.pattern.permute.xlu0 (!%p368_p2), %v1733_v4  ;;  %v1853_v14 = vsub.s32 (!%p368_p2), 1, %v456_v13  ;;  %v1855_v15 = vsub.s32 (!%p368_p2), 5, %v456_v13  ;;  %v1857_v18 = vsub.s32 (!%p368_p2), 0, %v456_v13  ;;  %v1859_v19 = vsub.s32 (!%p368_p2), 4, %v456_v13 }
   0xc   : > { %866 = vperm.xlu1 (!%p368_p2), %1657, %v443_v0   ;;  %874 = vperm.xlu0 (!%p368_p2), %1659, %v443_v0   ;;  %v1863_v23 = vsub.s32 (!%p368_p2), 2, %v456_v13  ;;  %v1865_v24 = vsub.s32 (!%p368_p2), 6, %v456_v13  ;;  %v1867_v25 = vsub.s32 (!%p368_p2), 3, %v456_v13  ;;  %v1869_v26 = vsub.s32 (!%p368_p2), 7, %v456_v13 }
   0xd   : > { %s2392_s22 = smov (!%p419_p3, %s1620_s22), 1 }
   0xe   : > { %s1847_s13 = sshll.u32 %s2392_s22, 3 }
   0xf   : > { %s423_s16 = scalar_lea.vmem %s2378_s0, %s1847_s13  ;;  %s428_s30 = scalar_lea.vmem %s2388_s10, %s1847_s13 }
  0x10   : > { %1658 = vset.pattern.permute.xlu1 %v1733_v4  ;;  %1660 = vset.pattern.permute.xlu0 %v1732_v3  ;;  %v439_v20 = vld [vmem:[%s423_s16] sm:$0xff]  ;;  %s438_s16 = scalar_lea.vmem %s2390_s12, %s1847_s13  ;;  %s433_s19 = scalar_lea.vmem %s2389_s11, %s1847_s13 }
  0x11   : > { %502 = vperm.xlu1 %1658, %v440_v1   ;;  %451 = vperm.xlu0 %1660, %v440_v1   ;;  %v482_v21 = vrot.slane %v439_v20, %v1853_v14  ;;  %v486_v22 = vrot.slane %v439_v20, %v1855_v15  ;;  %v458_v27 = vrot.slane %v439_v20, %v1857_v18 }
  0x12   : > { %v462_v28 = vrot.slane %v439_v20, %v1859_v19  ;;  %v508_v33 = vrot.slane %v439_v20, %v1863_v23  ;;  %v512_v34 = vrot.slane %v439_v20, %v1865_v24  ;;  %v534_v35 = vrot.slane %v439_v20, %v1867_v25 }
  0x13   : > { %v1874_v31 = vrot.slane %v482_v21, %v1853_v14  ;;  %v1877_v32 = vrot.slane %v486_v22, %v1853_v14  ;;  %v538_v36 = vrot.slane %v439_v20, %v1869_v26  ;;  %v1884_v37 = vrot.slane %v458_v27, %v1857_v18 }
  0x14   : > { %v1887_v38 = vrot.slane %v462_v28, %v1857_v18  ;;  %v1894_v45 = vrot.slane %v508_v33, %v1863_v23  ;;  %v1897_v46 = vrot.slane %v512_v34, %v1863_v23  ;;  %v1900_v47 = vrot.slane %v534_v35, %v1867_v25 }
  0x15   : > { %1661 = vset.pattern.permute.xlu1 %v1734_v6  ;;  %555 = vperm.xlu0 %1660, %v441_v5   ;;  %v1903_v48 = vrot.slane %v538_v36, %v1867_v25 }
  0x16   : > { %528 = vperm.xlu1 %1661, %v440_v1  }
  0x19   : > { %1664 = vset.pattern.permute.xlu0 %v1734_v6 }
  0x1a   : > { %882 = vperm.xlu1 %1661, %v443_v0   ;;  %601 = vperm.xlu0 %1664, %v441_v5  }
  0x1e   : > { %1662 = vset.pattern.permute.xlu1 %v1731_v2  ;;  %1667 = vset.pattern.permute.xlu0 %v1735_v7 }
  0x1f   : > { %569 = vperm.xlu1 %1662, %v441_v5   ;;  %649 = vperm.xlu0 %1667, %v441_v5  }
  0x23   : > { %1663 = vset.pattern.permute.xlu1 %v1733_v4  ;;  %1035 = vperm.xlu0 %1667, %v1834_v8  }
  0x24   : > { %585 = vperm.xlu1 %1663, %v441_v5  }
  0x27   : > { %1677 = vset.pattern.permute.xlu0 %v1734_v6 }
  0x28   : > { %1665 = vset.pattern.permute.xlu1 %v1736_v9 }
  0x29   : > { %617 = vperm.xlu1 %1665, %v441_v5  }
  0x2d   : > { %1666 = vset.pattern.permute.xlu1 %v1737_v10 }
  0x2e   : > { %633 = vperm.xlu1 %1666, %v441_v5  }
  0x32   : > { %1668 = vset.pattern.permute.xlu1 %v1738_v11 }
  0x33   : > { %665 = vperm.xlu1 %1668, %v441_v5  }
  0x37   : > { %1669 = vset.pattern.permute.xlu1 %v1732_v3 }
  0x86   : > { %v861_v16 = vpop.permute.xlu1 %860  ;;  %v477_v17 = vpop.permute.xlu0 %476 }
  0x87   : > { %v497_v39 = vmul.f32 %v1874_v31, %v477_v17  ;;  %v498_v40 = vmul.f32 %v1877_v32, %v477_v17  ;;  %v863_v55 = vmul.f32 %v861_v16, %v1884_v37  ;;  %v864_v56 = vmul.f32 %v861_v16, %v1887_v38 }
  0x8b   : > { %v867_v29 = vpop.permute.xlu1 %866  ;;  %v875_v30 = vpop.permute.xlu0 %874 }
  0x8c   : > { %v869_v49 = vmul.f32 %v867_v29, %v1874_v31  ;;  %v870_v50 = vmul.f32 %v867_v29, %v1877_v32  ;;  %v877_v0 = vmul.f32 %v875_v30, %v1894_v45  ;;  %v878_v1 = vmul.f32 %v875_v30, %v1897_v46 }
  0x8e   : > { %v871_v62 = vadd.f32 %v869_v49, %v863_v55  ;;  %v872_v63 = vadd.f32 %v870_v50, %v864_v56 }
  0x90   : > { %v503_v41 = vpop.permute.xlu1 %502  ;;  %v452_v42 = vpop.permute.xlu0 %451  ;;  %v879_v20 = vadd.f32 %v877_v0, %v871_v62  ;;  %v880_v21 = vadd.f32 %v878_v1, %v872_v63 }
  0x91   : > { %v473_v43 = vmul.f32 %v1884_v37, %v452_v42  ;;  %v474_v44 = vmul.f32 %v1887_v38, %v452_v42  ;;  %v523_v53 = vmul.f32 %v1894_v45, %v503_v41  ;;  %v524_v54 = vmul.f32 %v1897_v46, %v503_v41 }
  0x93   : > { %v499_v51 = vadd.f32 %v497_v39, %v473_v43  ;;  %v500_v52 = vadd.f32 %v498_v40, %v474_v44 }
  0x94   : > { %v556_v35 = vpop.permute.xlu0 %555 }
  0x95   : > { %v529_v57 = vpop.permute.xlu1 %528  ;;  %v525_v58 = vadd.f32 %v523_v53, %v499_v51  ;;  %v526_v59 = vadd.f32 %v524_v54, %v500_v52 }
  0x96   : > { %v549_v60 = vmul.f32 %v1900_v47, %v529_v57  ;;  %v550_v61 = vmul.f32 %v1903_v48, %v529_v57 }
  0x98   : > { %v551_v12 = vadd.f32 %v549_v60, %v525_v58  ;;  %v552_v13 = vadd.f32 %v550_v61, %v526_v59 }
  0x99   : > { %v883_v5 = vpop.permute.xlu1 %882  ;;  %v602_v56 = vpop.permute.xlu0 %601 }
  0x9a   : > { %v885_v17 = vmul.f32 %v883_v5, %v1900_v47  ;;  %v886_v16 = vmul.f32 %v883_v5, %v1903_v48  ;;  %v561_v28 = vrot.slane %v551_v12, %v1857_v18  ;;  %v565_v29 = vrot.slane %v552_v13, %v1857_v18 }
  0x9b   : > { %v575_v30 = vrot.slane %v551_v12, %v1853_v14  ;;  %v579_v34 = vrot.slane %v552_v13, %v1853_v14  ;;  %v591_v43 = vrot.slane %v551_v12, %v1863_v23  ;;  %v595_v44 = vrot.slane %v552_v13, %v1863_v23 }
  0x9c   : > { %v1917_v22 = vadd.f32 %v885_v17, %v879_v20  ;;  %v1919_v27 = vadd.f32 %v886_v16, %v880_v21  ;;  %v566_v41 = vmul.f32 %v561_v28, %v556_v35  ;;  %v567_v42 = vmul.f32 %v565_v29, %v556_v35 }
  0x9d   : > { %v607_v49 = vrot.slane %v551_v12, %v1867_v25  ;;  %v611_v50 = vrot.slane %v552_v13, %v1867_v25  ;;  %v623_v62 = vrot.slane %v551_v12, %v1859_v19  ;;  %v627_v63 = vrot.slane %v552_v13, %v1859_v19 }
  0x9e   : > { %v570_v33 = vpop.permute.xlu1 %569  ;;  %v889_v40 = vadd.f32 %v1919_v27, %v1917_v22  ;;  %v639_v16 = vrot.slane %v551_v12, %v1855_v15  ;;  %v643_v20 = vrot.slane %v552_v13, %v1855_v15  ;;  %v650_v21 = vpop.permute.xlu0 %649  ;;  %v655_v28 = vrot.slane %v551_v12, %v1865_v24 }
  0x9f   : > { %v580_v36 = vmul.f32 %v575_v30, %v570_v33  ;;  %v581_v39 = vmul.f32 %v579_v34, %v570_v33  ;;  %v612_v59 = vmul.f32 %v607_v49, %v602_v56  ;;  %v613_v60 = vmul.f32 %v611_v50, %v602_v56 }
  0xa0   : > { %890 = vadd.xlane.f32.xlu1 %v889_v40  ;;  %v659_v29 = vrot.slane %v552_v13, %v1865_v24  ;;  %v675_v49 = vrot.slane %v552_v13, %v1869_v26  ;;  %v447_v13 = vld [vmem:[%s2386_s8] sm:$0xff] }
  0xa1   : > { %v582_v52 = vadd.f32 %v580_v36, %v566_v41  ;;  %v583_v53 = vadd.f32 %v581_v39, %v567_v42  ;;  %v660_v39 = vmul.f32 %v655_v28, %v650_v21  ;;  %v445_v28 = vld [vmem:[%s2384_s6] sm:$0xf] }
  0xa2   : > { %v661_v40 = vmul.f32 %v659_v29, %v650_v21  ;;  %v448_v29 = vld [vmem:[%s2387_s9] sm:$0xf] }
  0xa3   : > { %v586_v51 = vpop.permute.xlu1 %585 }
  0xa4   : > { %v596_v54 = vmul.f32 %v591_v43, %v586_v51  ;;  %v597_v55 = vmul.f32 %v595_v44, %v586_v51  ;;  %v1940_v43 = vld [vmem:[%s2381_s3] sm:$0xf]  ;;  %v671_v44 = vrot.slane %v551_v12, %v1869_v26 }
  0xa5   : > { %v446_v12 = vld [vmem:[%s2385_s7] sm:$0xff] }
  0xa6   : > { %v598_v57 = vadd.f32 %v596_v54, %v582_v52  ;;  %v599_v58 = vadd.f32 %v597_v55, %v583_v53 }
  0xa8   : > { %v618_v61 = vpop.permute.xlu1 %617  ;;  %v614_v0 = vadd.f32 %v612_v59, %v598_v57  ;;  %v615_v1 = vadd.f32 %v613_v60, %v599_v58 }
  0xa9   : > { %v628_v5 = vmul.f32 %v623_v62, %v618_v61  ;;  %v629_v17 = vmul.f32 %v627_v63, %v618_v61 }
  0xab   : > { %v630_v30 = vadd.f32 %v628_v5, %v614_v0  ;;  %v631_v34 = vadd.f32 %v629_v17, %v615_v1  ;;  %v1981_v1 = vpop.permute.xlu0 %1035 }
  0xad   : > { %v634_v33 = vpop.permute.xlu1 %633 }
  0xae   : > { %v644_v35 = vmul.f32 %v639_v16, %v634_v33  ;;  %v645_v36 = vmul.f32 %v643_v20, %v634_v33 }
  0xb0   : > { %v646_v41 = vadd.f32 %v644_v35, %v630_v30  ;;  %v647_v42 = vadd.f32 %v645_v36, %v631_v34 }
  0xb1   : > { %733 = vperm.xlu1 %1669, %v1940_v43  }
  0xb2   : > { %v666_v50 = vpop.permute.xlu1 %665  ;;  %v662_v51 = vadd.f32 %v660_v39, %v646_v41  ;;  %v663_v52 = vadd.f32 %v661_v40, %v647_v42 }
  0xb3   : > { %v676_v53 = vmul.f32 %v671_v44, %v666_v50  ;;  %v677_v54 = vmul.f32 %v675_v49, %v666_v50 }
  0xb5   : > { %v678_v55 = vadd.f32 %v676_v53, %v662_v51  ;;  %v679_v56 = vadd.f32 %v677_v54, %v663_v52  ;;  %1670 = vset.pattern.permute.xlu1 %v1733_v4 }
  0xb6   : > { %763 = vperm.xlu1 %1670, %v1940_v43  }
  0xb7   : > { %v680_v57 = vadd.f32 %v679_v56, %v678_v55 }
  0xb9   : > { %681 = vadd.xlane.f32.xlu0 %v680_v57 }
  0xba   : > { %1671 = vset.pattern.permute.xlu1 %v1734_v6 }
  0xbb   : > { %779 = vperm.xlu1 %1671, %v1940_v43  }
  0xbf   : > { %1672 = vset.pattern.permute.xlu1 %v1736_v9 }
  0xc0   : > { %795 = vperm.xlu1 %1672, %v1940_v43  }
  0xc4   : > { %1673 = vset.pattern.permute.xlu1 %v1737_v10 }
  0xc5   : > { %811 = vperm.xlu1 %1673, %v1940_v43  }
  0xc9   : > { %1674 = vset.pattern.permute.xlu1 %v1735_v7 }
  0xca   : > { %827 = vperm.xlu1 %1674, %v1940_v43  }
  0xce   : > { %1675 = vset.pattern.permute.xlu1 %v1738_v11 }
  0xcf   : > { %987 = vperm.xlu0 %1677, %v1834_v8   ;;  %843 = vperm.xlu1 %1675, %v1940_v43  }
  0xd3   : > { %1217 = vperm.xlu0 %1677, %v446_v12   ;;  %1676 = vset.pattern.permute.xlu1 %v1736_v9 }
  0xd4   : > { %1003 = vperm.xlu1 %1676, %v1834_v8  }
  0xd7   : > { %1681 = vset.pattern.permute.xlu0 %v1733_v4 }
  0xd8   : > { %971 = vperm.xlu0 %1681, %v1834_v8   ;;  %1678 = vset.pattern.permute.xlu1 %v1738_v11 }
  0xdc   : > { %1256 = vperm.xlu0 %1681, %v447_v13  }
  0xe0   : > { %1684 = vset.pattern.permute.xlu0 %v1737_v10 }
  0xe1   : > { %1019 = vperm.xlu0 %1684, %v1834_v8  }
 0x12d   : > { %v891_v58 = vpop.xlane.xlu1 %890 }
 0x12e   : > { %v892_v59 = vmul.f32 0.00390625, %v891_v58 }
 0x130   : > { %v1972_v60 = vsub.f32 %v1917_v22, %v892_v59  ;;  %v1975_v61 = vsub.f32 %v1919_v27, %v892_v59 }
 0x132   : > { %v895_v62 = vmul.f32 %v1972_v60, %v1972_v60  ;;  %v896_v63 = vmul.f32 %v1975_v61, %v1975_v61 }
 0x134   : > { %v897_v0 = vadd.f32 %v896_v63, %v895_v62 }
 0x136   : > { %898 = vadd.xlane.f32.xlu1 %v897_v0 }
 0x146   : > { %v682_v5 = vpop.xlane.xlu0 %681 }
 0x147   : > { %v684_v17 = vmul.f32 0.00390625, %v682_v5  ;;  %1051 = vperm.xlu1 %1678, %v1834_v8  }
 0x149   : > { %v1983_v16 = vsub.f32 %v678_v55, %v684_v17  ;;  %v1985_v20 = vsub.f32 %v679_v56, %v684_v17 }
 0x14b   : > { %v687_v22 = vmul.f32 %v1983_v16, %v1983_v16  ;;  %v688_v27 = vmul.f32 %v1985_v20, %v1985_v20  ;;  %1679 = vset.pattern.permute.xlu1 %v1731_v2 }
 0x14c   : > { %1201 = vperm.xlu1 %1679, %v446_v12  }
 0x14d   : > { %v689_v21 = vadd.f32 %v688_v27, %v687_v22 }
 0x14e   : > { %v2039_v30 = vpop.permute.xlu0 %987 }
 0x14f   : > { %690 = vadd.xlane.f32.xlu0 %v689_v21 }
 0x150   : > { %1680 = vset.pattern.permute.xlu1 %v1733_v4 }
 0x151   : > { %1209 = vperm.xlu1 %1680, %v446_v12  }
 0x152   : > { %v2041_v35 = vpop.permute.xlu0 %1217 }
 0x155   : > { %1682 = vset.pattern.permute.xlu1 %v1732_v3 }
 0x156   : > { %1226 = vperm.xlu1 %1682, %v447_v13  }
 0x157   : > { %v2045_v40 = vpop.permute.xlu0 %971 }
 0x15a   : > { %1683 = vset.pattern.permute.xlu1 %v1731_v2 }
 0x15b   : > { %1240 = vperm.xlu1 %1683, %v447_v13  }
 0x15f   : > { %1685 = vset.pattern.permute.xlu1 %v1734_v6 }
 0x160   : > { %1272 = vperm.xlu1 %1685, %v447_v13  }
 0x164   : > { %1686 = vset.pattern.permute.xlu1 %v1736_v9 }
 0x165   : > { %1304 = vperm.xlu0 %1684, %v447_v13   ;;  %1288 = vperm.xlu1 %1686, %v447_v13  }
 0x169   : > { %1687 = vset.pattern.permute.xlu0 %v1732_v3  ;;  %1688 = vset.pattern.permute.xlu1 %v1735_v7 }
 0x16a   : > { %941 = vperm.xlu0 %1687, %v1834_v8   ;;  %1320 = vperm.xlu1 %1688, %v447_v13  }
 0x16e   : > { %1195 = vperm.xlu0 %1687, %v446_v12   ;;  %1689 = vset.pattern.permute.xlu1 %v1738_v11 }
 0x16f   : > { %1336 = vperm.xlu1 %1689, %v447_v13  }
 0x172   : > { %1068 = vperm.xlu0 %1687, %v445_v28  }
 0x173   : > { %1691 = vset.pattern.permute.xlu1 %v1731_v2 }
 0x174   : > { %1082 = vperm.xlu1 %1691, %v445_v28  }
 0x176   : > { %1690 = vset.pattern.permute.xlu0 %v1731_v2  ;;  %v2021_v2 = vpop.permute.xlu1 %733 }
 0x177   : > { %747 = vperm.xlu0 %1690, %v1940_v43   ;;  %v2047_v43 = vpop.permute.xlu0 %1256 }
 0x178   : > { %1692 = vset.pattern.permute.xlu1 %v1732_v3 }
 0x179   : > { %1359 = vperm.xlu1 %1692, %v448_v29  }
 0x17a   : > { %v2024_v3 = vpop.permute.xlu1 %763 }
 0x17b   : > { %955 = vperm.xlu0 %1690, %v1834_v8   ;;  %v2053_v53 = vpop.permute.xlu0 %1019 }
 0x17d   : > { %1693 = vset.pattern.permute.xlu1 %v1733_v4 }
 0x17e   : > { %1098 = vperm.xlu1 %1693, %v445_v28   ;;  %v2027_v4 = vpop.permute.xlu1 %779 }
 0x17f   : > { %1373 = vperm.xlu0 %1690, %v448_v29  }
 0x182   : > { %1389 = vperm.xlu1 %1693, %v448_v29  }
 0x183   : > { %1694 = vset.pattern.permute.xlu0 %v1734_v6 }
 0x184   : > { %1114 = vperm.xlu0 %1694, %v445_v28  }
 0x186   : > { %1695 = vset.pattern.permute.xlu1 %v1734_v6  ;;  %v2029_v6 = vpop.permute.xlu1 %795 }
 0x187   : > { %1405 = vperm.xlu1 %1695, %v448_v29  }
 0x188   : > { %1697 = vset.pattern.permute.xlu0 %v1736_v9 }
 0x189   : > { %1421 = vperm.xlu0 %1697, %v448_v29  }
 0x18a   : > { %v2031_v8 = vpop.permute.xlu1 %811 }
 0x18b   : > { %1696 = vset.pattern.permute.xlu1 %v1736_v9 }
 0x18c   : > { %1130 = vperm.xlu1 %1696, %v445_v28  }
 0x18d   : > { %1699 = vset.pattern.permute.xlu0 %v1735_v7 }
 0x18e   : > { %1162 = vperm.xlu0 %1699, %v445_v28   ;;  %v2033_v9 = vpop.permute.xlu1 %827 }
 0x190   : > { %1698 = vset.pattern.permute.xlu1 %v1737_v10 }
 0x191   : > { %1146 = vperm.xlu1 %1698, %v445_v28  }
 0x192   : > { %1702 = vset.pattern.permute.xlu0 %v1738_v11  ;;  %v2035_v10 = vpop.permute.xlu1 %843 }
 0x193   : > { %1469 = vperm.xlu0 %1702, %v448_v29  }
 0x195   : > { %1437 = vperm.xlu1 %1698, %v448_v29  }
 0x196   : > { %v2037_v33 = vpop.permute.xlu1 %1003 }
 0x199   : > { %1700 = vset.pattern.permute.xlu1 %v1735_v7 }
 0x19a   : > { %1453 = vperm.xlu1 %1700, %v448_v29  }
 0x19e   : > { %1701 = vset.pattern.permute.xlu1 %v1738_v11 }
 0x19f   : > { %1178 = vperm.xlu1 %1701, %v445_v28  }
 0x1c3   : > { %v899_v7 = vpop.xlane.xlu1 %898 }
 0x1c4   : > { %v900_v34 = vmul.f32 0.00390625, %v899_v7 }
 0x1c6   : > { %v901_v11 = vadd.f32 1e-05, %v900_v34 }
 0x1c7   : > { %v2043_v36 = vpop.permute.xlu1 %1051 }
 0x1c8   : > { %1703 = vrsqrt.f32 %v901_v11 }
 0x1cb   : > { %v1202_v39 = vpop.permute.xlu1 %1201 }
 0x1d0   : > { %v1210_v41 = vpop.permute.xlu1 %1209 }
 0x1d2   : > { %v1704_v42 = vpop.eup %1703 }
 0x1d3   : > { %v903_v44 = vmul.f32 %v1704_v42, %v1972_v60  ;;  %v904_v49 = vmul.f32 %v1704_v42, %v1975_v61 }
 0x1d5   : > { %v905_v50 = vrot.slane %v903_v44, 4  ;;  %v911_v51 = vrot.slane %v904_v49, 4  ;;  %v2051_v52 = vpop.permute.xlu1 %1226 }
 0x1d7   : > { %v906_v54 = vmax.f32 %v903_v44, %v905_v50  ;;  %v912_v55 = vmax.f32 %v904_v49, %v911_v51 }
 0x1d9   : > { %v907_v56 = vrot.slane %v906_v54, 2  ;;  %v913_v57 = vrot.slane %v912_v55, 2 }
 0x1da   : > { %v2055_v13 = vpop.permute.xlu1 %1240 }
 0x1db   : > { %v908_v58 = vmax.f32 %v906_v54, %v907_v56  ;;  %v914_v59 = vmax.f32 %v912_v55, %v913_v57 }
 0x1dc   : > { %v691_v12 = vpop.xlane.xlu0 %690 }
 0x1dd   : > { %v692_v62 = vmul.f32 0.00390625, %v691_v12  ;;  %v909_v63 = vrot.slane %v908_v58, 1  ;;  %v915_v60 = vrot.slane %v914_v59, 1 }
 0x1df   : > { %v693_v0 = vadd.f32 1e-05, %v692_v62  ;;  %v910_v61 = vmax.f32 %v908_v58, %v909_v63  ;;  %v916_v5 = vmax.f32 %v914_v59, %v915_v60  ;;  %v2057_v17 = vpop.permute.xlu1 %1272  ;;  %v1212_v58 = vmul.f32 %v1210_v41, %v1894_v45 }
 0x1e1   : > { %1705 = vrsqrt.f32 %v693_v0  ;;  %v917_v22 = vsub.f32 %v903_v44, %v910_v61  ;;  %v918_v27 = vsub.f32 %v904_v49, %v916_v5  ;;  %v1204_v44 = vmul.f32 %v1202_v39, %v1874_v31 }
 0x1e2   : > { %v1205_v49 = vmul.f32 %v1202_v39, %v1877_v32  ;;  %v1220_v31 = vmul.f32 %v2041_v35, %v1900_v47  ;;  %v1213_v32 = vmul.f32 %v1210_v41, %v1897_v46  ;;  %v1221_v61 = vmul.f32 %v2041_v35, %v1903_v48 }
 0x1e3   : > { %v919_v28 = vmul.f32 1.442695, %v917_v22  ;;  %v921_v29 = vmul.f32 1.442695, %v918_v27 }
 0x1e4   : > { %v2059_v21 = vpop.permute.xlu0 %1304  ;;  %v2061_v7 = vpop.permute.xlu1 %1288 }
 0x1e5   : > { %1707 = vpow2.f32 %v919_v28 }
 0x1e6   : > { %1709 = vpow2.f32 %v921_v29 }
 0x1e9   : > { %v2063_v34 = vpop.permute.xlu0 %941  ;;  %v2065_v42 = vpop.permute.xlu1 %1320 }
 0x1eb   : > { %v1706_v11 = vpop.eup %1705 }
 0x1ec   : > { %v695_v50 = vmul.f32 %v1706_v11, %v1983_v16  ;;  %v696_v51 = vmul.f32 %v1706_v11, %v1985_v20 }
 0x1ed   : > { %v1196_v54 = vpop.permute.xlu0 %1195 }
 0x1ee   : > { %v697_v55 = vrot.slane %v695_v50, 4  ;;  %v703_v56 = vrot.slane %v696_v51, 4  ;;  %v1198_v57 = vmul.f32 %v1196_v54, %v1884_v37  ;;  %v1199_v12 = vmul.f32 %v1196_v54, %v1887_v38  ;;  %v2079_v20 = vpop.permute.xlu1 %1336 }
 0x1ef   : > { %v2074_v16 = vpop.eup %1707 }
 0x1f0   : > { %v698_v59 = vmax.f32 %v695_v50, %v697_v55  ;;  %v704_v62 = vmax.f32 %v696_v51, %v703_v56  ;;  %v1206_v63 = vadd.f32 %v1204_v44, %v1198_v57  ;;  %v1207_v60 = vadd.f32 %v1205_v49, %v1199_v12  ;;  %v2081_v39 = vpop.eup %1709 }
 0x1f1   : > { %v923_v37 = vrot.slane %v2074_v16, 4  ;;  %v929_v5 = vrot.slane %v2081_v39, 4 }
 0x1f2   : > { %v699_v38 = vrot.slane %v698_v59, 2  ;;  %v705_v0 = vrot.slane %v704_v62, 2  ;;  %v1214_v45 = vadd.f32 %v1212_v58, %v1206_v63  ;;  %v1215_v22 = vadd.f32 %v1213_v32, %v1207_v60 }
 0x1f3   : > { %v924_v27 = vadd.f32 %v2074_v16, %v923_v37  ;;  %v930_v41 = vadd.f32 %v2081_v39, %v929_v5  ;;  %v2101_v57 = vpop.permute.xlu1 %1082 }
 0x1f4   : > { %v700_v47 = vmax.f32 %v698_v59, %v699_v38  ;;  %v706_v28 = vmax.f32 %v704_v62, %v705_v0  ;;  %v2088_v46 = vadd.f32 %v1220_v31, %v1214_v45  ;;  %v2091_v29 = vadd.f32 %v1221_v61, %v1215_v22 }
 0x1f5   : > { %v925_v11 = vrot.slane %v924_v27, 2  ;;  %v931_v48 = vrot.slane %v930_v41, 2 }
 0x1f6   : > { %v701_v44 = vrot.slane %v700_v47, 1  ;;  %v707_v49 = vrot.slane %v706_v28, 1  ;;  %v1232_v54 = vrot.slane %v2088_v46, %v1857_v18  ;;  %v1236_v35 = vrot.slane %v2091_v29, %v1857_v18 }
 0x1f7   : > { %v1246_v55 = vrot.slane %v2088_v46, %v1853_v14  ;;  %v1250_v56 = vrot.slane %v2091_v29, %v1853_v14  ;;  %v926_v12 = vadd.f32 %v925_v11, %v924_v27  ;;  %v932_v63 = vadd.f32 %v931_v48, %v930_v41 }
 0x1f8   : > { %v702_v58 = vmax.f32 %v700_v47, %v701_v44  ;;  %v708_v59 = vmax.f32 %v706_v28, %v707_v49  ;;  %v1237_v62 = vmul.f32 %v1232_v54, %v2051_v52  ;;  %v1238_v60 = vmul.f32 %v1236_v35, %v2051_v52  ;;  %v2117_v44 = vpop.permute.xlu1 %1359 }
 0x1f9   : > { %v1251_v31 = vmul.f32 %v1246_v55, %v2055_v13  ;;  %v1252_v32 = vmul.f32 %v1250_v56, %v2055_v13  ;;  %v927_v37 = vrot.slane %v926_v12, 1  ;;  %v1262_v45 = vrot.slane %v2088_v46, %v1863_v23 }
 0x1fa   : > { %v709_v38 = vsub.f32 %v695_v50, %v702_v58  ;;  %v710_v0 = vsub.f32 %v696_v51, %v708_v59  ;;  %v933_v61 = vrot.slane %v932_v63, 1  ;;  %v1266_v27 = vrot.slane %v2091_v29, %v1863_v23 }
 0x1fb   : > { %v1253_v5 = vadd.f32 %v1251_v31, %v1237_v62  ;;  %v1254_v22 = vadd.f32 %v1252_v32, %v1238_v60  ;;  %v928_v47 = vadd.f32 %v927_v37, %v926_v12  ;;  %v1267_v52 = vmul.f32 %v1262_v45, %v2047_v43  ;;  %v2131_v60 = vpop.permute.xlu0 %1068 }
 0x1fc   : > { %v711_v28 = vmul.f32 1.442695, %v709_v38  ;;  %v713_v41 = vmul.f32 1.442695, %v710_v0  ;;  %v934_v11 = vadd.f32 %v933_v61, %v932_v63  ;;  %v1268_v13 = vmul.f32 %v1266_v27, %v2047_v43 }
 0x1fd   : > { %v1278_v50 = vrot.slane %v2088_v46, %v1867_v25  ;;  %v1282_v51 = vrot.slane %v2091_v29, %v1867_v25  ;;  %1711 = vrcp.f32 %v928_v47  ;;  %v1269_v49 = vadd.f32 %v1267_v52, %v1253_v5  ;;  %v2143_v61 = vpop.permute.xlu1 %1098 }
 0x1fe   : > { %v1294_v54 = vrot.slane %v2088_v46, %v1859_v19  ;;  %v1298_v48 = vrot.slane %v2091_v29, %v1859_v19  ;;  %1713 = vrcp.f32 %v934_v11  ;;  %v1270_v35 = vadd.f32 %v1268_v13, %v1254_v22 }
 0x1ff   : > { %v1283_v43 = vmul.f32 %v1278_v50, %v2057_v17  ;;  %v1284_v55 = vmul.f32 %v1282_v51, %v2057_v17  ;;  %1715 = vpow2.f32 %v711_v28  ;;  %v1310_v58 = vrot.slane %v2088_v46, %v1855_v15  ;;  %v2149_v11 = vpop.permute.xlu0 %747 }
 0x200   : > { %v1299_v56 = vmul.f32 %v1294_v54, %v2061_v7  ;;  %v1300_v12 = vmul.f32 %v1298_v48, %v2061_v7  ;;  %1717 = vpow2.f32 %v713_v41  ;;  %v1314_v63 = vrot.slane %v2091_v29, %v1855_v15 }
 0x201   : > { %v1285_v59 = vadd.f32 %v1283_v43, %v1269_v49  ;;  %v1286_v62 = vadd.f32 %v1284_v55, %v1270_v35  ;;  %v1315_v31 = vmul.f32 %v1310_v58, %v2059_v21  ;;  %v1326_v17 = vrot.slane %v2088_v46, %v1865_v24  ;;  %v2154_v49 = vpop.permute.xlu1 %1389 }
 0x202   : > { %v1330_v32 = vrot.slane %v2091_v29, %v1865_v24  ;;  %v1342_v7 = vrot.slane %v2088_v46, %v1869_v26  ;;  %v1316_v0 = vmul.f32 %v1314_v63, %v2059_v21  ;;  %v1346_v45 = vrot.slane %v2091_v29, %v1869_v26 }
 0x203   : > { %v1301_v37 = vadd.f32 %v1299_v56, %v1285_v59  ;;  %v1302_v38 = vadd.f32 %v1300_v12, %v1286_v62  ;;  %v1331_v27 = vmul.f32 %v1326_v17, %v2065_v42  ;;  %v956_v12 = vpop.permute.xlu0 %955 }
 0x204   : > { %v1332_v47 = vmul.f32 %v1330_v32, %v2065_v42  ;;  %v1347_v52 = vmul.f32 %v1342_v7, %v2079_v20  ;;  %v1348_v46 = vmul.f32 %v1346_v45, %v2079_v20 }
 0x205   : > { %v1317_v5 = vadd.f32 %v1315_v31, %v1301_v37  ;;  %v1318_v22 = vadd.f32 %v1316_v0, %v1302_v38 }
 0x206   : > { %v2184_v37 = vpop.permute.xlu1 %1405 }
 0x207   : > { %v1333_v28 = vadd.f32 %v1331_v27, %v1317_v5  ;;  %v1334_v41 = vadd.f32 %v1332_v47, %v1318_v22  ;;  %v1712_v21 = vpop.eup %1711 }
 0x208   : > { %v1714_v13 = vpop.eup %1713  ;;  %v2152_v29 = vmul.f32 %v1712_v21, %v2074_v16 }
 0x209   : > { %v1349_v50 = vadd.f32 %v1347_v52, %v1333_v28  ;;  %v1350_v51 = vadd.f32 %v1348_v46, %v1334_v41  ;;  %v2156_v54 = vpop.eup %1715  ;;  %v2159_v42 = vmul.f32 %v1714_v13, %v2081_v39 }
 0x20a   : > { %v2161_v48 = vpop.eup %1717  ;;  %v1057_v20 = vrot.slane %v2152_v29, %v1869_v26  ;;  %v715_v35 = vrot.slane %v2156_v54, 4  ;;  %v947_v16 = vrot.slane %v2152_v29, %v1857_v18  ;;  %v977_v5 = vrot.slane %v2152_v29, %v1863_v23 }
 0x20b   : > { %v1061_v43 = vrot.slane %v2159_v42, %v1869_v26  ;;  %v721_v55 = vrot.slane %v2161_v48, 4  ;;  %vm1351_vm0 = vcmp.gt.f32.partialorder %v1349_v50, 0.0  ;;  %vm1352_vm1 = vcmp.gt.f32.partialorder %v1350_v51, 0.0 }
 0x20c   : > { %v716_v56 = vadd.f32 %v2156_v54, %v715_v35  ;;  %v1353_v39 = vmul.f32 0.01, %v1349_v50  ;;  %v2173_v58 = vmul.f32 %v1057_v20, %v2043_v36  ;;  %v951_v62 = vrot.slane %v2159_v42, %v1857_v18  ;;  %v1374_v20 = vpop.permute.xlu0 %1373 }
 0x20d   : > { %v722_v59 = vadd.f32 %v2161_v48, %v721_v55  ;;  %v1354_v63 = vmul.f32 0.01, %v1350_v51  ;;  %v2179_v31 = vmul.f32 %v1061_v43, %v2043_v36  ;;  %v952_v32 = vmul.f32 %v947_v16, %v2063_v34 }
 0x20e   : > { %v717_v17 = vrot.slane %v716_v56, 2  ;;  %v2182_v7 = vsel %vm1351_vm0, %v1349_v50, %v1353_v39  ;;  %v981_v27 = vrot.slane %v2159_v42, %v1863_v23  ;;  %v993_v47 = vrot.slane %v2152_v29, %v1867_v25 }
 0x20f   : > { %v723_v38 = vrot.slane %v722_v59, 2  ;;  %v2186_v0 = vsel %vm1352_vm1, %v1350_v51, %v1354_v63  ;;  %v1365_v45 = vrot.slane %v2182_v7, %v1857_v18  ;;  %v953_v41 = vmul.f32 %v951_v62, %v2063_v34  ;;  %v2216_v62 = vpop.permute.xlu1 %1130 }
 0x210   : > { %v718_v22 = vadd.f32 %v717_v17, %v716_v56  ;;  %v1369_v36 = vrot.slane %v2186_v0, %v1857_v18  ;;  %v961_v52 = vrot.slane %v2152_v29, %v1853_v14  ;;  %v997_v46 = vrot.slane %v2159_v42, %v1867_v25 }
 0x211   : > { %v724_v28 = vadd.f32 %v723_v38, %v722_v59  ;;  %v1370_v13 = vmul.f32 %v1365_v45, %v2117_v44  ;;  %v965_v50 = vrot.slane %v2159_v42, %v1853_v14  ;;  %v982_v51 = vmul.f32 %v977_v5, %v2045_v40 }
 0x212   : > { %v719_v21 = vrot.slane %v718_v22, 1  ;;  %v1371_v16 = vmul.f32 %v1369_v36, %v2117_v44  ;;  %v1009_v34 = vrot.slane %v2152_v29, %v1859_v19  ;;  %v1013_v43 = vrot.slane %v2159_v42, %v1859_v19 }
 0x213   : > { %v725_v35 = vrot.slane %v724_v28, 1  ;;  %v983_v56 = vmul.f32 %v981_v27, %v2045_v40  ;;  %v998_v39 = vmul.f32 %v993_v47, %v2039_v30  ;;  %v1025_v59 = vrot.slane %v2152_v29, %v1855_v15 }
 0x214   : > { %v720_v55 = vadd.f32 %v719_v21, %v718_v22  ;;  %v999_v17 = vmul.f32 %v997_v46, %v2039_v30  ;;  %v1029_v44 = vrot.slane %v2159_v42, %v1855_v15  ;;  %v1041_v38 = vrot.slane %v2152_v29, %v1865_v24 }
 0x215   : > { %v726_v63 = vadd.f32 %v725_v35, %v724_v28  ;;  %v1014_v45 = vmul.f32 %v1009_v34, %v2037_v33  ;;  %v1015_v40 = vmul.f32 %v1013_v43, %v2037_v33  ;;  %v1045_v5 = vrot.slane %v2159_v42, %v1865_v24  ;;  %v2236_v28 = vpop.permute.xlu0 %1114  ;;  %v2246_v43 = vpop.permute.xlu1 %1146 }
 0x216   : > { %1719 = vrcp.f32 %v720_v55  ;;  %v1030_v22 = vmul.f32 %v1025_v59, %v2053_v53  ;;  %v966_v36 = vmul.f32 %v961_v52, %v956_v12  ;;  %v967_v27 = vmul.f32 %v965_v50, %v956_v12 }
 0x217   : > { %1721 = vrcp.f32 %v726_v63  ;;  %v1379_v30 = vrot.slane %v2182_v7, %v1853_v14  ;;  %v1383_v47 = vrot.slane %v2186_v0, %v1853_v14  ;;  %v1395_v29 = vrot.slane %v2182_v7, %v1863_v23 }
 0x218   : > { %v1399_v33 = vrot.slane %v2186_v0, %v1863_v23  ;;  %v1031_v42 = vmul.f32 %v1029_v44, %v2053_v53  ;;  %v968_v46 = vadd.f32 %v966_v36, %v952_v32  ;;  %v969_v21 = vadd.f32 %v967_v27, %v953_v41 }
 0x219   : > { %v1411_v12 = vrot.slane %v2182_v7, %v1867_v25  ;;  %v2242_v52 = vmul.f32 %v1041_v38, %v1981_v1  ;;  %v1384_v50 = vmul.f32 %v1379_v30, %v1374_v20  ;;  %v1385_v35 = vmul.f32 %v1383_v47, %v1374_v20 }
 0x21a   : > { %v1415_v34 = vrot.slane %v2186_v0, %v1867_v25  ;;  %v984_v55 = vadd.f32 %v982_v51, %v968_v46  ;;  %v985_v59 = vadd.f32 %v983_v56, %v969_v21  ;;  %v1400_v63 = vmul.f32 %v1395_v29, %v2154_v49  ;;  %v1438_v21 = vpop.permute.xlu1 %1437 }
 0x21b   : > { %v1401_v53 = vmul.f32 %v1399_v33, %v2154_v49  ;;  %v1386_v32 = vadd.f32 %v1384_v50, %v1370_v13  ;;  %v1387_v41 = vadd.f32 %v1385_v35, %v1371_v16  ;;  %v1427_v44 = vrot.slane %v2182_v7, %v1859_v19  ;;  %v1422_v49 = vpop.permute.xlu0 %1421 }
 0x21c   : > { %v1431_v38 = vrot.slane %v2186_v0, %v1859_v19  ;;  %v2255_v20 = vmul.f32 %v1045_v5, %v1981_v1  ;;  %v1000_v36 = vadd.f32 %v998_v39, %v984_v55  ;;  %v1001_v27 = vadd.f32 %v999_v17, %v985_v59 }
 0x21d   : > { %v1416_v51 = vmul.f32 %v1411_v12, %v2184_v37  ;;  %v1402_v56 = vadd.f32 %v1400_v63, %v1386_v32  ;;  %v1403_v30 = vadd.f32 %v1401_v53, %v1387_v41  ;;  %v1417_v47 = vmul.f32 %v1415_v34, %v2184_v37 }
 0x21e   : > { %v1475_v13 = vrot.slane %v2182_v7, %v1869_v26  ;;  %v1016_v16 = vadd.f32 %v1014_v45, %v1000_v36  ;;  %v1017_v29 = vadd.f32 %v1015_v40, %v1001_v27  ;;  %v1432_v33 = vmul.f32 %v1427_v44, %v1422_v49 }
 0x21f   : > { %v1479_v46 = vrot.slane %v2186_v0, %v1869_v26  ;;  %v1418_v5 = vadd.f32 %v1416_v51, %v1402_v56  ;;  %v1419_v39 = vadd.f32 %v1417_v47, %v1403_v30  ;;  %v1433_v17 = vmul.f32 %v1431_v38, %v1422_v49 }
 0x220   : > { %v1720_v1 = vpop.eup %1719  ;;  %v1443_v12 = vrot.slane %v2182_v7, %v1855_v15  ;;  %v1032_v35 = vadd.f32 %v1030_v22, %v1016_v16  ;;  %v1033_v34 = vadd.f32 %v1031_v42, %v1017_v29  ;;  %v1447_v45 = vrot.slane %v2186_v0, %v1855_v15 }
 0x221   : > { %v1722_v50 = vpop.eup %1721  ;;  %v728_v37 = vmul.f32 %v1720_v1, %v2156_v54  ;;  %v1434_v55 = vadd.f32 %v1432_v33, %v1418_v5  ;;  %v1435_v59 = vadd.f32 %v1433_v17, %v1419_v39  ;;  %v1459_v63 = vrot.slane %v2182_v7, %v1865_v24 }
 0x222   : > { %v730_v40 = vmul.f32 %v1722_v50, %v2161_v48  ;;  %v1448_v44 = vmul.f32 %v1443_v12, %v1438_v21 }
 0x223   : > { %v739_v53 = vrot.slane %v728_v37, %v1857_v18  ;;  %v769_v32 = vrot.slane %v728_v37, %v1863_v23  ;;  %v785_v41 = vrot.slane %v728_v37, %v1867_v25  ;;  %v753_v22 = vrot.slane %v728_v37, %v1853_v14 }
 0x224   : > { %v743_v54 = vrot.slane %v730_v40, %v1857_v18  ;;  %v773_v42 = vrot.slane %v730_v40, %v1863_v23  ;;  %v789_v48 = vrot.slane %v730_v40, %v1867_v25  ;;  %v757_v36 = vrot.slane %v730_v40, %v1853_v14 }
 0x225   : > { %v744_v38 = vmul.f32 %v739_v53, %v2021_v2  ;;  %v774_v27 = vmul.f32 %v769_v32, %v2024_v3  ;;  %v801_v51 = vrot.slane %v728_v37, %v1859_v19  ;;  %v790_v47 = vmul.f32 %v785_v41, %v2027_v4  ;;  %v1454_v53 = vpop.permute.xlu1 %1453 }
 0x226   : > { %v745_v56 = vmul.f32 %v743_v54, %v2021_v2  ;;  %v775_v30 = vmul.f32 %v773_v42, %v2024_v3  ;;  %v805_v49 = vrot.slane %v730_v40, %v1859_v19  ;;  %v791_v16 = vmul.f32 %v789_v48, %v2027_v4 }
 0x227   : > { %v817_v29 = vrot.slane %v728_v37, %v1855_v15  ;;  %v821_v33 = vrot.slane %v730_v40, %v1855_v15  ;;  %v833_v1 = vrot.slane %v728_v37, %v1865_v24  ;;  %v806_v5 = vmul.f32 %v801_v51, %v2029_v6 }
 0x228   : > { %v807_v39 = vmul.f32 %v805_v49, %v2029_v6  ;;  %v837_v2 = vrot.slane %v730_v40, %v1865_v24  ;;  %v849_v3 = vrot.slane %v728_v37, %v1869_v26  ;;  %v853_v4 = vrot.slane %v730_v40, %v1869_v26 }
 0x229   : > { %v822_v17 = vmul.f32 %v817_v29, %v2031_v8  ;;  %v823_v12 = vmul.f32 %v821_v33, %v2031_v8  ;;  %v758_v50 = vmul.f32 %v753_v22, %v2149_v11  ;;  %v838_v32 = vmul.f32 %v833_v1, %v2033_v9 }
 0x22a   : > { %v839_v41 = vmul.f32 %v837_v2, %v2033_v9  ;;  %v854_v54 = vmul.f32 %v849_v3, %v2035_v10  ;;  %v759_v6 = vmul.f32 %v757_v36, %v2149_v11  ;;  %v1048_v37 = vadd.f32 %v2242_v52, %v1032_v35 }
 0x22b   : > { %v760_v42 = vadd.f32 %v758_v50, %v744_v38  ;;  %v1049_v48 = vadd.f32 %v2255_v20, %v1033_v34  ;;  %v1449_v51 = vmul.f32 %v1447_v45, %v1438_v21  ;;  %v1450_v49 = vadd.f32 %v1448_v44, %v1434_v55 }
 0x22c   : > { %v761_v8 = vadd.f32 %v759_v6, %v745_v56  ;;  %v1463_v40 = vrot.slane %v2186_v0, %v1865_v24  ;;  %v1464_v22 = vmul.f32 %v1459_v63, %v1454_v53  ;;  %v855_v29 = vmul.f32 %v853_v4, %v2035_v10  ;;  %v1163_v63 = vpop.permute.xlu0 %1162 }
 0x22d   : > { %v776_v33 = vadd.f32 %v774_v27, %v760_v42  ;;  %v2308_v9 = vadd.f32 %v2173_v58, %v1048_v37  ;;  %v2311_v11 = vadd.f32 %v2179_v31, %v1049_v48  ;;  %v1451_v52 = vadd.f32 %v1449_v51, %v1435_v59 }
 0x22e   : > { %v777_v38 = vadd.f32 %v775_v30, %v761_v8  ;;  %v1465_v35 = vmul.f32 %v1463_v40, %v1454_v53  ;;  %v1466_v20 = vadd.f32 %v1464_v22, %v1450_v49 }
 0x22f   : > { %v792_v21 = vadd.f32 %v790_v47, %v776_v33  ;;  %v1074_v34 = vrot.slane %v2308_v9, %v1857_v18  ;;  %v1078_v45 = vrot.slane %v2311_v11, %v1857_v18  ;;  %v1088_v10 = vrot.slane %v2308_v9, %v1853_v14 }
 0x230   : > { %v793_v55 = vadd.f32 %v791_v16, %v777_v38  ;;  %v1092_v58 = vrot.slane %v2311_v11, %v1853_v14  ;;  %v1104_v31 = vrot.slane %v2308_v9, %v1863_v23  ;;  %v1108_v59 = vrot.slane %v2311_v11, %v1863_v23 }
 0x231   : > { %v808_v44 = vadd.f32 %v806_v5, %v792_v21  ;;  %v1079_v36 = vmul.f32 %v1074_v34, %v2131_v60  ;;  %v1080_v27 = vmul.f32 %v1078_v45, %v2131_v60  ;;  %v1093_v18 = vmul.f32 %v1088_v10, %v2101_v57  ;;  %v1179_v34 = vpop.permute.xlu1 %1178 }
 0x232   : > { %v809_v56 = vadd.f32 %v807_v39, %v793_v55  ;;  %v1094_v30 = vmul.f32 %v1092_v58, %v2101_v57  ;;  %v1109_v47 = vmul.f32 %v1104_v31, %v2143_v61  ;;  %v1110_v14 = vmul.f32 %v1108_v59, %v2143_v61 }
 0x233   : > { %v824_v16 = vadd.f32 %v822_v17, %v808_v44  ;;  %v1095_v1 = vadd.f32 %v1093_v18, %v1079_v36  ;;  %v1120_v23 = vrot.slane %v2308_v9, %v1867_v25  ;;  %v1124_v5 = vrot.slane %v2311_v11, %v1867_v25 }
 0x234   : > { %v825_v2 = vadd.f32 %v823_v12, %v809_v56  ;;  %v1096_v3 = vadd.f32 %v1094_v30, %v1080_v27  ;;  %v1136_v60 = vrot.slane %v2308_v9, %v1859_v19  ;;  %v1140_v57 = vrot.slane %v2311_v11, %v1859_v19  ;;  %v1470_v12 = vpop.permute.xlu0 %1469 }
 0x235   : > { %v840_v39 = vadd.f32 %v838_v32, %v824_v16  ;;  %v1111_v4 = vadd.f32 %v1109_v47, %v1095_v1  ;;  %v1125_v61 = vmul.f32 %v1120_v23, %v2236_v28  ;;  %v1126_v17 = vmul.f32 %v1124_v5, %v2236_v28 }
 0x236   : > { %v841_v50 = vadd.f32 %v839_v41, %v825_v2  ;;  %v1112_v53 = vadd.f32 %v1110_v14, %v1096_v3  ;;  %v1141_v6 = vmul.f32 %v1136_v60, %v2216_v62  ;;  %v1142_v25 = vmul.f32 %v1140_v57, %v2216_v62 }
 0x237   : > { %v856_v42 = vadd.f32 %v854_v54, %v840_v39  ;;  %v1127_v37 = vadd.f32 %v1125_v61, %v1111_v4  ;;  %v1168_v48 = vrot.slane %v2308_v9, %v1865_v24  ;;  %v1172_v19 = vrot.slane %v2311_v11, %v1865_v24 }
 0x238   : > { %v857_v32 = vadd.f32 %v855_v29, %v841_v50  ;;  %v1128_v51 = vadd.f32 %v1126_v17, %v1112_v53  ;;  %v1152_v28 = vrot.slane %v2308_v9, %v1855_v15  ;;  %v1156_v41 = vrot.slane %v2311_v11, %v1855_v15 }
 0x239   : > { %v1143_v62 = vadd.f32 %v1141_v6, %v1127_v37  ;;  %v1480_v54 = vmul.f32 %v1475_v13, %v1470_v12  ;;  %v1481_v24 = vmul.f32 %v1479_v46, %v1470_v12  ;;  %v1467_v8 = vadd.f32 %v1465_v35, %v1451_v52 }
 0x23a   : > { %v1486_v49 = vcombine.low %v856_v42, %v857_v32  ;;  %v1144_v40 = vadd.f32 %v1142_v25, %v1128_v51  ;;  %v1157_v22 = vmul.f32 %v1152_v28, %v2246_v43  ;;  %v1158_v15 = vmul.f32 %v1156_v41, %v2246_v43 }
 0x23b   : > { %v1173_v29 = vmul.f32 %v1168_v48, %v1163_v63  ;;  %v1174_v33 = vmul.f32 %v1172_v19, %v1163_v63  ;;  %v1482_v38 = vadd.f32 %v1480_v54, %v1466_v20  ;;  %v1483_v21 = vadd.f32 %v1481_v24, %v1467_v8 }
 0x23c   : > { %1488 = vst [vmem:[%s428_s30] sm:$0xff] %v1486_v49  ;;  %v1159_v7 = vadd.f32 %v1157_v22, %v1143_v62  ;;  %v1160_v13 = vadd.f32 %v1158_v15, %v1144_v40  ;;  %v1184_v0 = vrot.slane %v2308_v9, %v1869_v26  ;;  %v1188_v46 = vrot.slane %v2311_v11, %v1869_v26 }
 0x23d   : > { %v1496_v43 = vcombine.low %v1482_v38, %v1483_v21 }
 0x23e   : > { %v1175_v52 = vadd.f32 %v1173_v29, %v1159_v7  ;;  %v1176_v35 = vadd.f32 %v1174_v33, %v1160_v13  ;;  %v1189_v20 = vmul.f32 %v1184_v0, %v1179_v34  ;;  %v1190_v45 = vmul.f32 %v1188_v46, %v1179_v34 }
 0x23f   : > { %1498 = vst [vmem:[%s438_s16] sm:$0xff] %v1496_v43 }
 0x240   : > { %v1191_v10 = vadd.f32 %v1189_v20, %v1175_v52  ;;  %v1192_v55 = vadd.f32 %v1190_v45, %v1176_v35 }
 0x242   : > { %v1491_v58 = vcombine.low %v1191_v10, %v1192_v55 }
 0x244   : > { %1493 = vst [vmem:[%s433_s19] sm:$0xff] %v1491_v58 }
 0x245 PF: > { %s23_s21 = sadd.s32 1, %s1729_s21  }
 0x246   : > { %p20_p4 = scmp.ge.s32.totalorder %s23_s21, 4  }
 0x248   :  { %22 = sbr.rel (!%p20_p4) target bundleno = 1 (0x1), region = 114 }

// kernel: attention_block_forward.5
= control target key start
LH: loop header
LB: loop body
LE: loop exit
PB: predicated region body
PF: predicated region fallthrough
CT: control target
= control target key end

     0   :  { %s971_s30 = smov 0   ;;  %s1114_s0 = inlined_call_operand.vmem [shape: f32[2,8,256], index: 0, kind: input, shape index: {}]   ;;  %s1115_s1 = inlined_call_operand.vmem [shape: f32[8,8], index: 1, kind: input, shape index: {}]   ;;  %s1116_s2 = inlined_call_operand.vmem [shape: f32[8,1], index: 2, kind: input, shape index: {}]   ;;  %s1117_s3 = inlined_call_operand.vmem [shape: f32[8,256], index: 3, kind: input, shape index: {}]   ;;  %s1118_s4 = inlined_call_operand.vmem [shape: f32[8,256], index: 4, kind: input, shape index: {}]   ;;  %s1119_s5 = inlined_call_operand.vmem [shape: f32[8,8], index: 5, kind: input, shape index: {}]   ;;  %s1120_s6 = inlined_call_operand.vmem [shape: f32[8,1], index: 6, kind: input, shape index: {}]   ;;  %s1121_s7 = inlined_call_operand.vmem [shape: f32[4,8], index: 7, kind: input, shape index: {}]   ;;  %s1122_s8 = inlined_call_operand.vmem [shape: f32[4,1], index: 8, kind: input, shape index: {}]   ;;  %s1123_s9 = inlined_call_operand.vmem [shape: f32[2,4,256], index: 9, kind: output, shape index: {}]  }
   0x1 LB: > { %s844_s10 = sadd.s32 4294967295, %s911_s30   ;;  %p848_p0 = scmp.ge.s32.totalorder %s911_s30, 1  ;;  %s911_s30 = sphi %s971_s30, %s19_s30  }
   0x2   : > { %p287_p1 = scmp.lt.s32.totalorder %s911_s30, 3 }
   0x4   : > { %p288_p2 = pnand %p848_p0, %p287_p1 }
   0x5   : > { %v335_v0 = vld [vmem:[%s1115_s1] sm:$0xff] (!%p288_p2)  ;;  %v913_v1 = vmov (!%p288_p2), 2   ;;  %v914_v2 = vmov (!%p288_p2), 0   ;;  %v915_v3 = vmov (!%p288_p2), 3   ;;  %v916_v4 = vmov (!%p288_p2), 1   ;;  %p323_p3 = scmp.lt.s32.totalorder (!%p288_p2), %s844_s10, 1 }
   0x6   : > { %291 = sbr.rel (%p288_p2) target bundleno = 646 (0x286), region = 56  ;;  %879 = vset.pattern.permute.xlu1 (!%p288_p2), %v913_v1  ;;  %877 = vset.pattern.permute.xlu0 (!%p288_p2), %v914_v2  ;;  %v917_v5 = vmov (!%p288_p2), 4   ;;  %v918_v6 = vmov (!%p288_p2), 5   ;;  %v463_v7 = vld [vmem:[%s1116_s2] sm:$0xff] (!%p288_p2)  ;;  %v919_v8 = vmov (!%p288_p2), 6   ;;  %v920_v9 = vmov (!%p288_p2), 7  }
   0x7   : > { %368 = vperm.xlu1 (!%p288_p2), %879, %v335_v0   ;;  %338 = vperm.xlu0 (!%p288_p2), %877, %v335_v0   ;;  %v341_v10 = vlaneseq (!%p288_p2) }
   0x9   : > { %v342_v11 = vshrl.u32 (!%p288_p2), %v341_v10, 7 }
   0xb   : > { %880 = vset.pattern.permute.xlu1 (!%p288_p2), %v915_v3  ;;  %878 = vset.pattern.permute.xlu0 (!%p288_p2), %v916_v4  ;;  %v1004_v12 = vsub.s32 (!%p288_p2), 0, %v342_v11  ;;  %v1006_v13 = vsub.s32 (!%p288_p2), 1, %v342_v11  ;;  %v1008_v14 = vsub.s32 (!%p288_p2), 2, %v342_v11  ;;  %v1010_v19 = vsub.s32 (!%p288_p2), 3, %v342_v11 }
   0xc   : > { %384 = vperm.xlu1 (!%p288_p2), %880, %v335_v0   ;;  %352 = vperm.xlu0 (!%p288_p2), %878, %v335_v0   ;;  %v1016_v24 = vsub.s32 (!%p288_p2), 4, %v342_v11  ;;  %v1022_v31 = vsub.s32 (!%p288_p2), 5, %v342_v11  ;;  %v1028_v44 = vsub.s32 (!%p288_p2), 6, %v342_v11  ;;  %v1030_v55 = vsub.s32 (!%p288_p2), 7, %v342_v11 }
   0xd   : > { %s1125_s10 = smov (!%p323_p3, %s844_s10), 1 }
   0xe   : > { %s855_s15 = sshll.u32 %s1125_s10, 4 }
   0xf   : > { %s327_s18 = scalar_lea.vmem %s1114_s0, %s855_s15 }
  0x10   : > { %881 = vset.pattern.permute.xlu1 %v917_v5  ;;  %882 = vset.pattern.permute.xlu0 %v918_v6  ;;  %v333_v17 = vld [vmem:[%s327_s18] sm:$0xff]  ;;  %v334_v18 = vld [vmem:[%s327_s18 + $0x8] sm:$0xff]  ;;  %s856_s18 = sshll.u32 %s1125_s10, 3 }
  0x11   : > { %400 = vperm.xlu1 %881, %v335_v0   ;;  %416 = vperm.xlu0 %882, %v335_v0   ;;  %v344_v20 = vrot.slane %v333_v17, %v1004_v12  ;;  %v348_v21 = vrot.slane %v334_v18, %v1004_v12  ;;  %v358_v22 = vrot.slane %v333_v17, %v1006_v13  ;;  %s332_s21 = scalar_lea.vmem %s1123_s9, %s856_s18 }
  0x12   : > { %v362_v23 = vrot.slane %v334_v18, %v1006_v13  ;;  %v374_v25 = vrot.slane %v333_v17, %v1008_v14  ;;  %v378_v26 = vrot.slane %v334_v18, %v1008_v14  ;;  %v390_v28 = vrot.slane %v333_v17, %v1010_v19 }
  0x13   : > { %v394_v29 = vrot.slane %v334_v18, %v1010_v19  ;;  %v406_v36 = vrot.slane %v333_v17, %v1016_v24  ;;  %v410_v37 = vrot.slane %v334_v18, %v1016_v24  ;;  %v422_v42 = vrot.slane %v333_v17, %v1022_v31 }
  0x14   : > { %v426_v43 = vrot.slane %v334_v18, %v1022_v31  ;;  %v438_v58 = vrot.slane %v333_v17, %v1028_v44  ;;  %v442_v59 = vrot.slane %v334_v18, %v1028_v44  ;;  %v454_v63 = vrot.slane %v333_v17, %v1030_v55  ;;  %v512_v17 = vld [vmem:[%s1119_s5] sm:$0xff] }
  0x15   : > { %883 = vset.pattern.permute.xlu1 %v919_v8  ;;  %885 = vset.pattern.permute.xlu0 %v914_v2 }
  0x16   : > { %432 = vperm.xlu1 %883, %v335_v0   ;;  %466 = vperm.xlu0 %885, %v463_v7  }
  0x1a   : > { %884 = vset.pattern.permute.xlu1 %v920_v9  ;;  %887 = vset.pattern.permute.xlu0 %v916_v4 }
  0x1b   : > { %448 = vperm.xlu1 %884, %v335_v0   ;;  %v458_v0 = vrot.slane %v334_v18, %v1030_v55  ;;  %v640_v18 = vld [vmem:[%s1120_s6] sm:$0xff] }
  0x1f   : > { %886 = vset.pattern.permute.xlu1 %v914_v2 }
  0x86   : > { %v369_v15 = vpop.permute.xlu1 %368  ;;  %v339_v16 = vpop.permute.xlu0 %338 }
  0x87   : > { %v349_v32 = vmul.f32 %v344_v20, %v339_v16  ;;  %v350_v33 = vmul.f32 %v348_v21, %v339_v16  ;;  %v379_v38 = vmul.f32 %v374_v25, %v369_v15  ;;  %v380_v39 = vmul.f32 %v378_v26, %v369_v15 }
  0x8b   : > { %v385_v27 = vpop.permute.xlu1 %384  ;;  %v353_v30 = vpop.permute.xlu0 %352 }
  0x8c   : > { %v363_v34 = vmul.f32 %v358_v22, %v353_v30  ;;  %v364_v35 = vmul.f32 %v362_v23, %v353_v30  ;;  %v395_v45 = vmul.f32 %v390_v28, %v385_v27  ;;  %v396_v46 = vmul.f32 %v394_v29, %v385_v27  ;;  %v648_v30 = vld [vmem:[%s1121_s7] sm:$0xf] }
  0x8e   : > { %v365_v40 = vadd.f32 %v363_v34, %v349_v32  ;;  %v366_v41 = vadd.f32 %v364_v35, %v350_v33 }
  0x90   : > { %v381_v47 = vadd.f32 %v379_v38, %v365_v40  ;;  %v382_v48 = vadd.f32 %v380_v39, %v366_v41  ;;  %v401_v49 = vpop.permute.xlu1 %400  ;;  %v417_v50 = vpop.permute.xlu0 %416 }
  0x91   : > { %v411_v51 = vmul.f32 %v406_v36, %v401_v49  ;;  %v412_v52 = vmul.f32 %v410_v37, %v401_v49  ;;  %v427_v56 = vmul.f32 %v422_v42, %v417_v50  ;;  %v428_v57 = vmul.f32 %v426_v43, %v417_v50  ;;  %v776_v36 = vld [vmem:[%s1122_s8] sm:$0xf] }
  0x92   : > { %v397_v53 = vadd.f32 %v395_v45, %v381_v47  ;;  %v398_v54 = vadd.f32 %v396_v46, %v382_v48 }
  0x94   : > { %v413_v60 = vadd.f32 %v411_v51, %v397_v53  ;;  %v414_v61 = vadd.f32 %v412_v52, %v398_v54 }
  0x95   : > { %v433_v62 = vpop.permute.xlu1 %432  ;;  %v467_v23 = vpop.permute.xlu0 %466 }
  0x96   : > { %v429_v4 = vadd.f32 %v427_v56, %v413_v60  ;;  %v430_v7 = vadd.f32 %v428_v57, %v414_v61  ;;  %v443_v10 = vmul.f32 %v438_v58, %v433_v62  ;;  %v444_v15 = vmul.f32 %v442_v59, %v433_v62  ;;  %v505_v59 = vld [vmem:[%s1117_s3 + $0x8] sm:$0xff] }
  0x98   : > { %v445_v11 = vadd.f32 %v443_v10, %v429_v4  ;;  %v446_v20 = vadd.f32 %v444_v15, %v430_v7  ;;  %v508_v4 = vld [vmem:[%s1118_s4] sm:$0xff]  ;;  %v509_v7 = vld [vmem:[%s1118_s4 + $0x8] sm:$0xff] }
  0x9a   : > { %v449_v16 = vpop.permute.xlu1 %448 }
  0x9b   : > { %v459_v21 = vmul.f32 %v454_v63, %v449_v16  ;;  %v460_v22 = vmul.f32 %v458_v0, %v449_v16 }
  0x9d   : > { %v461_v25 = vadd.f32 %v459_v21, %v445_v11  ;;  %v462_v26 = vadd.f32 %v460_v22, %v446_v20 }
  0x9f   : > { %v469_v27 = vadd.f32 %v467_v23, %v461_v25  ;;  %v470_v28 = vadd.f32 %v467_v23, %v462_v26 }
  0xa1   : > { %v471_v29 = vadd.f32 %v470_v28, %v469_v27 }
  0xa3   : > { %472 = vadd.xlane.f32.xlu1 %v471_v29 }
  0xb4   : > { %515 = vperm.xlu1 %886, %v512_v17  }
  0xb8   : > { %888 = vset.pattern.permute.xlu1 %v913_v1 }
  0xb9   : > { %545 = vperm.xlu1 %888, %v512_v17  }
  0xbd   : > { %889 = vset.pattern.permute.xlu1 %v915_v3 }
  0xbe   : > { %561 = vperm.xlu1 %889, %v512_v17  }
  0xc2   : > { %890 = vset.pattern.permute.xlu1 %v917_v5 }
  0xc3   : > { %577 = vperm.xlu1 %890, %v512_v17  }
  0xc7   : > { %891 = vset.pattern.permute.xlu1 %v918_v6 }
  0xc8   : > { %593 = vperm.xlu1 %891, %v512_v17  }
  0xcc   : > { %892 = vset.pattern.permute.xlu1 %v919_v8 }
  0xcd   : > { %609 = vperm.xlu1 %892, %v512_v17  }
  0xd1   : > { %893 = vset.pattern.permute.xlu1 %v920_v9 }
  0xd2   : > { %625 = vperm.xlu1 %893, %v512_v17  }
  0xd6   : > { %894 = vset.pattern.permute.xlu1 %v914_v2 }
  0xd7   : > { %643 = vperm.xlu1 %894, %v640_v18  }
  0xdb   : > { %651 = vperm.xlu1 %894, %v648_v30  }
  0xdf   : > { %895 = vset.pattern.permute.xlu1 %v913_v1 }
  0xe0   : > { %681 = vperm.xlu1 %895, %v648_v30  }
  0xe4   : > { %897 = vset.pattern.permute.xlu1 %v917_v5 }
  0xe5   : > { %713 = vperm.xlu1 %897, %v648_v30  }
  0xe9   : > { %898 = vset.pattern.permute.xlu1 %v918_v6 }
  0xea   : > { %729 = vperm.xlu1 %898, %v648_v30  }
  0xee   : > { %900 = vset.pattern.permute.xlu1 %v920_v9 }
  0xef   : > { %761 = vperm.xlu1 %900, %v648_v30  }
  0xf3   : > { %901 = vset.pattern.permute.xlu1 %v914_v2 }
  0xf4   : > { %779 = vperm.xlu1 %901, %v776_v36  }
 0x130   : > { %v473_v32 = vpop.xlane.xlu1 %472 }
 0x131   : > { %v474_v33 = vrot.slane %v473_v32, 4 }
 0x133   : > { %v475_v34 = vadd.f32 %v474_v33, %v473_v32 }
 0x134   : > { %v516_v51 = vpop.permute.xlu1 %515 }
 0x135   : > { %v476_v35 = vrot.slane %v475_v34, 2 }
 0x137   : > { %v477_v37 = vadd.f32 %v476_v35, %v475_v34 }
 0x138   : > { %v546_v52 = vpop.permute.xlu1 %545 }
 0x139   : > { %v478_v1 = vrot.slane %v477_v37, 1 }
 0x13b   : > { %v479_v5 = vadd.f32 %v478_v1, %v477_v37 }
 0x13d   : > { %857 = vpush %v479_v5  ;;  %v562_v53 = vpop.permute.xlu1 %561 }
 0x142   : > { %v578_v57 = vpop.permute.xlu1 %577 }
 0x16e   : > { %s858_s27 = spop %857 }
 0x16f   : > { %v481_v6 = vstv %s858_s27 }
 0x170   : > { %v483_v38 = vmul.f32 0.00048828125, %v481_v6 }
 0x172   : > { %v484_v39 = vsub.f32 %v469_v27, %v483_v38  ;;  %v485_v40 = vsub.f32 %v470_v28, %v483_v38 }
 0x174   : > { %v486_v41 = vmul.f32 %v484_v39, %v484_v39  ;;  %v487_v9 = vmul.f32 %v485_v40, %v485_v40 }
 0x176   : > { %v488_v42 = vadd.f32 %v487_v9, %v486_v41 }
 0x178   : > { %489 = vadd.xlane.f32.xlu0 %v488_v42 }
 0x18e   : > { %529 = vperm.xlu0 %887, %v512_v17  }
 0x192   : > { %665 = vperm.xlu0 %887, %v648_v30  }
 0x196   : > { %896 = vset.pattern.permute.xlu0 %v915_v3 }
 0x197   : > { %697 = vperm.xlu0 %896, %v648_v30  }
 0x19b   : > { %899 = vset.pattern.permute.xlu0 %v919_v8  ;;  %v594_v8 = vpop.permute.xlu1 %593 }
 0x19c   : > { %745 = vperm.xlu0 %899, %v648_v30  }
 0x19f   : > { %v610_v62 = vpop.permute.xlu1 %609 }
 0x1a0   : > { %902 = vset.pattern.permute.xlu0 %v914_v2  ;;  %v504_v2 = vld [vmem:[%s1117_s3] sm:$0xff] }
 0x1a3   : > { %v626_v16 = vpop.permute.xlu1 %625 }
 0x1a7   : > { %v644_v29 = vpop.permute.xlu1 %643 }
 0x205   : > { %v490_v43 = vpop.xlane.xlu0 %489 }
 0x206   : > { %v491_v45 = vrot.slane %v490_v43, 4 }
 0x208   : > { %v492_v46 = vadd.f32 %v491_v45, %v490_v43  ;;  %v652_v43 = vpop.permute.xlu1 %651 }
 0x20a   : > { %v493_v47 = vrot.slane %v492_v46, 2 }
 0x20c   : > { %v494_v48 = vadd.f32 %v493_v47, %v492_v46 }
 0x20d   : > { %v530_v26 = vpop.permute.xlu0 %529 }
 0x20e   : > { %v495_v49 = vrot.slane %v494_v48, 1 }
 0x210   : > { %v496_v50 = vadd.f32 %v495_v49, %v494_v48 }
 0x212   : > { %859 = vpush %v496_v50 }
 0x243   : > { %s860_s28 = spop %859 }
 0x244   : > { %v498_v54 = vstv %s860_s28 }
 0x245   : > { %v499_v3 = vmul.f32 0.00048828125, %v498_v54 }
 0x247   : > { %v500_v56 = vadd.f32 1e-05, %v499_v3 }
 0x249   : > { %903 = vrsqrt.f32 %v500_v56 }
 0x253   : > { %v904_v58 = vpop.eup %903 }
 0x254   : > { %v502_v60 = vmul.f32 %v904_v58, %v484_v39  ;;  %v503_v61 = vmul.f32 %v904_v58, %v485_v40 }
 0x256   : > { %v506_v63 = vmul.f32 %v504_v2, %v502_v60  ;;  %v507_v0 = vmul.f32 %v505_v59, %v503_v61 }
 0x258   : > { %v510_v10 = vadd.f32 %v508_v4, %v506_v63  ;;  %v511_v15 = vadd.f32 %v509_v7, %v507_v0 }
 0x25a   : > { %v521_v11 = vrot.slane %v510_v10, %v1004_v12  ;;  %v525_v20 = vrot.slane %v511_v15, %v1004_v12  ;;  %v551_v21 = vrot.slane %v510_v10, %v1008_v14  ;;  %v555_v22 = vrot.slane %v511_v15, %v1008_v14 }
 0x25b   : > { %v535_v23 = vrot.slane %v510_v10, %v1006_v13  ;;  %v539_v25 = vrot.slane %v511_v15, %v1006_v13  ;;  %v567_v17 = vrot.slane %v510_v10, %v1010_v19  ;;  %v571_v18 = vrot.slane %v511_v15, %v1010_v19 }
 0x25c   : > { %v526_v27 = vmul.f32 %v521_v11, %v516_v51  ;;  %v527_v28 = vmul.f32 %v525_v20, %v516_v51  ;;  %v583_v33 = vrot.slane %v510_v10, %v1016_v24  ;;  %v587_v34 = vrot.slane %v511_v15, %v1016_v24 }
 0x25d   : > { %v540_v30 = vmul.f32 %v535_v23, %v530_v26  ;;  %v541_v32 = vmul.f32 %v539_v25, %v530_v26  ;;  %v556_v35 = vmul.f32 %v551_v21, %v546_v52  ;;  %v557_v36 = vmul.f32 %v555_v22, %v546_v52 }
 0x25e   : > { %v599_v5 = vrot.slane %v510_v10, %v1022_v31  ;;  %v603_v6 = vrot.slane %v511_v15, %v1022_v31  ;;  %v572_v38 = vmul.f32 %v567_v17, %v562_v53  ;;  %v573_v39 = vmul.f32 %v571_v18, %v562_v53 }
 0x25f   : > { %v542_v37 = vadd.f32 %v540_v30, %v526_v27  ;;  %v543_v1 = vadd.f32 %v541_v32, %v527_v28  ;;  %v588_v9 = vmul.f32 %v583_v33, %v578_v57  ;;  %v589_v42 = vmul.f32 %v587_v34, %v578_v57  ;;  %v682_v57 = vpop.permute.xlu1 %681 }
 0x260   : > { %v615_v45 = vrot.slane %v510_v10, %v1028_v44  ;;  %v619_v46 = vrot.slane %v511_v15, %v1028_v44  ;;  %v604_v49 = vmul.f32 %v599_v5, %v594_v8  ;;  %v605_v50 = vmul.f32 %v603_v6, %v594_v8  ;;  %v666_v8 = vpop.permute.xlu0 %665 }
 0x261   : > { %v558_v40 = vadd.f32 %v556_v35, %v542_v37  ;;  %v559_v41 = vadd.f32 %v557_v36, %v543_v1  ;;  %v631_v51 = vrot.slane %v510_v10, %v1030_v55  ;;  %v635_v52 = vrot.slane %v511_v15, %v1030_v55 }
 0x262   : > { %v620_v53 = vmul.f32 %v615_v45, %v610_v62  ;;  %v621_v56 = vmul.f32 %v619_v46, %v610_v62 }
 0x263   : > { %v574_v47 = vadd.f32 %v572_v38, %v558_v40  ;;  %v575_v48 = vadd.f32 %v573_v39, %v559_v41  ;;  %v636_v59 = vmul.f32 %v631_v51, %v626_v16  ;;  %v637_v60 = vmul.f32 %v635_v52, %v626_v16  ;;  %v714_v20 = vpop.permute.xlu1 %713 }
 0x264   : > { %v698_v30 = vpop.permute.xlu0 %697 }
 0x265   : > { %v590_v54 = vadd.f32 %v588_v9, %v574_v47  ;;  %v591_v3 = vadd.f32 %v589_v42, %v575_v48 }
 0x267   : > { %v606_v58 = vadd.f32 %v604_v49, %v590_v54  ;;  %v607_v2 = vadd.f32 %v605_v50, %v591_v3  ;;  %v730_v35 = vpop.permute.xlu1 %729 }
 0x269   : > { %v622_v61 = vadd.f32 %v620_v53, %v606_v58  ;;  %v623_v63 = vadd.f32 %v621_v56, %v607_v2 }
 0x26b   : > { %v638_v0 = vadd.f32 %v636_v59, %v622_v61  ;;  %v639_v4 = vadd.f32 %v637_v60, %v623_v63  ;;  %v762_v47 = vpop.permute.xlu1 %761 }
 0x26d   : > { %v646_v7 = vadd.f32 %v644_v29, %v638_v0  ;;  %v647_v11 = vadd.f32 %v644_v29, %v639_v4 }
 0x26f   : > { %v657_v10 = vrot.slane %v646_v7, %v1004_v12  ;;  %v661_v15 = vrot.slane %v647_v11, %v1004_v12  ;;  %v671_v21 = vrot.slane %v646_v7, %v1006_v13  ;;  %v675_v62 = vrot.slane %v647_v11, %v1006_v13 }
 0x270   : > { %v687_v22 = vrot.slane %v646_v7, %v1008_v14  ;;  %v691_v16 = vrot.slane %v647_v11, %v1008_v14  ;;  %v719_v17 = vrot.slane %v646_v7, %v1016_v24  ;;  %v723_v18 = vrot.slane %v647_v11, %v1016_v24 }
 0x271   : > { %v676_v23 = vmul.f32 %v671_v21, %v666_v8  ;;  %v677_v25 = vmul.f32 %v675_v62, %v666_v8  ;;  %v662_v26 = vmul.f32 %v657_v10, %v652_v43  ;;  %v663_v27 = vmul.f32 %v661_v15, %v652_v43 }
 0x272   : > { %v692_v28 = vmul.f32 %v687_v22, %v682_v57  ;;  %v693_v29 = vmul.f32 %v691_v16, %v682_v57  ;;  %v703_v33 = vrot.slane %v646_v7, %v1010_v19  ;;  %v707_v13 = vrot.slane %v647_v11, %v1010_v19  ;;  %v746_v19 = vpop.permute.xlu0 %745 }
 0x273   : > { %v678_v12 = vadd.f32 %v676_v23, %v662_v26  ;;  %v679_v32 = vadd.f32 %v677_v25, %v663_v27  ;;  %v735_v34 = vrot.slane %v646_v7, %v1022_v31  ;;  %v739_v14 = vrot.slane %v647_v11, %v1022_v31 }
 0x274   : > { %v708_v1 = vmul.f32 %v703_v33, %v698_v30  ;;  %v709_v5 = vmul.f32 %v707_v13, %v698_v30  ;;  %v724_v6 = vmul.f32 %v719_v17, %v714_v20  ;;  %v725_v38 = vmul.f32 %v723_v18, %v714_v20 }
 0x275   : > { %v694_v36 = vadd.f32 %v692_v28, %v678_v12  ;;  %v695_v37 = vadd.f32 %v693_v29, %v679_v32  ;;  %v751_v40 = vrot.slane %v646_v7, %v1028_v44  ;;  %v755_v41 = vrot.slane %v647_v11, %v1028_v44  ;;  %v780_v44 = vpop.permute.xlu1 %779 }
 0x276   : > { %v740_v9 = vmul.f32 %v735_v34, %v730_v35  ;;  %v741_v42 = vmul.f32 %v739_v14, %v730_v35  ;;  %v767_v31 = vrot.slane %v646_v7, %v1030_v55  ;;  %v771_v46 = vrot.slane %v647_v11, %v1030_v55 }
 0x277   : > { %v710_v39 = vadd.f32 %v708_v1, %v694_v36  ;;  %v711_v24 = vadd.f32 %v709_v5, %v695_v37  ;;  %v756_v50 = vmul.f32 %v751_v40, %v746_v19  ;;  %v757_v51 = vmul.f32 %v755_v41, %v746_v19 }
 0x278   : > { %v772_v3 = vmul.f32 %v767_v31, %v762_v47  ;;  %v773_v53 = vmul.f32 %v771_v46, %v762_v47 }
 0x279   : > { %v726_v43 = vadd.f32 %v724_v6, %v710_v39  ;;  %v727_v45 = vadd.f32 %v725_v38, %v711_v24 }
 0x27b   : > { %v742_v48 = vadd.f32 %v740_v9, %v726_v43  ;;  %v743_v49 = vadd.f32 %v741_v42, %v727_v45 }
 0x27d   : > { %v758_v52 = vadd.f32 %v756_v50, %v742_v48  ;;  %v759_v54 = vadd.f32 %v757_v51, %v743_v49 }
 0x27f   : > { %v774_v56 = vadd.f32 %v772_v3, %v758_v52  ;;  %v775_v58 = vadd.f32 %v773_v53, %v759_v54 }
 0x281   : > { %v782_v2 = vadd.f32 %v780_v44, %v774_v56  ;;  %v783_v57 = vadd.f32 %v780_v44, %v775_v58 }
 0x283   : > { %v786_v55 = vcombine.low %v782_v2, %v783_v57 }
 0x285   : > { %788 = vst [vmem:[%s332_s21] sm:$0xff] %v786_v55 }
 0x286 PF: > { %s19_s30 = sadd.s32 1, %s911_s30  }
 0x287   : > { %p16_p4 = scmp.ge.s32.totalorder %s19_s30, 4  }
 0x289   :  { %18 = sbr.rel (!%p16_p4) target bundleno = 1 (0x1), region = 86 }

// kernel: attention_block_forward.4
= control target key start
LH: loop header
LB: loop body
LE: loop exit
PB: predicated region body
PF: predicated region fallthrough
CT: control target
= control target key end

     0   :  { %s1511_s18 = smov 0   ;;  %s1693_s0 = inlined_call_operand.vmem [shape: f32[2,4,16,16], index: 0, kind: input, shape index: {}]   ;;  %s1694_s1 = inlined_call_operand.vmem [shape: f32[2,4,16,16], index: 1, kind: input, shape index: {}]   ;;  %s1695_s2 = inlined_call_operand.vmem [shape: f32[2,4,16,16], index: 2, kind: input, shape index: {}]   ;;  %s1696_s3 = inlined_call_operand.vmem [shape: f32[4,16,16], index: 3, kind: input, shape index: {}]   ;;  %s1697_s4 = inlined_call_operand.vmem [shape: f32[4,16,16], index: 4, kind: input, shape index: {}]   ;;  %s1698_s5 = inlined_call_operand.vmem [shape: f32[2,4,16,16], index: 5, kind: output, shape index: {}]  }
   0x1 LB: > { %s1256_s19 = sadd.s32 4294967295, %s1479_s18   ;;  %p1260_p0 = scmp.ge.s32.totalorder %s1479_s18, 1  ;;  %s1479_s18 = sphi %s1511_s18, %s15_s18  }
   0x2   : > { %p207_p1 = scmp.lt.s32.totalorder %s1479_s18, 3 }
   0x4   : > { %p208_p2 = pnand %p1260_p0, %p207_p1 }
   0x5   : > { %p245_p3 = scmp.lt.s32.totalorder (!%p208_p2), %s1256_s19, 1  ;;  %vm305_vm0 = vcmask (!%p208_p2), 130048  }
   0x6   : > { %211 = sbr.rel (%p208_p2) target bundleno = 1255 (0x4e7), region = 40  ;;  %vm1527_vm1 = vmpackc.low (!%p208_p2), %vm305_vm0, %vm305_vm0 }
   0xd   : > { %s1702_s19 = smov (!%p245_p3, %s1256_s19), 1 }
   0xe   : > { %s1519_s20 = sshll.u32 %s1702_s19, 6 }
   0xf   : > { %s254_s23 = scalar_lea.vmem %s1694_s1, %s1519_s20  ;;  %s1535_s26 = scalar_lea.vmem %s1693_s0, %s1519_s20 }
  0x10   : > { %v289_v1 = vld [vmem:[%s254_s23] sm:$0xff]  ;;  %v290_v2 = vld [vmem:[%s254_s23 + $0x8] sm:$0xff]  ;;  %v291_v3 = vld [vmem:[%s254_s23 + $0x10] sm:$0xff]  ;;  %s259_s15 = scalar_lea.vmem %s1695_s2, %s1519_s20  ;;  %s264_s19 = scalar_lea.vmem %s1698_s5, %s1519_s20 }
  0x11   : > { %v1387_v4 = vpack.c.bf16 %v290_v2, %v289_v1  ;;  %v292_v5 = vld [vmem:[%s254_s23 + $0x18] sm:$0xff]  ;;  %v281_v6 = vld [vmem:[%s1535_s26] sm:$0xff]  ;;  %v294_v9 = vld [vmem:[%s254_s23 + $0x28] sm:$0xff] }
  0x12   : > { %v1393_v7 = vpack.c.bf16 %v292_v5, %v291_v3  ;;  %1335 = vmatprep.mubr.msk.f32.mxu0 %vm305_vm0, %v281_v6  ;;  %v293_v8 = vld [vmem:[%s254_s23 + $0x20] sm:$0xff]  ;;  %v283_v10 = vld [vmem:[%s1535_s26 + $0x10] sm:$0xff]  ;;  %v296_v13 = vld [vmem:[%s254_s23 + $0x38] sm:$0xff] }
  0x13   : > { %1389 = vmatprep.subr.msk.bf16.mxu0 %vm1527_vm1, %v1387_v4  ;;  %v1399_v11 = vpack.c.bf16 %v294_v9, %v293_v8  ;;  %1342 = vmatprep.mubr.msk.f32.mxu1 %vm305_vm0, %v283_v10  ;;  %v295_v12 = vld [vmem:[%s254_s23 + $0x30] sm:$0xff]  ;;  %v282_v15 = vld [vmem:[%s1535_s26 + $0x8] sm:$0xff]  ;;  %v284_v16 = vld [vmem:[%s1535_s26 + $0x18] sm:$0xff] }
  0x14   : > { %1392 = vmatpush3.bf16.xpose.msk.msra.mxu0 %vm1527_vm1, %v1387_v4  ;;  %1395 = vmatprep.subr.msk.bf16.mxu1 %vm1527_vm1, %v1393_v7  ;;  %v1405_v14 = vpack.c.bf16 %v296_v13, %v295_v12  ;;  %v285_v17 = vld [vmem:[%s1535_s26 + $0x20] sm:$0xff]  ;;  %v287_v18 = vld [vmem:[%s1535_s26 + $0x30] sm:$0xff]  ;;  %v286_v19 = vld [vmem:[%s1535_s26 + $0x28] sm:$0xff] }
  0x15   : > { %1398 = vmatpush3.bf16.xpose.msk.msra.mxu1 %vm1527_vm1, %v1393_v7  ;;  %1401 = vmatprep.subr.msk.bf16.mxu0 %vm1527_vm1, %v1399_v11  ;;  %v288_v20 = vld [vmem:[%s1535_s26 + $0x38] sm:$0xff] }
  0x16   : > { %1407 = vmatprep.subr.msk.bf16.mxu1 %vm1527_vm1, %v1405_v14 }
  0x1b   : > { %1336 = vmatmul.mubr.msk.f32.vlgmr.msra.gmra.mrb[0].mxu0 %vm305_vm0, %v282_v15 }
  0x1c   : > { %1404 = vmatpush3.bf16.xpose.msk.msra.mxu0 %vm1527_vm1, %v1399_v11  ;;  %1343 = vmatmul.mubr.msk.f32.vlgmr.msra.gmra.mrb[0].mxu1 %vm305_vm0, %v284_v16 }
  0x1d   : > { %1410 = vmatpush3.bf16.xpose.msk.msra.mxu1 %vm1527_vm1, %v1405_v14  ;;  %1349 = vmatprep.mubr.msk.f32.mxu0 %vm305_vm0, %v285_v17 }
  0x1e   : > { %1356 = vmatprep.mubr.msk.f32.mxu1 %vm305_vm0, %v287_v18 }
  0x23   : > { %1350 = vmatmul.mubr.msk.f32.vlgmr.msra.gmra.mrb[2].mxu0 %vm305_vm0, %v286_v19 }
  0x24   : > { %1357 = vmatmul.mubr.msk.f32.vlgmr.msra.gmra.mrb[2].mxu1 %vm305_vm0, %v288_v20 }
  0xee   : > { %v1337_v21 = vpop.f32.mrb[0].mxu0 }
  0xef   : > { %v655_v22 = vmul.f32 0.0625, %v1337_v21  ;;  %v384_v23 = vpop.f32.mrb[1].mxu0  ;;  %v1344_v24 = vpop.f32.mrb[0].mxu1 }
  0xf0   : > { %v654_v25 = vmul.f32 0.0625, %v384_v23  ;;  %v471_v26 = vpop.f32.mrb[1].mxu1  ;;  %v657_v30 = vmul.f32 0.0625, %v1344_v24 }
  0xf1   : > { %v663_v27 = vsel %vm305_vm0, %v655_v22, 0.0  ;;  %v656_v28 = vmul.f32 0.0625, %v471_v26 }
  0xf2   : > { %v662_v29 = vsel %vm305_vm0, %v654_v25, 0.0  ;;  %v667_v34 = vsel %vm305_vm0, %v657_v30, 0.0 }
  0xf3   : > { %v664_v31 = vadd.f32 %v663_v27, %v662_v29  ;;  %v665_v32 = vsel %vm305_vm0, %v656_v28, 0.0 }
  0xf5   : > { %v666_v33 = vadd.f32 %v665_v32, %v664_v31 }
  0xf6   : > { %v1351_v35 = vpop.f32.mrb[2].mxu0 }
  0xf7   : > { %v558_v36 = vpop.f32.mrb[3].mxu0  ;;  %v1358_v37 = vpop.f32.mrb[2].mxu1  ;;  %v659_v38 = vmul.f32 0.0625, %v1351_v35  ;;  %v668_v41 = vadd.f32 %v667_v34, %v666_v33 }
  0xf8   : > { %v658_v39 = vmul.f32 0.0625, %v558_v36  ;;  %v645_v40 = vpop.f32.mrb[3].mxu1  ;;  %v661_v46 = vmul.f32 0.0625, %v1358_v37 }
  0xf9   : > { %v660_v42 = vmul.f32 0.0625, %v645_v40  ;;  %v671_v45 = vsel %vm305_vm0, %v659_v38, 0.0  ;;  %v265_v40 = vld [vmem:[%s1696_s3] sm:$0xff] }
  0xfa   : > { %v669_v43 = vsel %vm305_vm0, %v658_v39, 0.0  ;;  %v675_v50 = vsel %vm305_vm0, %v661_v46, 0.0 }
  0xfb   : > { %v670_v44 = vadd.f32 %v669_v43, %v668_v41  ;;  %v673_v47 = vsel %vm305_vm0, %v660_v42, 0.0  ;;  %v269_v41 = vld [vmem:[%s1696_s3 + $0x20] sm:$0xff] }
  0xfd   : > { %v672_v48 = vadd.f32 %v671_v45, %v670_v44 }
  0xff   : > { %v674_v49 = vadd.f32 %v673_v47, %v672_v48  ;;  %v274_v47 = vld [vmem:[%s1697_s4 + $0x8] sm:$0xff]  ;;  %v273_v48 = vld [vmem:[%s1697_s4] sm:$0xff] }
 0x101   : > { %v676_v51 = vadd.f32 %v675_v50, %v674_v49 }
 0x103   : > { %677 = vadd.xlane.f32.xlu0 %v676_v51 }
 0x190   : > { %v678_v52 = vpop.xlane.xlu0 %677 }
 0x191   : > { %v679_v53 = vrot.slane %v678_v52, 4 }
 0x193   : > { %v680_v54 = vadd.f32 %v679_v53, %v678_v52 }
 0x195   : > { %v681_v55 = vrot.slane %v680_v54, 2 }
 0x197   : > { %v682_v56 = vadd.f32 %v681_v55, %v680_v54  ;;  %v270_v55 = vld [vmem:[%s1696_s3 + $0x28] sm:$0xff] }
 0x199   : > { %v683_v57 = vrot.slane %v682_v56, 1 }
 0x19b   : > { %v684_v58 = vadd.f32 %v683_v57, %v682_v56  ;;  %v268_v56 = vld [vmem:[%s1696_s3 + $0x18] sm:$0xff]  ;;  %v277_v57 = vld [vmem:[%s1697_s4 + $0x20] sm:$0xff] }
 0x19d   : > { %1427 = vpush %v684_v58  ;;  %v275_v58 = vld [vmem:[%s1697_s4 + $0x10] sm:$0xff] }
 0x1ce   : > { %s1428_s27 = spop %1427 }
 0x1cf   : > { %v686_v59 = vstv %s1428_s27 }
 0x1d0   : > { %v688_v60 = vmul.f32 0.0009765625, %v686_v59 }
 0x1d2   : > { %v689_v61 = vsub.f32 %v654_v25, %v688_v60  ;;  %v690_v62 = vsub.f32 %v655_v22, %v688_v60  ;;  %v691_v63 = vsub.f32 %v656_v28, %v688_v60  ;;  %v692_v0 = vsub.f32 %v657_v30, %v688_v60 }
 0x1d3   : > { %v693_v1 = vsub.f32 %v658_v39, %v688_v60  ;;  %v694_v5 = vsub.f32 %v659_v38, %v688_v60  ;;  %v695_v10 = vsub.f32 %v660_v42, %v688_v60  ;;  %v1580_v14 = vsub.f32 %v661_v46, %v688_v60  ;;  %v266_v38 = vld [vmem:[%s1696_s3 + $0x8] sm:$0xff]  ;;  %v267_v42 = vld [vmem:[%s1696_s3 + $0x10] sm:$0xff] }
 0x1d4   : > { %v697_v2 = vmul.f32 %v689_v61, %v689_v61  ;;  %v698_v3 = vmul.f32 %v690_v62, %v690_v62  ;;  %v699_v4 = vmul.f32 %v691_v63, %v691_v63  ;;  %v700_v6 = vmul.f32 %v692_v0, %v692_v0 }
 0x1d5   : > { %v701_v11 = vmul.f32 %v693_v1, %v693_v1  ;;  %v702_v15 = vmul.f32 %v694_v5, %v694_v5  ;;  %v703_v18 = vmul.f32 %v695_v10, %v695_v10  ;;  %v704_v21 = vmul.f32 %v1580_v14, %v1580_v14 }
 0x1d6   : > { %v705_v7 = vsel %vm305_vm0, %v697_v2, 0.0  ;;  %v706_v8 = vsel %vm305_vm0, %v698_v3, 0.0  ;;  %v708_v12 = vsel %vm305_vm0, %v699_v4, 0.0  ;;  %v710_v16 = vsel %vm305_vm0, %v700_v6, 0.0  ;;  %v271_v4 = vld [vmem:[%s1696_s3 + $0x30] sm:$0xff]  ;;  %v276_v6 = vld [vmem:[%s1697_s4 + $0x18] sm:$0xff] }
 0x1d7   : > { %v707_v9 = vadd.f32 %v706_v8, %v705_v7  ;;  %v712_v19 = vsel %vm305_vm0, %v701_v11, 0.0  ;;  %v714_v22 = vsel %vm305_vm0, %v702_v15, 0.0  ;;  %v716_v24 = vsel %vm305_vm0, %v703_v18, 0.0  ;;  %v272_v15 = vld [vmem:[%s1696_s3 + $0x38] sm:$0xff] }
 0x1d8   : > { %v718_v26 = vsel %vm305_vm0, %v704_v21, 0.0 }
 0x1d9   : > { %v709_v13 = vadd.f32 %v708_v12, %v707_v9 }
 0x1db   : > { %v711_v17 = vadd.f32 %v710_v16, %v709_v13  ;;  %v279_v13 = vld [vmem:[%s1697_s4 + $0x30] sm:$0xff] }
 0x1dd   : > { %v713_v20 = vadd.f32 %v712_v19, %v711_v17  ;;  %v280_v19 = vld [vmem:[%s1697_s4 + $0x38] sm:$0xff] }
 0x1df   : > { %v715_v23 = vadd.f32 %v714_v22, %v713_v20 }
 0x1e1   : > { %v717_v25 = vadd.f32 %v716_v24, %v715_v23 }
 0x1e3   : > { %v719_v27 = vadd.f32 %v718_v26, %v717_v25 }
 0x1e5   : > { %720 = vadd.xlane.f32.xlu0 %v719_v27 }
 0x272   : > { %v721_v28 = vpop.xlane.xlu0 %720 }
 0x273   : > { %v722_v29 = vrot.slane %v721_v28, 4 }
 0x275   : > { %v723_v30 = vadd.f32 %v722_v29, %v721_v28 }
 0x277   : > { %v724_v31 = vrot.slane %v723_v30, 2 }
 0x279   : > { %v725_v32 = vadd.f32 %v724_v31, %v723_v30 }
 0x27b   : > { %v726_v33 = vrot.slane %v725_v32, 1 }
 0x27d   : > { %v727_v34 = vadd.f32 %v726_v33, %v725_v32 }
 0x27f   : > { %1429 = vpush %v727_v34 }
 0x2b0   : > { %s1430_s28 = spop %1429 }
 0x2b1   : > { %v729_v35 = vstv %s1430_s28 }
 0x2b2   : > { %v730_v36 = vmul.f32 0.0009765625, %v729_v35 }
 0x2b4   : > { %v731_v37 = vadd.f32 1e-05, %v730_v36 }
 0x2b6   : > { %1439 = vrsqrt.f32 %v731_v37 }
 0x2c0   : > { %v1440_v39 = vpop.eup %1439 }
 0x2c1   : > { %v734_v43 = vmul.f32 %v1440_v39, %v690_v62  ;;  %v733_v44 = vmul.f32 %v1440_v39, %v689_v61  ;;  %v737_v45 = vmul.f32 %v1440_v39, %v693_v1  ;;  %v735_v46 = vmul.f32 %v1440_v39, %v691_v63 }
 0x2c2   : > { %v738_v49 = vmul.f32 %v1440_v39, %v694_v5  ;;  %v736_v50 = vmul.f32 %v1440_v39, %v692_v0  ;;  %v739_v63 = vmul.f32 %v1440_v39, %v695_v10  ;;  %v278_v5 = vld [vmem:[%s1697_s4 + $0x28] sm:$0xff]  ;;  %v740_v8 = vmul.f32 %v1440_v39, %v1580_v14 }
 0x2c3   : > { %v742_v51 = vmul.f32 %v734_v43, %v266_v38  ;;  %v741_v52 = vmul.f32 %v733_v44, %v265_v40  ;;  %v745_v53 = vmul.f32 %v737_v45, %v269_v41  ;;  %v743_v54 = vmul.f32 %v735_v46, %v267_v42 }
 0x2c4   : > { %v746_v61 = vmul.f32 %v738_v49, %v270_v55  ;;  %v744_v62 = vmul.f32 %v736_v50, %v268_v56  ;;  %v747_v7 = vmul.f32 %v739_v63, %v271_v4  ;;  %v748_v18 = vmul.f32 %v740_v8, %v272_v15  ;;  %v297_v63 = vld [vmem:[%s259_s15] sm:$0xff]  ;;  %v303_v8 = vld [vmem:[%s259_s15 + $0x30] sm:$0xff] }
 0x2c5   : > { %v750_v59 = vadd.f32 %v742_v51, %v274_v47  ;;  %v749_v60 = vadd.f32 %v741_v52, %v273_v48  ;;  %v753_v2 = vadd.f32 %v745_v53, %v277_v57  ;;  %v751_v3 = vadd.f32 %v743_v54, %v275_v58 }
 0x2c6   : > { %v754_v11 = vadd.f32 %v746_v61, %v278_v5  ;;  %v752_v12 = vadd.f32 %v744_v62, %v276_v6  ;;  %v755_v17 = vadd.f32 %v747_v7, %v279_v13  ;;  %v756_v21 = vadd.f32 %v748_v18, %v280_v19  ;;  %v301_v5 = vld [vmem:[%s259_s15 + $0x20] sm:$0xff]  ;;  %v302_v6 = vld [vmem:[%s259_s15 + $0x28] sm:$0xff] }
 0x2c7   : > { %v760_v0 = vsel %vm305_vm0, %v750_v59, -inf  ;;  %v757_v1 = vsel %vm305_vm0, %v749_v60, -inf  ;;  %v769_v9 = vsel %vm305_vm0, %v753_v2, -inf  ;;  %v763_v10 = vsel %vm305_vm0, %v751_v3, -inf }
 0x2c8   : > { %761 = vmax.xlane.f32.xlu0 %v760_v0  ;;  %758 = vmax.xlane.f32.xlu1 %v757_v1  ;;  %v772_v16 = vsel %vm305_vm0, %v754_v11, -inf  ;;  %v766_v14 = vsel %vm305_vm0, %v752_v12, -inf  ;;  %v775_v20 = vsel %vm305_vm0, %v755_v17, -inf  ;;  %v778_v22 = vsel %vm305_vm0, %v756_v21, -inf  ;;  %v298_v0 = vld [vmem:[%s259_s15 + $0x8] sm:$0xff] }
 0x2c9   : > { %v1411_v1 = vpack.c.bf16 %v298_v0, %v297_v63  ;;  %v1419_v7 = vpack.c.bf16 %v302_v6, %v301_v5 }
 0x2cb   : > { %1412 = vmatprep.subr.bf16.mxu0 %v1411_v1 }
 0x2cc   : > { %770 = vmax.xlane.f32.xlu0 %v769_v9  ;;  %764 = vmax.xlane.f32.xlu1 %v763_v10  ;;  %v304_v9 = vld [vmem:[%s259_s15 + $0x38] sm:$0xff] }
 0x2cd   : > { %1414 = vmatpush3.bf16.msra.mxu0 %v1411_v1  ;;  %v1423_v10 = vpack.c.bf16 %v304_v9, %v303_v8 }
 0x2ce   : > { %1420 = vmatprep.subr.bf16.mxu0 %v1419_v7 }
 0x2d0   : > { %773 = vmax.xlane.f32.xlu0 %v772_v16  ;;  %767 = vmax.xlane.f32.xlu1 %v766_v14 }
 0x2d4   : > { %776 = vmax.xlane.f32.xlu1 %v775_v20 }
 0x2d8   : > { %779 = vmax.xlane.f32.xlu1 %v778_v22 }
 0x355   : > { %v762_v23 = vpop.xlane.xlu0 %761  ;;  %v759_v24 = vpop.xlane.xlu1 %758 }
 0x356   : > { %v782_v25 = vsub.f32 %v750_v59, %v762_v23  ;;  %v781_v26 = vsub.f32 %v749_v60, %v759_v24 }
 0x358   : > { %v789_v27 = vmul.f32 1.442695, %v781_v26  ;;  %v791_v28 = vmul.f32 1.442695, %v782_v25 }
 0x359   : > { %v771_v29 = vpop.xlane.xlu0 %770  ;;  %v765_v30 = vpop.xlane.xlu1 %764 }
 0x35a   : > { %v785_v31 = vsub.f32 %v753_v2, %v771_v29  ;;  %v783_v32 = vsub.f32 %v751_v3, %v765_v30  ;;  %1441 = vpow2.f32 %v789_v27  ;;  %v299_v2 = vld [vmem:[%s259_s15 + $0x10] sm:$0xff]  ;;  %v300_v3 = vld [vmem:[%s259_s15 + $0x18] sm:$0xff] }
 0x35b   : > { %1443 = vpow2.f32 %v791_v28  ;;  %v1415_v4 = vpack.c.bf16 %v300_v3, %v299_v2 }
 0x35c   : > { %v793_v33 = vmul.f32 1.442695, %v783_v32  ;;  %v797_v34 = vmul.f32 1.442695, %v785_v31 }
 0x35d   : > { %v774_v35 = vpop.xlane.xlu0 %773  ;;  %v768_v36 = vpop.xlane.xlu1 %767  ;;  %1416 = vmatprep.subr.bf16.mxu1 %v1415_v4 }
 0x35e   : > { %v786_v37 = vsub.f32 %v754_v11, %v774_v35  ;;  %v784_v38 = vsub.f32 %v752_v12, %v768_v36  ;;  %1445 = vpow2.f32 %v793_v33  ;;  %1418 = vmatpush3.bf16.msra.mxu1 %v1415_v4 }
 0x35f   : > { %1447 = vpow2.f32 %v797_v34  ;;  %1424 = vmatprep.subr.bf16.mxu1 %v1423_v10 }
 0x360   : > { %v795_v39 = vmul.f32 1.442695, %v784_v38  ;;  %v799_v40 = vmul.f32 1.442695, %v786_v37 }
 0x361   : > { %v777_v41 = vpop.xlane.xlu1 %776 }
 0x362   : > { %v787_v42 = vsub.f32 %v755_v17, %v777_v41  ;;  %1449 = vpow2.f32 %v795_v39 }
 0x363   : > { %1451 = vpow2.f32 %v799_v40 }
 0x364   : > { %v801_v43 = vmul.f32 1.442695, %v787_v42  ;;  %v1442_v44 = vpop.eup %1441 }
 0x365   : > { %v780_v45 = vpop.xlane.xlu1 %779  ;;  %v805_v47 = vsel %vm305_vm0, %v1442_v44, 0.0  ;;  %v1444_v48 = vpop.eup %1443 }
 0x366   : > { %1453 = vpow2.f32 %v801_v43  ;;  %v788_v46 = vsub.f32 %v756_v21, %v780_v45  ;;  %806 = vadd.xlane.f32.xlu0 %v805_v47  ;;  %v808_v51 = vsel %vm305_vm0, %v1444_v48, 0.0 }
 0x368   : > { %v803_v49 = vmul.f32 1.442695, %v788_v46  ;;  %v1446_v50 = vpop.eup %1445 }
 0x369   : > { %v811_v52 = vsel %vm305_vm0, %v1446_v50, 0.0  ;;  %v1649_v53 = vpop.eup %1447 }
 0x36a   : > { %1455 = vpow2.f32 %v803_v49  ;;  %809 = vadd.xlane.f32.xlu0 %v808_v51  ;;  %812 = vadd.xlane.f32.xlu1 %v811_v52  ;;  %v817_v55 = vsel %vm305_vm0, %v1649_v53, 0.0 }
 0x36c   : > { %v1450_v54 = vpop.eup %1449 }
 0x36d   : > { %v814_v56 = vsel %vm305_vm0, %v1450_v54, 0.0  ;;  %v1654_v57 = vpop.eup %1451 }
 0x36e   : > { %818 = vadd.xlane.f32.xlu0 %v817_v55  ;;  %815 = vadd.xlane.f32.xlu1 %v814_v56  ;;  %v820_v60 = vsel %vm305_vm0, %v1654_v57, 0.0 }
 0x370   : > { %v1656_v58 = vpop.eup %1453 }
 0x371   : > { %v823_v59 = vsel %vm305_vm0, %v1656_v58, 0.0 }
 0x372   : > { %821 = vadd.xlane.f32.xlu0 %v820_v60  ;;  %824 = vadd.xlane.f32.xlu1 %v823_v59 }
 0x374   : > { %v1456_v61 = vpop.eup %1455 }
 0x375   : > { %v826_v62 = vsel %vm305_vm0, %v1456_v61, 0.0 }
 0x376   : > { %827 = vadd.xlane.f32.xlu1 %v826_v62 }
 0x3f3   : > { %v807_v11 = vpop.xlane.xlu0 %806 }
 0x3f4   : > { %1457 = vrcp.f32 %v807_v11 }
 0x3f7   : > { %v810_v12 = vpop.xlane.xlu0 %809  ;;  %v813_v13 = vpop.xlane.xlu1 %812 }
 0x3f8   : > { %1459 = vrcp.f32 %v810_v12 }
 0x3f9   : > { %1461 = vrcp.f32 %v813_v13 }
 0x3fb   : > { %v819_v15 = vpop.xlane.xlu0 %818  ;;  %v816_v16 = vpop.xlane.xlu1 %815 }
 0x3fc   : > { %1463 = vrcp.f32 %v819_v15 }
 0x3fd   : > { %1465 = vrcp.f32 %v816_v16 }
 0x3fe   : > { %v1458_v14 = vpop.eup %1457 }
 0x3ff   : > { %v822_v17 = vpop.xlane.xlu0 %821  ;;  %v825_v18 = vpop.xlane.xlu1 %824  ;;  %v830_v19 = vmul.f32 %v1458_v14, %v1442_v44 }
 0x400   : > { %1467 = vrcp.f32 %v822_v17 }
 0x401   : > { %1469 = vrcp.f32 %v825_v18  ;;  %1363 = vmatprep.mubr.msk.f32.mxu0 %vm305_vm0, %v830_v19 }
 0x402   : > { %v1460_v20 = vpop.eup %1459 }
 0x403   : > { %v1462_v21 = vpop.eup %1461  ;;  %v832_v22 = vmul.f32 %v1460_v20, %v1444_v48  ;;  %v828_v23 = vpop.xlane.xlu1 %827 }
 0x404   : > { %1471 = vrcp.f32 %v828_v23  ;;  %v834_v24 = vmul.f32 %v1462_v21, %v1446_v50 }
 0x405   : > { %1364 = vmatmul.mubr.msk.f32.vlgmr.msra.gmra.mrb[4].mxu0 %vm305_vm0, %v832_v22 }
 0x406   : > { %v1464_v25 = vpop.eup %1463  ;;  %1370 = vmatprep.mubr.msk.f32.mxu1 %vm305_vm0, %v834_v24  ;;  %1422 = vmatpush3.bf16.msra.mxu0 %v1419_v7 }
 0x407   : > { %v1466_v26 = vpop.eup %1465  ;;  %v838_v27 = vmul.f32 %v1464_v25, %v1649_v53 }
 0x408   : > { %v836_v28 = vmul.f32 %v1466_v26, %v1450_v54 }
 0x409   : > { %1377 = vmatprep.mubr.msk.f32.mxu0 %vm305_vm0, %v838_v27 }
 0x40a   : > { %v1468_v29 = vpop.eup %1467  ;;  %1371 = vmatmul.mubr.msk.f32.vlgmr.msra.gmra.mrb[4].mxu1 %vm305_vm0, %v836_v28 }
 0x40b   : > { %v1470_v30 = vpop.eup %1469  ;;  %v840_v31 = vmul.f32 %v1468_v29, %v1654_v57  ;;  %1426 = vmatpush3.bf16.msra.mxu1 %v1423_v10 }
 0x40c   : > { %v842_v32 = vmul.f32 %v1470_v30, %v1656_v58 }
 0x40d   : > { %1378 = vmatmul.mubr.msk.f32.vlgmr.msra.gmra.mrb[6].mxu0 %vm305_vm0, %v840_v31 }
 0x40e   : > { %v1472_v33 = vpop.eup %1471  ;;  %1384 = vmatprep.mubr.msk.f32.mxu1 %vm305_vm0, %v842_v32 }
 0x40f   : > { %v844_v34 = vmul.f32 %v1472_v33, %v1456_v61 }
 0x411   : > { %1385 = vmatmul.mubr.msk.f32.vlgmr.msra.gmra.mrb[6].mxu1 %vm305_vm0, %v844_v34 }
 0x4d8   : > { %v1365_v35 = vpop.f32.mrb[4].mxu0 }
 0x4d9   : > { %1170 = vst.msk [vmem:[%s264_s19 + $0x8] sm:$0xff] %vm305_vm0, %v1365_v35  ;;  %v917_v36 = vpop.f32.mrb[5].mxu0 }
 0x4da   : > { %1169 = vst.msk [vmem:[%s264_s19] sm:$0xff] %vm305_vm0, %v917_v36 }
 0x4dd   : > { %v1372_v37 = vpop.f32.mrb[4].mxu1 }
 0x4de   : > { %1172 = vst.msk [vmem:[%s264_s19 + $0x18] sm:$0xff] %vm305_vm0, %v1372_v37  ;;  %v998_v38 = vpop.f32.mrb[5].mxu1 }
 0x4df   : > { %1171 = vst.msk [vmem:[%s264_s19 + $0x10] sm:$0xff] %vm305_vm0, %v998_v38 }
 0x4e0   : > { %v1379_v39 = vpop.f32.mrb[6].mxu0 }
 0x4e1   : > { %1174 = vst.msk [vmem:[%s264_s19 + $0x28] sm:$0xff] %vm305_vm0, %v1379_v39  ;;  %v1079_v40 = vpop.f32.mrb[7].mxu0 }
 0x4e2   : > { %1173 = vst.msk [vmem:[%s264_s19 + $0x20] sm:$0xff] %vm305_vm0, %v1079_v40 }
 0x4e4   : > { %v1386_v41 = vpop.f32.mrb[6].mxu1 }
 0x4e5   : > { %1176 = vst.msk [vmem:[%s264_s19 + $0x38] sm:$0xff] %vm305_vm0, %v1386_v41  ;;  %v1160_v42 = vpop.f32.mrb[7].mxu1 }
 0x4e6   : > { %1175 = vst.msk [vmem:[%s264_s19 + $0x30] sm:$0xff] %vm305_vm0, %v1160_v42 }
 0x4e7 PF: > { %s15_s18 = sadd.s32 1, %s1479_s18  }
 0x4e8   : > { %p12_p4 = scmp.ge.s32.totalorder %s15_s18, 4  }
 0x4ea   :  { %14 = sbr.rel (!%p12_p4) target bundleno = 1 (0x1), region = 76 }

</bundles_post_ra>
